<compile_context>
chip_gen: v7x
topology: tpu7x:2x2x1
jax: 0.10.0
libtpu: 0.0.40
codegen_flags: <defaults>
</compile_context>

<pallas_src>
import functools

import jax
import jax.numpy as jnp
from jax.experimental import pallas as pl
from jax.experimental.pallas import tpu as pltpu


def _conv_basis_kernel(x_ref, w_ref, b_ref, o_ref, xpad_ref, *,
                       H, W, K, n_basis, basis_size, bt, bsub, pad_lanes,
                       precision):
    """One grid step: bt images of shape (basis_size, H*W) -> (n_basis, H*W).

    x_ref   : (bt, basis_size, HW)          input tile (lane-dense HW)
    w_ref   : (K*K, n_basis, basis_size)    shared filter bank, tap-major
    b_ref   : (n_basis, 1)                  bias
    o_ref   : (bt, n_basis, HW)             output tile (lane-dense HW)
    xpad_ref: (bsub, basis_size, HW + 2*pad_lanes) VMEM scratch with zero halo
    """
    HW = H * W
    p = K // 2
    f32 = jnp.float32

    # Zero the flat halo strips once per grid step (parallel-safe: no state is
    # carried across grid steps; nothing below ever writes the halo).
    zeros_halo = jnp.zeros((bsub, basis_size, pad_lanes), x_ref.dtype)
    xpad_ref[:, :, 0:pad_lanes] = zeros_halo
    xpad_ref[:, :, pad_lanes + HW:pad_lanes + HW + pad_lanes] = zeros_halo

    # Column-validity masks: only the in-row (dx) component of a tap can read
    # a neighboring row's data in the flattened layout; the dy component is
    # handled by the zero halo.  Hoisted out of all loops.
    col = jax.lax.broadcasted_iota(jnp.int32, (1, 1, HW), 2) % W
    col_masks = []
    for dx in range(K):
        dxo = dx - p
        if dxo == 0:
            col_masks.append(None)
        else:
            col_masks.append(((col + dxo >= 0) & (col + dxo < W)).astype(f32))

    bias = b_ref[...][None, :, :].astype(f32)          # (1, n_basis, 1)

    def _one_subchunk(b0):
        # Copy this sub-chunk into the interior of the zero-padded scratch
        # (lane offset pad_lanes is 128-aligned -> unmasked stores).
        xpad_ref[:, :, pad_lanes:pad_lanes + HW] = x_ref[pl.ds(b0, bsub), :, :]

        acc = jnp.zeros((bsub, n_basis, HW), f32)
        for dy in range(K):
            for dx in range(K):
                # Flat shift of this tap: x[h+dy-p, w+dx-p] == flat[q + s].
                s = (dy - p) * W + (dx - p)
                win = xpad_ref[:, :, pad_lanes + s:pad_lanes + s + HW]
                win = win.astype(f32)
                if col_masks[dx] is not None:
                    win = win * col_masks[dx]
                # (bsub, n_basis, basis_size) @ (bsub, basis_size, HW) on MXU.
                wt = jnp.broadcast_to(w_ref[dy * K + dx].astype(f32),
                                      (bsub, n_basis, basis_size))
                acc = acc + jnp.einsum(
                    "bnc,bcq->bnq", wt, win,
                    preferred_element_type=f32, precision=precision)
        o_ref[pl.ds(b0, bsub), :, :] = (acc + bias).astype(o_ref.dtype)

    nsub = bt // bsub
    if nsub == 1:
        _one_subchunk(0)
    else:
        def _body(sub, carry):
            _one_subchunk(pl.multiple_of(sub * bsub, bsub))
            return carry
        jax.lax.fori_loop(0, nsub, _body, 0)


def _choose_tiles(bg_total, hw, n_basis, block_bg):
    """Pick (block size Bt, sub-chunk size Bsub)."""
    # Sub-chunk so the f32 accumulator (bsub, n_basis, HW) stays <= ~64 KB
    # (~16 vregs) and never spills.
    bsub = 8
    while bsub > 1 and bsub * n_basis * hw * 4 > 64 * 1024:
        bsub //= 2
    bt = max(1, min(block_bg, bg_total))
    if bt >= bsub:
        bt -= bt % bsub           # keep Bt a multiple of the sub-chunk size
    else:
        bsub = bt
    return bt, bsub


def conv_basis_pallas(x, weight, bias, basis_size, kernel_size, stride=1, *,
                      block_bg=128,
                      precision=jax.lax.Precision.HIGHEST):
    """x: [T, N, C, H, W]; weight: [n_basis, basis_size, K, K]; bias: [n_basis].

    `precision` controls the in-kernel MXU contraction; HIGHEST matches the
    f32 PyTorch reference closely (for 0/1 spike inputs, DEFAULT/bf16 is a
    cheaper option).
    """
    # TODO(synk): stride > 1 and even kernel_size are not implemented (the
    # module is only used with its defaults: stride=1, odd K, 'same' padding).
    assert stride == 1
    K = kernel_size
    assert K % 2 == 1
    T, N, C, H, W = x.shape
    n_basis = weight.shape[0]
    p = K // 2
    group = C // basis_size
    assert group * basis_size == C
    HW = H * W
    BG = T * N * group

    # Flat zero halo (in lanes) must cover the largest tap shift p*W + p;
    # round up to a multiple of 128 so the interior copy stays lane-aligned.
    pad_lanes = 128 * ((p * W + p + 127) // 128)
    assert pad_lanes >= p * W + p

    bt, bsub = _choose_tiles(BG, HW, n_basis, block_bg)
    grid = (pl.cdiv(BG, bt),)

    # --- zero-copy re-grouping (contiguous axes only: no HBM traffic) -------
    xr = x.reshape(BG, basis_size, HW)
    w_r = jnp.transpose(weight, (2, 3, 0, 1)).reshape(K * K, n_basis,
                                                      basis_size)
    b_r = bias.reshape(n_basis, 1).astype(jnp.float32)

    kernel = functools.partial(
        _conv_basis_kernel, H=H, W=W, K=K, n_basis=n_basis,
        basis_size=basis_size, bt=bt, bsub=bsub, pad_lanes=pad_lanes,
        precision=precision)

    out = pl.pallas_call(
        kernel,
        out_shape=jax.ShapeDtypeStruct((BG, n_basis, HW), x.dtype),
        grid_spec=pltpu.PrefetchScalarGridSpec(
            num_scalar_prefetch=0,
            grid=grid,
            in_specs=[
                pl.BlockSpec((bt, basis_size, HW), lambda i: (i, 0, 0)),
                pl.BlockSpec((K * K, n_basis, basis_size),
                             lambda i: (0, 0, 0)),
                pl.BlockSpec((n_basis, 1), lambda i: (0, 0)),
            ],
            out_specs=pl.BlockSpec((bt, n_basis, HW), lambda i: (i, 0, 0)),
            scratch_shapes=[
                pltpu.VMEM((bsub, basis_size, HW + 2 * pad_lanes), x.dtype),
            ],
        ),
        compiler_params=pltpu.CompilerParams(
            # blocked batch-group axis -> both TensorCores on v7x.
            dimension_semantics=("parallel",),
            # Explicit VMEM budget (actual usage is a few MiB): above v5e's
            # 16 MiB default scoped limit, with headroom under v7x's 64 MiB
            # physical VMEM.
            vmem_limit_bytes=48 * 1024 * 1024,
        ),
    )(xr, w_r, b_r)

    # Group-major channel concat: memory order is identical to torch.cat, so
    # this reshape is also free.
    return out.reshape(T, N, group * n_basis, H, W)


if __name__ == "__main__":
    key = jax.random.PRNGKey(0)
    T, N = 2, 2                      # time steps, batch
    in_channels, basis_size, n_basis, K = 8, 4, 8, 3
    H = W = 16
    group = in_channels // basis_size

    k1, k2, k3 = jax.random.split(key, 3)
    x = jax.random.normal(k1, (T, N, in_channels, H, W), jnp.float32)
    # filter_bank: (n_basis, basis_size, K, K).  The module initializes its
    # bias Parameter to zeros; use a nonzero bias here to exercise the path.
    weight = 0.1 * jax.random.normal(k2, (n_basis, basis_size, K, K),
                                     jnp.float32)
    bias = 0.1 * jax.random.normal(k3, (n_basis,), jnp.float32)

    # block_bg=4 so the tiny demo still runs a multi-step ("parallel") grid;
    # real workloads use the default block_bg=128.
    out = conv_basis_pallas(x, weight, bias, basis_size, K, stride=1,
                            block_bg=4)
    out = jax.block_until_ready(out)

    # Pure-JAX reference (grouped conv with the same split/concat as PyTorch).
    xb = x.reshape(T * N, in_channels, H, W)
    refs = []
    for g in range(group):
        xi = xb[:, g * basis_size:(g + 1) * basis_size]
        r = jax.lax.conv_general_dilated(
            xi, weight, window_strides=(1, 1),
            padding=((K // 2, K // 2), (K // 2, K // 2)),
            dimension_numbers=("NCHW", "OIHW", "NCHW"),
            precision=jax.lax.Precision.HIGHEST)
        refs.append(r + bias[None, :, None, None])
    ref = jnp.concatenate(refs, axis=1).reshape(T, N, group * n_basis, H, W)

    assert out.shape == ref.shape, (out.shape, ref.shape)
    assert jnp.allclose(out, ref, atol=1e-4, rtol=1e-4), (
        float(jnp.max(jnp.abs(out - ref))))
    print("KERNEL_OK")
</pallas_src>

<mosaic_0001>
module attributes {stable_mosaic.version = 11 : i64} {
  func.func @_conv_basis_kernel(%arg0: i32, %arg1: memref<4x4x256xf32, #tpu.memory_space<vmem>>, %arg2: memref<9x8x4xf32, #tpu.memory_space<vmem>>, %arg3: memref<8x1xf32, #tpu.memory_space<vmem>>, %arg4: memref<4x8x256xf32, #tpu.memory_space<vmem>>, %arg5: memref<4x4x512xf32, #tpu.memory_space<vmem>>) attributes {dimension_semantics = [#tpu.dimension_semantics<parallel>], iteration_bounds = array<i64: 2>, scalar_prefetch = 0 : i64, scratch_operands = 1 : i64, tpu.core_type = #tpu.core_type<tc>, window_params = [{transform_indices = @transform_0, window_bounds = array<i64: 4, 4, 256>}, {pipeline_mode = #tpu.pipeline_mode<synchronous>, transform_indices = @transform_1, window_bounds = array<i64: 9, 8, 4>}, {pipeline_mode = #tpu.pipeline_mode<synchronous>, transform_indices = @transform_2, window_bounds = array<i64: 8, 1>}, {transform_indices = @transform_3, window_bounds = array<i64: 4, 8, 256>}]} {
    %cst = arith.constant 0.000000e+00 : f32
    %0 = vector.broadcast %cst : f32 to vector<4x4x128xf32>
    %c0 = arith.constant 0 : index
    %c0_0 = arith.constant 0 : index
    %c0_1 = arith.constant 0 : index
    %1 = vector.load %arg5[%c0, %c0_0, %c0_1] : memref<4x4x512xf32, #tpu.memory_space<vmem>>, vector<4x4x128xf32>
    tpu.vector_store %arg5[%c0, %c0_0, %c0_1], %0 {strides = array<i32>} : memref<4x4x512xf32, #tpu.memory_space<vmem>>, vector<4x4x128xf32>,
    %c0_2 = arith.constant 0 : index
    %c0_3 = arith.constant 0 : index
    %c384 = arith.constant 384 : index
    %2 = vector.load %arg5[%c0_2, %c0_3, %c384] : memref<4x4x512xf32, #tpu.memory_space<vmem>>, vector<4x4x128xf32>
    tpu.vector_store %arg5[%c0_2, %c0_3, %c384], %0 {strides = array<i32>} : memref<4x4x512xf32, #tpu.memory_space<vmem>>, vector<4x4x128xf32>,
    %3 = tpu.iota {dimensions = array<i32: 2>} : vector<1x1x256xi32>
    %c16_i32 = arith.constant 16 : i32
    %c0_i32 = arith.constant 0 : i32
    %4 = arith.cmpi eq, %c16_i32, %c0_i32 : i32
    %c1_i32 = arith.constant 1 : i32
    %5 = arith.select %4, %c1_i32, %c16_i32 : i32
    %6 = vector.broadcast %5 : i32 to vector<1x1x256xi32>
    %7 = arith.remsi %3, %6 : vector<1x1x256xi32>
    %c0_i32_4 = arith.constant 0 : i32
    %8 = vector.broadcast %c0_i32_4 : i32 to vector<1x1x256xi32>
    %9 = arith.cmpi ne, %7, %8 : vector<1x1x256xi32>
    %c0_i32_5 = arith.constant 0 : i32
    %10 = vector.broadcast %c0_i32_5 : i32 to vector<1x1x256xi32>
    %11 = arith.cmpi slt, %7, %10 : vector<1x1x256xi32>
    %c0_i32_6 = arith.constant 0 : i32
    %12 = arith.cmpi slt, %5, %c0_i32_6 : i32
    %13 = vector.broadcast %12 : i1 to vector<1x1x256xi1>
    %14 = vector.broadcast %13 : vector<1x1x256xi1> to vector<1x1x256xi1>
    %15 = arith.xori %11, %14 : vector<1x1x256xi1>
    %16 = arith.andi %15, %9 : vector<1x1x256xi1>
    %17 = vector.broadcast %5 : i32 to vector<1x1x256xi32>
    %18 = arith.addi %7, %17 : vector<1x1x256xi32>
    %19 = arith.select %16, %18, %7 : vector<1x1x256xi1>, vector<1x1x256xi32>
    %c-1_i32 = arith.constant -1 : i32
    %20 = vector.broadcast %c-1_i32 : i32 to vector<1x1x256xi32>
    %21 = arith.addi %19, %20 : vector<1x1x256xi32>
    %c0_i32_7 = arith.constant 0 : i32
    %22 = vector.broadcast %c0_i32_7 : i32 to vector<1x1x256xi32>
    %23 = arith.cmpi sge, %21, %22 : vector<1x1x256xi32>
    %c-1_i32_8 = arith.constant -1 : i32
    %24 = vector.broadcast %c-1_i32_8 : i32 to vector<1x1x256xi32>
    %25 = arith.addi %19, %24 : vector<1x1x256xi32>
    %c16_i32_9 = arith.constant 16 : i32
    %26 = vector.broadcast %c16_i32_9 : i32 to vector<1x1x256xi32>
    %27 = arith.cmpi slt, %25, %26 : vector<1x1x256xi32>
    %28 = arith.andi %23, %27 : vector<1x1x256xi1>
    %29 = arith.extui %28 : vector<1x1x256xi1> to vector<1x1x256xi32>
    %30 = arith.sitofp %29 : vector<1x1x256xi32> to vector<1x1x256xf32>
    %c1_i32_10 = arith.constant 1 : i32
    %31 = vector.broadcast %c1_i32_10 : i32 to vector<1x1x256xi32>
    %32 = arith.addi %19, %31 : vector<1x1x256xi32>
    %c0_i32_11 = arith.constant 0 : i32
    %33 = vector.broadcast %c0_i32_11 : i32 to vector<1x1x256xi32>
    %34 = arith.cmpi sge, %32, %33 : vector<1x1x256xi32>
    %c1_i32_12 = arith.constant 1 : i32
    %35 = vector.broadcast %c1_i32_12 : i32 to vector<1x1x256xi32>
    %36 = arith.addi %19, %35 : vector<1x1x256xi32>
    %c16_i32_13 = arith.constant 16 : i32
    %37 = vector.broadcast %c16_i32_13 : i32 to vector<1x1x256xi32>
    %38 = arith.cmpi slt, %36, %37 : vector<1x1x256xi32>
    %39 = arith.andi %34, %38 : vector<1x1x256xi1>
    %40 = arith.extui %39 : vector<1x1x256xi1> to vector<1x1x256xi32>
    %41 = arith.sitofp %40 : vector<1x1x256xi32> to vector<1x1x256xf32>
    %c0_14 = arith.constant 0 : index
    %c0_15 = arith.constant 0 : index
    %42 = vector.load %arg3[%c0_14, %c0_15] : memref<8x1xf32, #tpu.memory_space<vmem>>, vector<8x1xf32>
    %43 = vector.shape_cast %42 : vector<8x1xf32> to vector<1x8x1xf32>
    %c0_16 = arith.constant 0 : index
    %c0_17 = arith.constant 0 : index
    %c0_18 = arith.constant 0 : index
    %44 = vector.load %arg1[%c0_16, %c0_17, %c0_18] : memref<4x4x256xf32, #tpu.memory_space<vmem>>, vector<4x4x256xf32>
    %c0_19 = arith.constant 0 : index
    %c0_20 = arith.constant 0 : index
    %c128 = arith.constant 128 : index
    %45 = vector.load %arg5[%c0_19, %c0_20, %c128] : memref<4x4x512xf32, #tpu.memory_space<vmem>>, vector<4x4x256xf32>
    tpu.vector_store %arg5[%c0_19, %c0_20, %c128], %44 {strides = array<i32>} : memref<4x4x512xf32, #tpu.memory_space<vmem>>, vector<4x4x256xf32>,
    %cst_21 = arith.constant 0.000000e+00 : f32
    %46 = vector.broadcast %cst_21 : f32 to vector<4x8x256xf32>
    %c0_22 = arith.constant 0 : index
    %c0_23 = arith.constant 0 : index
    %c111 = arith.constant 111 : index
    %47 = vector.load %arg5[%c0_22, %c0_23, %c111] : memref<4x4x512xf32, #tpu.memory_space<vmem>>, vector<4x4x256xf32>
    %48 = vector.broadcast %30 : vector<1x1x256xf32> to vector<4x4x256xf32>
    %49 = arith.mulf %47, %48 : vector<4x4x256xf32>
    %c0_24 = arith.constant 0 : index
    %c0_25 = arith.constant 0 : index
    %c0_26 = arith.constant 0 : index
    %50 = vector.load %arg2[%c0_24, %c0_25, %c0_26] : memref<9x8x4xf32, #tpu.memory_space<vmem>>, vector<1x8x4xf32>
    %51 = vector.shape_cast %50 : vector<1x8x4xf32> to vector<8x4xf32>
    %52 = vector.shape_cast %51 : vector<8x4xf32> to vector<1x8x4xf32>
    %53 = vector.broadcast %52 : vector<1x8x4xf32> to vector<4x8x4xf32>
    "tpu.trace_start"() <{level = 10 : i32, message = "bnc,bcq->bnq"}> : () -> ()
    %cst_27 = arith.constant dense<0.000000e+00> : vector<4x8x256xf32>
    %54 = tpu.matmul %53, %49, %cst_27 {dimension_numbers = #tpu.dot_dimension_numbers<[2], [1], [1], [2], [0, 0, 0, 1, 1, 2], [0], [0]>, precision = #tpu.contract_precision<fp32>} : vector<4x8x4xf32>, vector<4x4x256xf32>, vector<4x8x256xf32> -> vector<4x8x256xf32>
    "tpu.trace_stop"() : () -> ()
    %55 = arith.addf %46, %54 : vector<4x8x256xf32>
    %c0_28 = arith.constant 0 : index
    %c0_29 = arith.constant 0 : index
    %c112 = arith.constant 112 : index
    %56 = vector.load %arg5[%c0_28, %c0_29, %c112] : memref<4x4x512xf32, #tpu.memory_space<vmem>>, vector<4x4x256xf32>
    %c1 = arith.constant 1 : index
    %c0_30 = arith.constant 0 : index
    %c0_31 = arith.constant 0 : index
    %57 = vector.load %arg2[%c1, %c0_30, %c0_31] : memref<9x8x4xf32, #tpu.memory_space<vmem>>, vector<1x8x4xf32>
    %58 = vector.shape_cast %57 : vector<1x8x4xf32> to vector<8x4xf32>
    %59 = vector.shape_cast %58 : vector<8x4xf32> to vector<1x8x4xf32>
    %60 = vector.broadcast %59 : vector<1x8x4xf32> to vector<4x8x4xf32>
    "tpu.trace_start"() <{level = 10 : i32, message = "bnc,bcq->bnq"}> : () -> ()
    %cst_32 = arith.constant dense<0.000000e+00> : vector<4x8x256xf32>
    %61 = tpu.matmul %60, %56, %cst_32 {dimension_numbers = #tpu.dot_dimension_numbers<[2], [1], [1], [2], [0, 0, 0, 1, 1, 2], [0], [0]>, precision = #tpu.contract_precision<fp32>} : vector<4x8x4xf32>, vector<4x4x256xf32>, vector<4x8x256xf32> -> vector<4x8x256xf32>
    "tpu.trace_stop"() : () -> ()
    %62 = arith.addf %55, %61 : vector<4x8x256xf32>
    %c0_33 = arith.constant 0 : index
    %c0_34 = arith.constant 0 : index
    %c113 = arith.constant 113 : index
    %63 = vector.load %arg5[%c0_33, %c0_34, %c113] : memref<4x4x512xf32, #tpu.memory_space<vmem>>, vector<4x4x256xf32>
    %64 = vector.broadcast %41 : vector<1x1x256xf32> to vector<4x4x256xf32>
    %65 = arith.mulf %63, %64 : vector<4x4x256xf32>
    %c2 = arith.constant 2 : index
    %c0_35 = arith.constant 0 : index
    %c0_36 = arith.constant 0 : index
    %66 = vector.load %arg2[%c2, %c0_35, %c0_36] : memref<9x8x4xf32, #tpu.memory_space<vmem>>, vector<1x8x4xf32>
    %67 = vector.shape_cast %66 : vector<1x8x4xf32> to vector<8x4xf32>
    %68 = vector.shape_cast %67 : vector<8x4xf32> to vector<1x8x4xf32>
    %69 = vector.broadcast %68 : vector<1x8x4xf32> to vector<4x8x4xf32>
    "tpu.trace_start"() <{level = 10 : i32, message = "bnc,bcq->bnq"}> : () -> ()
    %cst_37 = arith.constant dense<0.000000e+00> : vector<4x8x256xf32>
    %70 = tpu.matmul %69, %65, %cst_37 {dimension_numbers = #tpu.dot_dimension_numbers<[2], [1], [1], [2], [0, 0, 0, 1, 1, 2], [0], [0]>, precision = #tpu.contract_precision<fp32>} : vector<4x8x4xf32>, vector<4x4x256xf32>, vector<4x8x256xf32> -> vector<4x8x256xf32>
    "tpu.trace_stop"() : () -> ()
    %71 = arith.addf %62, %70 : vector<4x8x256xf32>
    %c0_38 = arith.constant 0 : index
    %c0_39 = arith.constant 0 : index
    %c127 = arith.constant 127 : index
    %72 = vector.load %arg5[%c0_38, %c0_39, %c127] : memref<4x4x512xf32, #tpu.memory_space<vmem>>, vector<4x4x256xf32>
    %73 = vector.broadcast %30 : vector<1x1x256xf32> to vector<4x4x256xf32>
    %74 = arith.mulf %72, %73 : vector<4x4x256xf32>
    %c3 = arith.constant 3 : index
    %c0_40 = arith.constant 0 : index
    %c0_41 = arith.constant 0 : index
    %75 = vector.load %arg2[%c3, %c0_40, %c0_41] : memref<9x8x4xf32, #tpu.memory_space<vmem>>, vector<1x8x4xf32>
    %76 = vector.shape_cast %75 : vector<1x8x4xf32> to vector<8x4xf32>
    %77 = vector.shape_cast %76 : vector<8x4xf32> to vector<1x8x4xf32>
    %78 = vector.broadcast %77 : vector<1x8x4xf32> to vector<4x8x4xf32>
    "tpu.trace_start"() <{level = 10 : i32, message = "bnc,bcq->bnq"}> : () -> ()
    %cst_42 = arith.constant dense<0.000000e+00> : vector<4x8x256xf32>
    %79 = tpu.matmul %78, %74, %cst_42 {dimension_numbers = #tpu.dot_dimension_numbers<[2], [1], [1], [2], [0, 0, 0, 1, 1, 2], [0], [0]>, precision = #tpu.contract_precision<fp32>} : vector<4x8x4xf32>, vector<4x4x256xf32>, vector<4x8x256xf32> -> vector<4x8x256xf32>
    "tpu.trace_stop"() : () -> ()
    %80 = arith.addf %71, %79 : vector<4x8x256xf32>
    %c0_43 = arith.constant 0 : index
    %c0_44 = arith.constant 0 : index
    %c128_45 = arith.constant 128 : index
    %81 = vector.load %arg5[%c0_43, %c0_44, %c128_45] : memref<4x4x512xf32, #tpu.memory_space<vmem>>, vector<4x4x256xf32>
    %c4 = arith.constant 4 : index
    %c0_46 = arith.constant 0 : index
    %c0_47 = arith.constant 0 : index
    %82 = vector.load %arg2[%c4, %c0_46, %c0_47] : memref<9x8x4xf32, #tpu.memory_space<vmem>>, vector<1x8x4xf32>
    %83 = vector.shape_cast %82 : vector<1x8x4xf32> to vector<8x4xf32>
    %84 = vector.shape_cast %83 : vector<8x4xf32> to vector<1x8x4xf32>
    %85 = vector.broadcast %84 : vector<1x8x4xf32> to vector<4x8x4xf32>
    "tpu.trace_start"() <{level = 10 : i32, message = "bnc,bcq->bnq"}> : () -> ()
    %cst_48 = arith.constant dense<0.000000e+00> : vector<4x8x256xf32>
    %86 = tpu.matmul %85, %81, %cst_48 {dimension_numbers = #tpu.dot_dimension_numbers<[2], [1], [1], [2], [0, 0, 0, 1, 1, 2], [0], [0]>, precision = #tpu.contract_precision<fp32>} : vector<4x8x4xf32>, vector<4x4x256xf32>, vector<4x8x256xf32> -> vector<4x8x256xf32>
    "tpu.trace_stop"() : () -> ()
    %87 = arith.addf %80, %86 : vector<4x8x256xf32>
    %c0_49 = arith.constant 0 : index
    %c0_50 = arith.constant 0 : index
    %c129 = arith.constant 129 : index
    %88 = vector.load %arg5[%c0_49, %c0_50, %c129] : memref<4x4x512xf32, #tpu.memory_space<vmem>>, vector<4x4x256xf32>
    %89 = vector.broadcast %41 : vector<1x1x256xf32> to vector<4x4x256xf32>
    %90 = arith.mulf %88, %89 : vector<4x4x256xf32>
    %c5 = arith.constant 5 : index
    %c0_51 = arith.constant 0 : index
    %c0_52 = arith.constant 0 : index
    %91 = vector.load %arg2[%c5, %c0_51, %c0_52] : memref<9x8x4xf32, #tpu.memory_space<vmem>>, vector<1x8x4xf32>
    %92 = vector.shape_cast %91 : vector<1x8x4xf32> to vector<8x4xf32>
    %93 = vector.shape_cast %92 : vector<8x4xf32> to vector<1x8x4xf32>
    %94 = vector.broadcast %93 : vector<1x8x4xf32> to vector<4x8x4xf32>
    "tpu.trace_start"() <{level = 10 : i32, message = "bnc,bcq->bnq"}> : () -> ()
    %cst_53 = arith.constant dense<0.000000e+00> : vector<4x8x256xf32>
    %95 = tpu.matmul %94, %90, %cst_53 {dimension_numbers = #tpu.dot_dimension_numbers<[2], [1], [1], [2], [0, 0, 0, 1, 1, 2], [0], [0]>, precision = #tpu.contract_precision<fp32>} : vector<4x8x4xf32>, vector<4x4x256xf32>, vector<4x8x256xf32> -> vector<4x8x256xf32>
    "tpu.trace_stop"() : () -> ()
    %96 = arith.addf %87, %95 : vector<4x8x256xf32>
    %c0_54 = arith.constant 0 : index
    %c0_55 = arith.constant 0 : index
    %c143 = arith.constant 143 : index
    %97 = vector.load %arg5[%c0_54, %c0_55, %c143] : memref<4x4x512xf32, #tpu.memory_space<vmem>>, vector<4x4x256xf32>
    %98 = vector.broadcast %30 : vector<1x1x256xf32> to vector<4x4x256xf32>
    %99 = arith.mulf %97, %98 : vector<4x4x256xf32>
    %c6 = arith.constant 6 : index
    %c0_56 = arith.constant 0 : index
    %c0_57 = arith.constant 0 : index
    %100 = vector.load %arg2[%c6, %c0_56, %c0_57] : memref<9x8x4xf32, #tpu.memory_space<vmem>>, vector<1x8x4xf32>
    %101 = vector.shape_cast %100 : vector<1x8x4xf32> to vector<8x4xf32>
    %102 = vector.shape_cast %101 : vector<8x4xf32> to vector<1x8x4xf32>
    %103 = vector.broadcast %102 : vector<1x8x4xf32> to vector<4x8x4xf32>
    "tpu.trace_start"() <{level = 10 : i32, message = "bnc,bcq->bnq"}> : () -> ()
    %cst_58 = arith.constant dense<0.000000e+00> : vector<4x8x256xf32>
    %104 = tpu.matmul %103, %99, %cst_58 {dimension_numbers = #tpu.dot_dimension_numbers<[2], [1], [1], [2], [0, 0, 0, 1, 1, 2], [0], [0]>, precision = #tpu.contract_precision<fp32>} : vector<4x8x4xf32>, vector<4x4x256xf32>, vector<4x8x256xf32> -> vector<4x8x256xf32>
    "tpu.trace_stop"() : () -> ()
    %105 = arith.addf %96, %104 : vector<4x8x256xf32>
    %c0_59 = arith.constant 0 : index
    %c0_60 = arith.constant 0 : index
    %c144 = arith.constant 144 : index
    %106 = vector.load %arg5[%c0_59, %c0_60, %c144] : memref<4x4x512xf32, #tpu.memory_space<vmem>>, vector<4x4x256xf32>
    %c7 = arith.constant 7 : index
    %c0_61 = arith.constant 0 : index
    %c0_62 = arith.constant 0 : index
    %107 = vector.load %arg2[%c7, %c0_61, %c0_62] : memref<9x8x4xf32, #tpu.memory_space<vmem>>, vector<1x8x4xf32>
    %108 = vector.shape_cast %107 : vector<1x8x4xf32> to vector<8x4xf32>
    %109 = vector.shape_cast %108 : vector<8x4xf32> to vector<1x8x4xf32>
    %110 = vector.broadcast %109 : vector<1x8x4xf32> to vector<4x8x4xf32>
    "tpu.trace_start"() <{level = 10 : i32, message = "bnc,bcq->bnq"}> : () -> ()
    %cst_63 = arith.constant dense<0.000000e+00> : vector<4x8x256xf32>
    %111 = tpu.matmul %110, %106, %cst_63 {dimension_numbers = #tpu.dot_dimension_numbers<[2], [1], [1], [2], [0, 0, 0, 1, 1, 2], [0], [0]>, precision = #tpu.contract_precision<fp32>} : vector<4x8x4xf32>, vector<4x4x256xf32>, vector<4x8x256xf32> -> vector<4x8x256xf32>
    "tpu.trace_stop"() : () -> ()
    %112 = arith.addf %105, %111 : vector<4x8x256xf32>
    %c0_64 = arith.constant 0 : index
    %c0_65 = arith.constant 0 : index
    %c145 = arith.constant 145 : index
    %113 = vector.load %arg5[%c0_64, %c0_65, %c145] : memref<4x4x512xf32, #tpu.memory_space<vmem>>, vector<4x4x256xf32>
    %114 = vector.broadcast %41 : vector<1x1x256xf32> to vector<4x4x256xf32>
    %115 = arith.mulf %113, %114 : vector<4x4x256xf32>
    %c8 = arith.constant 8 : index
    %c0_66 = arith.constant 0 : index
    %c0_67 = arith.constant 0 : index
    %116 = vector.load %arg2[%c8, %c0_66, %c0_67] : memref<9x8x4xf32, #tpu.memory_space<vmem>>, vector<1x8x4xf32>
    %117 = vector.shape_cast %116 : vector<1x8x4xf32> to vector<8x4xf32>
    %118 = vector.shape_cast %117 : vector<8x4xf32> to vector<1x8x4xf32>
    %119 = vector.broadcast %118 : vector<1x8x4xf32> to vector<4x8x4xf32>
    "tpu.trace_start"() <{level = 10 : i32, message = "bnc,bcq->bnq"}> : () -> ()
    %cst_68 = arith.constant dense<0.000000e+00> : vector<4x8x256xf32>
    %120 = tpu.matmul %119, %115, %cst_68 {dimension_numbers = #tpu.dot_dimension_numbers<[2], [1], [1], [2], [0, 0, 0, 1, 1, 2], [0], [0]>, precision = #tpu.contract_precision<fp32>} : vector<4x8x4xf32>, vector<4x4x256xf32>, vector<4x8x256xf32> -> vector<4x8x256xf32>
    "tpu.trace_stop"() : () -> ()
    %121 = arith.addf %112, %120 : vector<4x8x256xf32>
    %122 = vector.broadcast %43 : vector<1x8x1xf32> to vector<4x8x256xf32>
    %123 = arith.addf %121, %122 : vector<4x8x256xf32>
    %c0_69 = arith.constant 0 : index
    %c0_70 = arith.constant 0 : index
    %c0_71 = arith.constant 0 : index
    %124 = vector.load %arg4[%c0_69, %c0_70, %c0_71] : memref<4x8x256xf32, #tpu.memory_space<vmem>>, vector<4x8x256xf32>
    tpu.vector_store %arg4[%c0_69, %c0_70, %c0_71], %123 {strides = array<i32>} : memref<4x8x256xf32, #tpu.memory_space<vmem>>, vector<4x8x256xf32>,
    return
  }
  func.func @transform_0(%arg0: i32) -> (i32, i32, i32) {
    %c0_i32 = arith.constant 0 : i32
    %c0_i32_0 = arith.constant 0 : i32
    %c0_i32_1 = arith.constant 0 : i32
    return %arg0, %c0_i32, %c0_i32_0 : i32, i32, i32
  }
  func.func @transform_1(%arg0: i32) -> (i32, i32, i32) {
    %c0_i32 = arith.constant 0 : i32
    %c0_i32_0 = arith.constant 0 : i32
    %c0_i32_1 = arith.constant 0 : i32
    %c0_i32_2 = arith.constant 0 : i32
    return %c0_i32, %c0_i32_0, %c0_i32_1 : i32, i32, i32
  }
  func.func @transform_2(%arg0: i32) -> (i32, i32) {
    %c0_i32 = arith.constant 0 : i32
    %c0_i32_0 = arith.constant 0 : i32
    %c0_i32_1 = arith.constant 0 : i32
    return %c0_i32, %c0_i32_0 : i32, i32
  }
  func.func @transform_3(%arg0: i32) -> (i32, i32, i32) {
    %c0_i32 = arith.constant 0 : i32
    %c0_i32_0 = arith.constant 0 : i32
    %c0_i32_1 = arith.constant 0 : i32
    return %arg0, %c0_i32, %c0_i32_0 : i32, i32, i32
  }
}

</mosaic_0001>

<bundles_post_ra>
// kernel: tpu_custom_call.1
= control target key start
LH: loop header
LB: loop body
LE: loop exit
PB: predicated region body
PF: predicated region fallthrough
CT: control target
= control target key end

     0   :  { %8 = vsyncpa [#allocation4], 0  ;;  %s20338_s0 = inlined_call_operand.vmem [shape: f32[8,4,256], index: 0, kind: input, shape index: {}]   ;;  %s20339_s1 = inlined_call_operand.vmem [shape: f32[9,8,4], index: 1, kind: input, shape index: {}]   ;;  %s20340_s2 = inlined_call_operand.vmem [shape: f32[8,1], index: 2, kind: input, shape index: {}]   ;;  %s20341_s3 = inlined_call_operand.hbm [shape: f32[8,8,256], index: 3, kind: output, shape index: {}]  }
   0x1   :  { %10 = vsyncpa [#allocation4 + $0x1], 0  ;;  %s18475_s12 = smov 0   ;;  %s18477_s13 = smov 0  }
   0x2   :  { %s18479_s14 = smov 0   ;;  %s18481_s15 = smov 0  }
   0x3 LB: > { %s18496_s16 = sadd.s32 4294967295, %s18441_s15   ;;  %s17853_s17 = sadd.s32 4294967294, %s18441_s15   ;;  %s18441_s15 = sphi %s18481_s15, %s20347_s15   ;;  %s18437_s14 = sphi %s18479_s14, %s20346_s14   ;;  %s18433_s13 = sphi %s18477_s13, %s20345_s13   ;;  %s18429_s12 = sphi %s18475_s12, %s20344_s12  }
   0x4   : > { %s18500_s18 = sadd.s32 1, %s18441_s15   ;;  %s91_s19 = sadd.s32 1, %s18437_s14 }
   0x5   : > { %s88_s20 = ssub.s32 %s18441_s15, %s18500_s18  ;;  %p101_p0 = scmp.ne.s32.totalorder %s18437_s14, %s18433_s13 }
   0x6   : > { %p89_p1 = scmp.eq.s32.totalorder %s88_s20, 0  ;;  %p102_p2 = scmp.eq.s32.totalorder %s18496_s16, 1 }
   0x7   : > { %p107_p3 = scmp.ne.s32.totalorder %s18433_s13, %s18429_s12  ;;  %p108_p4 = scmp.eq.s32.totalorder %s17853_s17, 1 }
   0x8   : > { %s18511_s21 = scalar_select %p89_p1, %s18437_s14, %s91_s19  }
   0x9   : > { %p18513_p5 = por %p102_p2, %p101_p0  ;;  %p18517_p6 = por %p108_p4, %p107_p3 }
   0xa   : > { %p17856_p7 = scmp.ge.s32.totalorder %s18441_s15, 1  ;;  %p142_p8 = scmp.lt.s32.totalorder %s18441_s15, 3 }
   0xc   : > { %p143_p9 = pnand %p17856_p7, %p142_p8 }
   0xd   : > { %s17858_s24 = sshll.u32 (!%p143_p9), %s18496_s16, 2  ;;  %v183_v0 = vlaneseq (!%p143_p9)  ;;  %v18443_v1 = vmov (!%p143_p9), 0.0   ;;  %s18444_s29 = smov (!%p143_p9), 16   ;;  %v17865_v32 = vld [vmem:[%s20339_s1 + $0x8] sm:$0xff] (!%p143_p9)  ;;  %vm292_vm4 = vcmask (!%p143_p9), 31744   ;;  %vm289_vm5 = vcmask (!%p143_p9), 130048  }
   0xe   : > { %146 = sbr.rel (%p143_p9) target bundleno = 1334 (0x536), region = 32  ;;  %p168_p10 = scmp.lt.s32.totalorder (!%p143_p9), %s17858_s24, 7  ;;  %175 = vst [vmem:[#allocation2] sm:$0xf] (!%p143_p9), %v18443_v1  ;;  %176 = vst [vmem:[#allocation2 + $0x10] sm:$0xf] (!%p143_p9), %v18443_v1  ;;  %367 = vmatprep.mubr.f32.mxu0 (!%p143_p9), %v18443_v1  ;;  %847 = vmatprep.mubr.f32.mxu1 (!%p143_p9), %v18443_v1 }
   0xf   : > { %177 = vst [vmem:[#allocation2 + $0x20] sm:$0xf] (!%p143_p9), %v18443_v1  ;;  %178 = vst [vmem:[#allocation2 + $0x30] sm:$0xf] (!%p143_p9), %v18443_v1  ;;  %v184_v2 = vand.u32 (!%p143_p9), 127, %v183_v0  ;;  %s18445_s30 = smov (!%p143_p9), 111  }
  0x10   : > { %179 = vst [vmem:[#allocation2 + $0xc] sm:$0xf] (!%p143_p9), %v18443_v1  ;;  %180 = vst [vmem:[#allocation2 + $0x1c] sm:$0xf] (!%p143_p9), %v18443_v1  ;;  %v294_v33 = vsel (!%p143_p9), %vm292_vm4, %v17865_v32, 0  ;;  %vm296_vm6 = vcmask (!%p143_p9), 1043456  }
  0x11   : > { %181 = vst [vmem:[#allocation2 + $0x2c] sm:$0xf] (!%p143_p9), %v18443_v1  ;;  %182 = vst [vmem:[#allocation2 + $0x3c] sm:$0xf] (!%p143_p9), %v18443_v1  ;;  %v185_v3 = vadd.s32 (!%p143_p9), 128, %v184_v2  ;;  %v190_v8 = vand.u32 (!%p143_p9), 15, %v184_v2 }
  0x12   : > { %v18583_v34 = vand.u32 (!%p143_p9), 4294901760, %v294_v33  ;;  %vm257_vm7 = vcmask (!%p143_p9), 908288   ;;  %s18446_s6 = smov (!%p143_p9), 17   ;;  %s18447_s7 = smov (!%p143_p9), 113   ;;  %vm2215_vm8 = vcmask (!%p143_p9), 138240   ;;  %vm4144_vm9 = vcmask (!%p143_p9), 924672  }
  0x13   : > { %v197_v9 = vand.u32 (!%p143_p9), 15, %v185_v3  ;;  %v210_v10 = vadd.s32 (!%p143_p9), 4294967295, %v190_v8  ;;  %v222_v26 = vadd.s32 (!%p143_p9), 1, %v190_v8  ;;  %s18448_s10 = smov (!%p143_p9), 15   ;;  %s18449_s11 = smov (!%p143_p9), 127   ;;  %vm4167_vm10 = vcmask (!%p143_p9), 121856  }
  0x14   : > { %v18586_v35 = vsub.f32 (!%p143_p9), %v294_v33, %v18583_v34  ;;  %vm6101_vm11 = vcmask (!%p143_p9), 1039360   ;;  %s18450_s20 = smov (!%p143_p9), 1   ;;  %vm6124_vm12 = vcmask (!%p143_p9), 7168   ;;  %s18451_s5 = smov (!%p143_p9), 112   ;;  %vm13877_vm13 = vcmask (!%p143_p9), 916480  }
  0x15   : > { %s20349_s24 = smov (!%p168_p10, %s17858_s24), 7  ;;  %v211_v11 = vadd.s32 4294967295, %v197_v9  ;;  %vm212_vm0 = vcmp.ge.s32.totalorder %v210_v10, 0  ;;  %v223_v27 = vadd.s32 1, %v197_v9  ;;  %vm226_vm2 = vcmp.lt.s32.totalorder %v222_v26, 16  ;;  %s164_s19 = sand.u32 1, %s18433_s13  }
  0x16   : > { %s17879_s25 = sshll.u32 %s20349_s24, 3  ;;  %v17861_v18 = vsel %vm212_vm0, 1.0, %v18443_v1  ;;  %v17863_v29 = vsel %vm226_vm2, 1.0, %v18443_v1  ;;  %v18589_v38 = vand.u32 4294901760, %v18586_v35 }
  0x17   : > { %s172_s28 = scalar_lea.vmem %s20338_s0, %s17879_s25  ;;  %vm213_vm1 = vcmp.ge.s32.totalorder %v211_v11, 0  ;;  %vm227_vm3 = vcmp.lt.s32.totalorder %v223_v27, 16  ;;  %s17881_s25 = sshll.u32 %s18496_s16, 10 }
  0x18   : > { %v235_v4 = vld [vmem:[%s172_s28] sm:$0xff]  ;;  %v236_v5 = vld [vmem:[%s172_s28 + $0x8] sm:$0xff]  ;;  %v237_v6 = vld [vmem:[%s172_s28 + $0x10] sm:$0xff]  ;;  %v17862_v19 = vsel %vm213_vm1, 1.0, %v18443_v1  ;;  %v17864_v30 = vsel %vm227_vm3, 1.0, %v18443_v1  ;;  %v371_v44 = vsub.f32 %v18586_v35, %v18589_v38  ;;  %s20290_s4 = scalar_lea.hbm %s20341_s3, %s17881_s25  ;;  %s20296_s16 = scalar_lea.sflag [#allocation4], %s164_s19 }
  0x19   : > { %239 = vst [vmem:[#allocation2 + $0x4] sm:$0xff] %v235_v4  ;;  %240 = vst [vmem:[#allocation2 + $0x14] sm:$0xff] %v236_v5  ;;  %v238_v7 = vld [vmem:[%s172_s28 + $0x18] sm:$0xff]  ;;  %v18555_v21 = vcombine.low %v17861_v18, %v17862_v19  ;;  %v18572_v31 = vcombine.low %v17863_v29, %v17864_v30 }
  0x1a   : > { %241 = vst [vmem:[#allocation2 + $0x24] sm:$0xff] %v237_v6  ;;  %242 = vst [vmem:[#allocation2 + $0x34] sm:$0xff] %v238_v7  ;;  %v18611_v55 = vand.u32 4294901760, %v371_v44 }
  0x20   : > { %v271_v12 = vld [vmem:[#allocation2 + $0x8] sm:$0xf]  ;;  %v18537_v13 = vld [vmem:[#allocation2] sm:$0xff]  ;;  %v273_v14 = vld [vmem:[#allocation2 + $0x18] sm:$0xf] }
  0x21   : > { %287 = vrot.lane.b32.xlu0 %v271_v12, %s18444_s29  ;;  %v282_v15 = vcombine.high %v18537_v13, %v18537_v13  ;;  %773 = vrot.lane.b32.xlu1 %v273_v14, %s18444_s29  ;;  %v18543_v16 = vld [vmem:[#allocation2 + $0x10] sm:$0xff]  ;;  %v18551_v20 = vld [vmem:[#allocation2 + $0x20] sm:$0xff]  ;;  %v275_v25 = vld [vmem:[#allocation2 + $0x28] sm:$0xf] }
  0x22   : > { %v768_v17 = vcombine.high %v18543_v16, %v18543_v16  ;;  %v1248_v22 = vcombine.high %v18551_v20, %v18551_v20  ;;  %v18561_v23 = vld [vmem:[#allocation2 + $0x30] sm:$0xff]  ;;  %v277_v28 = vld [vmem:[#allocation2 + $0x38] sm:$0xf]  ;;  %v244_v61 = vld [vmem:[#allocation2 + $0x8] sm:$0xf] }
  0x23   : > { %v1728_v24 = vcombine.high %v18561_v23, %v18561_v23  ;;  %v246_v9 = vld [vmem:[#allocation2 + $0x18] sm:$0xf] }
  0x24   : > { %v250_v44 = vld [vmem:[#allocation2 + $0x38] sm:$0xf] }
  0x25   : > { %285 = vrot.lane.b32.xlu0 %v282_v15, %s18444_s29  ;;  %771 = vrot.lane.b32.xlu1 %v768_v17, %s18444_s29 }
  0x29   : > { %283 = vrot.lane.b32.xlu0 %v18537_v13, %s18444_s29  ;;  %769 = vrot.lane.b32.xlu1 %v18543_v16, %s18444_s29 }
  0x2d   : > { %254 = vrot.lane.b32.xlu0 %v18555_v21, %s18445_s30  ;;  %1251 = vrot.lane.b32.xlu1 %v1248_v22, %s18444_s29 }
  0x31   : > { %1731 = vrot.lane.b32.xlu1 %v1728_v24, %s18444_s29  ;;  %1253 = vrot.lane.b32.xlu0 %v275_v25, %s18444_s29 }
  0x35   : > { %1249 = vrot.lane.b32.xlu1 %v18551_v20, %s18444_s29  ;;  %1733 = vrot.lane.b32.xlu0 %v277_v28, %s18444_s29 }
  0x39   : > { %1729 = vrot.lane.b32.xlu0 %v18561_v23, %s18444_s29 }
  0x93   : > { %v288_v36 = vpop.permute.xlu0 %287  ;;  %v774_v37 = vpop.permute.xlu1 %773 }
  0x97   : > { %v286_v39 = vpop.permute.xlu0 %285  ;;  %v772_v40 = vpop.permute.xlu1 %771 }
  0x98   : > { %v291_v41 = vsel %vm289_vm5, %v286_v39, %v288_v36  ;;  %v776_v42 = vsel %vm289_vm5, %v772_v40, %v774_v37 }
  0x99   : > { %v299_v43 = vsel %vm296_vm6, %v291_v41, 0  ;;  %v779_v45 = vsel %vm296_vm6, %v776_v42, 0 }
  0x9a   : > { %v18597_v46 = vand.u32 4294901760, %v299_v43  ;;  %v18599_v47 = vand.u32 4294901760, %v779_v45 }
  0x9b   : > { %v284_v48 = vpop.permute.xlu0 %283  ;;  %v770_v49 = vpop.permute.xlu1 %769 }
  0x9c   : > { %v18602_v50 = vsub.f32 %v299_v43, %v18597_v46  ;;  %v290_v51 = vsel %vm289_vm5, %v284_v48, %v286_v39  ;;  %302 = vmatprep.subr.mxu0 %v18597_v46  ;;  %v18607_v52 = vsub.f32 %v779_v45, %v18599_v47  ;;  %v775_v53 = vsel %vm289_vm5, %v770_v49, %v772_v40  ;;  %v248_v40 = vld [vmem:[#allocation2 + $0x28] sm:$0xf] }
  0x9d   : > { %v297_v54 = vsel %vm296_vm6, %v290_v51, 0  ;;  %v777_v56 = vsel %vm296_vm6, %v775_v53, 0  ;;  %782 = vmatprep.subr.mxu1 %v18599_v47 }
  0x9e   : > { %v18615_v57 = vand.u32 4294901760, %v297_v54  ;;  %v381_v58 = vand.u32 4294901760, %v18602_v50  ;;  %v18618_v59 = vand.u32 4294901760, %v777_v56  ;;  %v861_v62 = vand.u32 4294901760, %v18607_v52 }
  0x9f   : > { %v255_v60 = vpop.permute.xlu0 %254  ;;  %v1252_v17 = vpop.permute.xlu1 %1251 }
  0xa0   : > { %v18622_v63 = vsub.f32 %v297_v54, %v18615_v57  ;;  %v18624_v0 = vrot.slane %v255_v60, 4  ;;  %304 = vmatpush1.msra.mxu0 %v18615_v57  ;;  %v382_v2 = vsub.f32 %v18602_v50, %v381_v58  ;;  %v18631_v3 = vsub.f32 %v777_v56, %v18618_v59  ;;  %784 = vmatpush1.msra.mxu1 %v18618_v59 }
  0xa1   : > { %373 = vmatmul.mubr.f32.vlgmr.msra.gmra.mrb[0].mxu0 %v18611_v55  ;;  %853 = vmatmul.mubr.f32.vlgmr.msra.gmra.mrb[0].mxu1 %v18611_v55  ;;  %v862_v12 = vsub.f32 %v18607_v52, %v861_v62 }
  0xa2   : > { %v387_v4 = vand.u32 4294901760, %v18622_v63  ;;  %v258_v5 = vsel %vm257_vm7, %v18624_v0, %v255_v60  ;;  %v383_v6 = vand.u32 4294901760, %v382_v2  ;;  %v262_v7 = vmul.f32 %v18624_v0, %v244_v61  ;;  %453 = vmatprep.mubr.f32.mxu0 %v18443_v1  ;;  %933 = vmatprep.mubr.f32.mxu1 %v18443_v1 }
  0xa3   : > { %v261_v8 = vmul.f32 %v18537_v13, %v258_v5  ;;  %v867_v11 = vand.u32 4294901760, %v18631_v3  ;;  %v263_v14 = vmul.f32 %v18543_v16, %v258_v5  ;;  %v264_v19 = vmul.f32 %v18624_v0, %v246_v9  ;;  %v1254_v28 = vpop.permute.xlu0 %1253  ;;  %v1732_v29 = vpop.permute.xlu1 %1731 }
  0xa4   : > { %384 = vmatprep.subr.mxu0 %v383_v6  ;;  %2213 = vrot.lane.b32.xlu0 %v262_v7, %s18446_s6  ;;  %v388_v10 = vsub.f32 %v18622_v63, %v387_v4  ;;  %v863_v24 = vand.u32 4294901760, %v862_v12  ;;  %v265_v27 = vmul.f32 %v18551_v20, %v258_v5  ;;  %v267_v30 = vmul.f32 %v18561_v23, %v258_v5 }
  0xa5   : > { %v2208_v15 = vcombine.high %v261_v8, %v261_v8  ;;  %v868_v22 = vsub.f32 %v18631_v3, %v867_v11  ;;  %v2692_v25 = vcombine.high %v263_v14, %v263_v14  ;;  %v1256_v36 = vsel %vm289_vm5, %v1252_v17, %v1254_v28 }
  0xa6   : > { %v389_v18 = vand.u32 4294901760, %v388_v10  ;;  %864 = vmatprep.subr.mxu1 %v863_v24  ;;  %v3172_v32 = vcombine.high %v265_v27, %v265_v27  ;;  %v3652_v39 = vcombine.high %v267_v30, %v267_v30  ;;  %v1259_v41 = vsel %vm296_vm6, %v1256_v36, 0 }
  0xa7   : > { %2211 = vrot.lane.b32.xlu1 %v2208_v15, %s18446_s6  ;;  %v869_v26 = vand.u32 4294901760, %v868_v22  ;;  %v1734_v33 = vpop.permute.xlu0 %1733  ;;  %v1250_v37 = vpop.permute.xlu1 %1249  ;;  %v266_v43 = vmul.f32 %v18624_v0, %v248_v40  ;;  %v18690_v49 = vand.u32 4294901760, %v1259_v41  ;;  %v268_v51 = vmul.f32 %v18624_v0, %v250_v44 }
  0xa8   : > { %390 = vmatpush1.msra.mxu0 %v389_v18  ;;  %2697 = vrot.lane.b32.xlu0 %v264_v19, %s18446_s6  ;;  %v1255_v42 = vsel %vm289_vm5, %v1250_v37, %v1252_v17  ;;  %v1736_v45 = vsel %vm289_vm5, %v1732_v29, %v1734_v33 }
  0xa9   : > { %455 = vmatmul.mubr.f32.vlgmr.msra.gmra.mrb[0].mxu0 %v18583_v34  ;;  %463 = vmatprep.subr.mxu0 %v18602_v50  ;;  %v1257_v50 = vsel %vm296_vm6, %v1255_v42, 0  ;;  %v1739_v53 = vsel %vm296_vm6, %v1736_v45, 0 }
  0xaa   : > { %466 = vmatpush1.msra.mxu0 %v18622_v63  ;;  %529 = vmatprep.mubr.f32.mxu0 %v18443_v1  ;;  %v18704_v56 = vand.u32 4294901760, %v1257_v50  ;;  %v18709_v60 = vand.u32 4294901760, %v1739_v53 }
  0xab   : > { %539 = vmatprep.subr.mxu0 %v18597_v46  ;;  %2695 = vrot.lane.b32.xlu1 %v2692_v25, %s18446_s6  ;;  %v1730_v48 = vpop.permute.xlu0 %1729 }
  0xac   : > { %2693 = vrot.lane.b32.xlu0 %v263_v14, %s18446_s6  ;;  %870 = vmatpush1.msra.mxu1 %v869_v26  ;;  %v1735_v54 = vsel %vm289_vm5, %v1730_v48, %v1732_v29  ;;  %v1346_v61 = vsub.f32 %v1257_v50, %v18704_v56  ;;  %v1820_v63 = vsub.f32 %v1739_v53, %v18709_v60 }
  0xad   : > { %935 = vmatmul.mubr.f32.vlgmr.msra.gmra.mrb[0].mxu1 %v18583_v34  ;;  %943 = vmatprep.subr.mxu1 %v18607_v52  ;;  %v1737_v52 = vsel %vm296_vm6, %v1735_v54, 0 }
  0xae   : > { %946 = vmatpush1.msra.mxu1 %v18631_v3  ;;  %1009 = vmatprep.mubr.f32.mxu1 %v18443_v1  ;;  %v1347_v0 = vand.u32 4294901760, %v1346_v61 }
  0xaf   : > { %2209 = vrot.lane.b32.xlu1 %v261_v8, %s18446_s6  ;;  %1019 = vmatprep.subr.mxu1 %v18599_v47 }
  0xb0   : > { %3175 = vrot.lane.b32.xlu0 %v3172_v32, %s18446_s6  ;;  %v1348_v5 = vsub.f32 %v1346_v61, %v1347_v0 }
  0xb1   : > { %532 = vmatmul.mubr.f32.vlgmr.msra.gmra.mrb[0].mxu0 %v18586_v35 }
  0xb2   : > { %541 = vmatpush1.msra.mxu0 %v18615_v57  ;;  %604 = vmatprep.mubr.f32.mxu0 %v18443_v1  ;;  %v1349_v7 = vand.u32 4294901760, %v1348_v5 }
  0xb3   : > { %617 = vmatprep.subr.mxu0 %v381_v58  ;;  %4141 = vrot.lane.b32.xlu1 %v18572_v31, %s18447_s7  ;;  %v1340_v58 = vsub.f32 %v1259_v41, %v18690_v49 }
  0xb4   : > { %3655 = vrot.lane.b32.xlu0 %v3652_v39, %s18446_s6 }
  0xb5   : > { %1012 = vmatmul.mubr.f32.vlgmr.msra.gmra.mrb[0].mxu1 %v18586_v35 }
  0xb6   : > { %1021 = vmatpush1.msra.mxu1 %v18618_v59  ;;  %1084 = vmatprep.mubr.f32.mxu1 %v18443_v1 }
  0xb7   : > { %3177 = vrot.lane.b32.xlu1 %v266_v43, %s18446_s6  ;;  %1097 = vmatprep.subr.mxu1 %v861_v62  ;;  %v18717_v62 = vand.u32 4294901760, %v1737_v52 }
  0xb8   : > { %3173 = vrot.lane.b32.xlu0 %v265_v27, %s18446_s6 }
  0xb9   : > { %608 = vmatmul.mubr.f32.vlgmr.msra.gmra.mrb[0].mxu0 %v18589_v38  ;;  %v1826_v2 = vsub.f32 %v1737_v52, %v18717_v62 }
  0xba   : > { %621 = vmatpush1.msra.mxu0 %v387_v4  ;;  %684 = vmatprep.mubr.f32.mxu0 %v18443_v1  ;;  %v1821_v4 = vand.u32 4294901760, %v1820_v63 }
  0xbb   : > { %693 = vmatprep.subr.mxu0 %v18597_v46  ;;  %3657 = vrot.lane.b32.xlu1 %v268_v51, %s18446_s6  ;;  %v1341_v46 = vand.u32 4294901760, %v1340_v58  ;;  %v1827_v6 = vand.u32 4294901760, %v1826_v2  ;;  %v4131_v51 = vld [vmem:[#allocation2 + $0x8] sm:$0xf] }
  0xbd   : > { %1088 = vmatmul.mubr.f32.vlgmr.msra.gmra.mrb[0].mxu1 %v18589_v38  ;;  %v1342_v3 = vsub.f32 %v1340_v58, %v1341_v46  ;;  %v1828_v8 = vsub.f32 %v1826_v2, %v1827_v6 }
  0xbe   : > { %1101 = vmatpush1.msra.mxu1 %v867_v11  ;;  %1164 = vmatprep.mubr.f32.mxu1 %v18443_v1 }
  0xbf   : > { %3653 = vrot.lane.b32.xlu1 %v267_v30, %s18446_s6  ;;  %1173 = vmatprep.subr.mxu1 %v18599_v47  ;;  %v1343_v47 = vand.u32 4294901760, %v1342_v3 }
  0xc1   : > { %686 = vmatmul.mubr.f32.vlgmr.msra.gmra.mrb[0].mxu0 %v18583_v34 }
  0xc2   : > { %695 = vmatpush1.msra.mxu0 %v18615_v57  ;;  %758 = vmatprep.mubr.f32.mxu0 %v18443_v1  ;;  %v1822_v57 = vsub.f32 %v1820_v63, %v1821_v4 }
  0xc3   : > { %1262 = vmatprep.subr.mxu0 %v18690_v49 }
  0xc4   : > { %v1823_v9 = vand.u32 4294901760, %v1822_v57 }
  0xc5   : > { %1166 = vmatmul.mubr.f32.vlgmr.msra.gmra.mrb[0].mxu1 %v18583_v34 }
  0xc6   : > { %1175 = vmatpush1.msra.mxu1 %v18618_v59  ;;  %1238 = vmatprep.mubr.f32.mxu1 %v18443_v1  ;;  %v1829_v59 = vand.u32 4294901760, %v1828_v8 }
  0xc7   : > { %1742 = vmatprep.subr.mxu1 %v18709_v60 }
  0xc9   : > { %760 = vmatmul.mubr.f32.vlgmr.msra.gmra.mrb[0].mxu0 %v18583_v34 }
  0xca   : > { %1264 = vmatpush1.msra.mxu0 %v18704_v56  ;;  %1327 = vmatprep.mubr.f32.mxu0 %v18443_v1 }
  0xcb   : > { %1344 = vmatprep.subr.mxu0 %v1343_v47 }
  0xcd   : > { %1333 = vmatmul.mubr.f32.vlgmr.msra.gmra.mrb[2].mxu0 %v18611_v55  ;;  %1240 = vmatmul.mubr.f32.vlgmr.msra.gmra.mrb[0].mxu1 %v18583_v34 }
  0xce   : > { %1350 = vmatpush1.msra.mxu0 %v1349_v7  ;;  %1744 = vmatpush1.msra.mxu1 %v18717_v62 }
  0xcf   : > { %1807 = vmatprep.mubr.f32.mxu1 %v18443_v1  ;;  %1413 = vmatprep.mubr.f32.mxu0 %v18443_v1 }
  0xd0   : > { %1824 = vmatprep.subr.mxu1 %v1823_v9  ;;  %1423 = vmatprep.subr.mxu0 %v1340_v58 }
  0xd1   : > { %1813 = vmatmul.mubr.f32.vlgmr.msra.gmra.mrb[2].mxu1 %v18611_v55 }
  0xd2   : > { %1830 = vmatpush1.msra.mxu1 %v1829_v59  ;;  %1893 = vmatprep.mubr.f32.mxu1 %v18443_v1 }
  0xd3   : > { %1903 = vmatprep.subr.mxu1 %v1820_v63 }
  0xd5   : > { %1415 = vmatmul.mubr.f32.vlgmr.msra.gmra.mrb[2].mxu0 %v18583_v34 }
  0xd6   : > { %1426 = vmatpush1.msra.mxu0 %v1346_v61  ;;  %1489 = vmatprep.mubr.f32.mxu0 %v18443_v1 }
  0xd7   : > { %1499 = vmatprep.subr.mxu0 %v18690_v49 }
  0xd9   : > { %1895 = vmatmul.mubr.f32.vlgmr.msra.gmra.mrb[2].mxu1 %v18583_v34 }
  0xda   : > { %1906 = vmatpush1.msra.mxu1 %v1826_v2  ;;  %1969 = vmatprep.mubr.f32.mxu1 %v18443_v1 }
  0xdb   : > { %1979 = vmatprep.subr.mxu1 %v18709_v60 }
  0xdd   : > { %1492 = vmatmul.mubr.f32.vlgmr.msra.gmra.mrb[2].mxu0 %v18586_v35 }
  0xde   : > { %1501 = vmatpush1.msra.mxu0 %v18704_v56  ;;  %1564 = vmatprep.mubr.f32.mxu0 %v18443_v1 }
  0xdf   : > { %1577 = vmatprep.subr.mxu0 %v1341_v46 }
  0xe1   : > { %1972 = vmatmul.mubr.f32.vlgmr.msra.gmra.mrb[2].mxu1 %v18586_v35  ;;  %v269_v35 = vld [vmem:[%s20339_s1] sm:$0xff] }
  0xe2   : > { %1981 = vmatpush1.msra.mxu1 %v18717_v62  ;;  %2044 = vmatprep.mubr.f32.mxu1 %v18443_v1 }
  0xe3   : > { %2057 = vmatprep.subr.mxu1 %v1821_v4  ;;  %v4133_v4 = vld [vmem:[#allocation2 + $0x18] sm:$0xf] }
  0xe5   : > { %1568 = vmatmul.mubr.f32.vlgmr.msra.gmra.mrb[2].mxu0 %v18589_v38 }
  0xe6   : > { %1581 = vmatpush1.msra.mxu0 %v1347_v0  ;;  %1644 = vmatprep.mubr.f32.mxu0 %v18443_v1 }
  0xe7   : > { %1653 = vmatprep.subr.mxu0 %v18690_v49 }
  0xe9   : > { %2048 = vmatmul.mubr.f32.vlgmr.msra.gmra.mrb[2].mxu1 %v18589_v38  ;;  %v2219_v38 = vsel %vm292_vm4, %v269_v35, 0 }
  0xea   : > { %2061 = vmatpush1.msra.mxu1 %v1827_v6  ;;  %2124 = vmatprep.mubr.f32.mxu1 %v18443_v1  ;;  %v18773_v55 = vand.u32 4294901760, %v2219_v38 }
  0xeb   : > { %2133 = vmatprep.subr.mxu1 %v18709_v60 }
  0xec   : > { %v18776_v10 = vsub.f32 %v2219_v38, %v18773_v55 }
  0xed   : > { %1646 = vmatmul.mubr.f32.vlgmr.msra.gmra.mrb[2].mxu0 %v18583_v34 }
  0xee   : > { %1655 = vmatpush1.msra.mxu0 %v18704_v56  ;;  %1718 = vmatprep.mubr.f32.mxu0 %v18443_v1  ;;  %v18779_v12 = vand.u32 4294901760, %v18776_v10 }
  0xf0   : > { %v2295_v19 = vsub.f32 %v18776_v10, %v18779_v12 }
  0xf1   : > { %2126 = vmatmul.mubr.f32.vlgmr.msra.gmra.mrb[2].mxu1 %v18583_v34 }
  0xf2   : > { %2135 = vmatpush1.msra.mxu1 %v18717_v62  ;;  %2198 = vmatprep.mubr.f32.mxu1 %v18443_v1  ;;  %v18797_v32 = vand.u32 4294901760, %v2295_v19 }
  0xf5   : > { %1720 = vmatmul.mubr.f32.vlgmr.msra.gmra.mrb[2].mxu0 %v18583_v34 }
  0xf6   : > { %2291 = vmatprep.mubr.f32.mxu0 %v18443_v1 }
  0xf9   : > { %2200 = vmatmul.mubr.f32.vlgmr.msra.gmra.mrb[2].mxu1 %v18583_v34 }
  0xfa   : > { %2771 = vmatprep.mubr.f32.mxu1 %v18443_v1 }
 0x116   : > { %v2214_v11 = vpop.permute.xlu0 %2213 }
 0x119   : > { %v2212_v14 = vpop.permute.xlu1 %2211 }
 0x11a   : > { %v2217_v34 = vsel %vm2215_vm8, %v2212_v14, %v2214_v11  ;;  %v2698_v15 = vpop.permute.xlu0 %2697  ;;  %v4135_v11 = vld [vmem:[#allocation2 + $0x28] sm:$0xf] }
 0x11b   : > { %v2223_v17 = vsel %vm296_vm6, %v2217_v34, 0 }
 0x11c   : > { %v18783_v18 = vand.u32 4294901760, %v2223_v17 }
 0x11d   : > { %v2696_v22 = vpop.permute.xlu1 %2695 }
 0x11e   : > { %v18788_v24 = vsub.f32 %v2223_v17, %v18783_v18  ;;  %v2700_v25 = vsel %vm2215_vm8, %v2696_v22, %v2698_v15  ;;  %v2694_v26 = vpop.permute.xlu0 %2693  ;;  %2226 = vmatprep.subr.mxu0 %v18783_v18 }
 0x11f   : > { %v2703_v27 = vsel %vm296_vm6, %v2700_v25, 0  ;;  %v2699_v28 = vsel %vm2215_vm8, %v2694_v26, %v2696_v22 }
 0x120   : > { %v18794_v29 = vand.u32 4294901760, %v2703_v27  ;;  %v2701_v30 = vsel %vm296_vm6, %v2699_v28, 0  ;;  %v2305_v33 = vand.u32 4294901760, %v18788_v24 }
 0x121   : > { %v18800_v36 = vand.u32 4294901760, %v2701_v30  ;;  %v2210_v37 = vpop.permute.xlu1 %2209 }
 0x122   : > { %v18803_v39 = vsub.f32 %v2703_v27, %v18794_v29  ;;  %v2216_v40 = vsel %vm2215_vm8, %v2210_v37, %v2212_v14  ;;  %2706 = vmatprep.subr.mxu1 %v18794_v29  ;;  %v2306_v41 = vsub.f32 %v18788_v24, %v2305_v33 }
 0x123   : > { %v18811_v42 = vsub.f32 %v2701_v30, %v18800_v36  ;;  %v2221_v43 = vsel %vm296_vm6, %v2216_v40, 0  ;;  %2708 = vmatpush1.msra.mxu1 %v18800_v36 }
 0x124   : > { %v18815_v44 = vand.u32 4294901760, %v2221_v43  ;;  %2777 = vmatmul.mubr.f32.vlgmr.msra.gmra.mrb[0].mxu1 %v18797_v32  ;;  %v2307_v45 = vand.u32 4294901760, %v2306_v41  ;;  %v2785_v48 = vand.u32 4294901760, %v18803_v39 }
 0x125   : > { %v2791_v49 = vand.u32 4294901760, %v18811_v42  ;;  %v4142_v50 = vpop.permute.xlu1 %4141  ;;  %2857 = vmatprep.mubr.f32.mxu1 %v18443_v1 }
 0x126   : > { %v18822_v53 = vsub.f32 %v2221_v43, %v18815_v44  ;;  %v18824_v54 = vrot.slane %v4142_v50, 4  ;;  %2228 = vmatpush1.msra.mxu0 %v18815_v44  ;;  %v2786_v56 = vsub.f32 %v18803_v39, %v2785_v48 }
 0x127   : > { %2297 = vmatmul.mubr.f32.vlgmr.msra.gmra.mrb[0].mxu0 %v18797_v32  ;;  %2308 = vmatprep.subr.mxu0 %v2307_v45  ;;  %v2792_v58 = vsub.f32 %v18811_v42, %v2791_v49 }
 0x128   : > { %v2311_v60 = vand.u32 4294901760, %v18822_v53  ;;  %v4145_v52 = vsel %vm4144_vm9, %v18824_v54, %v4142_v50  ;;  %v2787_v61 = vand.u32 4294901760, %v2786_v56  ;;  %v4149_v62 = vmul.f32 %v18824_v54, %v4131_v51  ;;  %2377 = vmatprep.mubr.f32.mxu0 %v18443_v1 }
 0x129   : > { %v4148_v46 = vmul.f32 %v4145_v52, %v18537_v13  ;;  %v2793_v63 = vand.u32 4294901760, %v2792_v58  ;;  %v3178_v2 = vpop.permute.xlu1 %3177  ;;  %v4150_v5 = vmul.f32 %v4145_v52, %v18543_v16  ;;  %v3176_v13 = vpop.permute.xlu0 %3175  ;;  %v4151_v47 = vmul.f32 %v18824_v54, %v4133_v4 }
 0x12a   : > { %2788 = vmatprep.subr.mxu1 %v2787_v61  ;;  %4165 = vrot.lane.b32.xlu1 %v4149_v62, %s18448_s10  ;;  %v2312_v0 = vsub.f32 %v18822_v53, %v2311_v60  ;;  %v4152_v8 = vmul.f32 %v4145_v52, %v18551_v20  ;;  %v4154_v59 = vmul.f32 %v4145_v52, %v18561_v23 }
 0x12b   : > { %v4160_v3 = vcombine.high %v4148_v46, %v4148_v46  ;;  %2794 = vmatpush1.msra.mxu1 %v2793_v63  ;;  %v4644_v57 = vcombine.high %v4150_v5, %v4150_v5  ;;  %v3180_v23 = vsel %vm2215_vm8, %v3176_v13, %v3178_v2  ;;  %v4153_v19 = vmul.f32 %v18824_v54, %v4135_v11 }
 0x12c   : > { %v2313_v6 = vand.u32 4294901760, %v2312_v0  ;;  %2859 = vmatmul.mubr.f32.vlgmr.msra.gmra.mrb[0].mxu1 %v18773_v55  ;;  %2867 = vmatprep.subr.mxu1 %v18803_v39  ;;  %v5124_v20 = vcombine.high %v4152_v8, %v4152_v8  ;;  %v5604_v17 = vcombine.high %v4154_v59, %v4154_v59  ;;  %v3183_v22 = vsel %vm296_vm6, %v3180_v23, 0 }
 0x12d   : > { %2870 = vmatpush1.msra.mxu1 %v18811_v42  ;;  %4163 = vrot.lane.b32.xlu0 %v4160_v3, %s18448_s10  ;;  %v3658_v7 = vpop.permute.xlu1 %3657  ;;  %v3656_v9 = vpop.permute.xlu0 %3655  ;;  %v18889_v28 = vand.u32 4294901760, %v3183_v22 }
 0x12e   : > { %2314 = vmatpush1.msra.mxu0 %v2313_v6  ;;  %2943 = vmatprep.subr.mxu1 %v18794_v29  ;;  %v3660_v35 = vsel %vm2215_vm8, %v3656_v9, %v3658_v7 }
 0x12f   : > { %4649 = vrot.lane.b32.xlu1 %v4151_v47, %s18448_s10  ;;  %2379 = vmatmul.mubr.f32.vlgmr.msra.gmra.mrb[0].mxu0 %v18773_v55  ;;  %v3663_v34 = vsel %vm296_vm6, %v3660_v35, 0  ;;  %v3264_v40 = vsub.f32 %v3183_v22, %v18889_v28 }
 0x130   : > { %2387 = vmatprep.subr.mxu0 %v18788_v24  ;;  %2933 = vmatprep.mubr.f32.mxu1 %v18443_v1  ;;  %v18880_v26 = vand.u32 4294901760, %v3663_v34  ;;  %v4137_v24 = vld [vmem:[#allocation2 + $0x38] sm:$0xf] }
 0x131   : > { %2390 = vmatpush1.msra.mxu0 %v18822_v53  ;;  %4647 = vrot.lane.b32.xlu0 %v4644_v57, %s18448_s10  ;;  %v3654_v38 = vpop.permute.xlu1 %3653  ;;  %v3174_v14 = vpop.permute.xlu0 %3173  ;;  %v4155_v37 = vmul.f32 %v18824_v54, %v4137_v24  ;;  %v3265_v45 = vand.u32 4294901760, %v3264_v40 }
 0x132   : > { %2463 = vmatprep.subr.mxu0 %v18783_v18  ;;  %2453 = vmatprep.mubr.f32.mxu0 %v18443_v1  ;;  %v3659_v15 = vsel %vm2215_vm8, %v3654_v38, %v3656_v9  ;;  %v3179_v25 = vsel %vm2215_vm8, %v3174_v14, %v3176_v13  ;;  %v3744_v39 = vsub.f32 %v3663_v34, %v18880_v26 }
 0x133   : > { %4645 = vrot.lane.b32.xlu1 %v4150_v5, %s18448_s10  ;;  %v3661_v27 = vsel %vm296_vm6, %v3659_v15, 0  ;;  %v3181_v30 = vsel %vm296_vm6, %v3179_v25, 0 }
 0x134   : > { %2936 = vmatmul.mubr.f32.vlgmr.msra.gmra.mrb[0].mxu1 %v18776_v10  ;;  %v3745_v42 = vand.u32 4294901760, %v3744_v39 }
 0x135   : > { %2945 = vmatpush1.msra.mxu1 %v18800_v36  ;;  %4161 = vrot.lane.b32.xlu0 %v4148_v46, %s18448_s10 }
 0x136   : > { %3021 = vmatprep.subr.mxu1 %v2785_v48  ;;  %3008 = vmatprep.mubr.f32.mxu1 %v18443_v1  ;;  %v3746_v48 = vsub.f32 %v3744_v39, %v3745_v42 }
 0x137   : > { %5127 = vrot.lane.b32.xlu1 %v5124_v20, %s18448_s10  ;;  %2456 = vmatmul.mubr.f32.vlgmr.msra.gmra.mrb[0].mxu0 %v18776_v10 }
 0x138   : > { %2465 = vmatpush1.msra.mxu0 %v18815_v44  ;;  %2528 = vmatprep.mubr.f32.mxu0 %v18443_v1  ;;  %v3747_v51 = vand.u32 4294901760, %v3746_v48 }
 0x139   : > { %2541 = vmatprep.subr.mxu0 %v2305_v33  ;;  %6098 = vrot.lane.b32.xlu0 %v18555_v21, %s18449_s11  ;;  %v18892_v33 = vand.u32 4294901760, %v3661_v27 }
 0x13b   : > { %5607 = vrot.lane.b32.xlu1 %v5604_v17, %s18448_s10  ;;  %v3750_v41 = vsub.f32 %v3661_v27, %v18892_v33 }
 0x13c   : > { %3012 = vmatmul.mubr.f32.vlgmr.msra.gmra.mrb[0].mxu1 %v18779_v12 }
 0x13d   : > { %3025 = vmatpush1.msra.mxu1 %v2791_v49  ;;  %5129 = vrot.lane.b32.xlu0 %v4153_v19, %s18448_s10  ;;  %v3266_v49 = vsub.f32 %v3264_v40, %v3265_v45  ;;  %v6091_v19 = vld [vmem:[#allocation2 + $0x8] sm:$0xf] }
 0x13e   : > { %3097 = vmatprep.subr.mxu1 %v18794_v29  ;;  %3088 = vmatprep.mubr.f32.mxu1 %v18443_v1  ;;  %v18903_v29 = vand.u32 4294901760, %v3181_v30 }
 0x13f   : > { %5125 = vrot.lane.b32.xlu1 %v4152_v8, %s18448_s10  ;;  %2532 = vmatmul.mubr.f32.vlgmr.msra.gmra.mrb[0].mxu0 %v18779_v12 }
 0x140   : > { %2545 = vmatpush1.msra.mxu0 %v2311_v60  ;;  %2608 = vmatprep.mubr.f32.mxu0 %v18443_v1  ;;  %v3270_v43 = vsub.f32 %v3181_v30, %v18903_v29 }
 0x141   : > { %2617 = vmatprep.subr.mxu0 %v18783_v18  ;;  %5609 = vrot.lane.b32.xlu0 %v4155_v37, %s18448_s10  ;;  %v3751_v18 = vand.u32 4294901760, %v3750_v41 }
 0x143   : > { %v3752_v50 = vsub.f32 %v3750_v41, %v3751_v18 }
 0x144   : > { %3090 = vmatmul.mubr.f32.vlgmr.msra.gmra.mrb[0].mxu1 %v18773_v55 }
 0x145   : > { %3099 = vmatpush1.msra.mxu1 %v18800_v36  ;;  %5605 = vrot.lane.b32.xlu0 %v4154_v59, %s18448_s10  ;;  %v3271_v36 = vand.u32 4294901760, %v3270_v43  ;;  %v3753_v54 = vand.u32 4294901760, %v3752_v50 }
 0x146   : > { %3666 = vmatprep.subr.mxu1 %v18880_v26  ;;  %3162 = vmatprep.mubr.f32.mxu1 %v18443_v1 }
 0x147   : > { %2610 = vmatmul.mubr.f32.vlgmr.msra.gmra.mrb[0].mxu0 %v18773_v55  ;;  %v3272_v53 = vsub.f32 %v3270_v43, %v3271_v36 }
 0x148   : > { %2619 = vmatpush1.msra.mxu0 %v18815_v44  ;;  %2682 = vmatprep.mubr.f32.mxu0 %v18443_v1  ;;  %v3267_v44 = vand.u32 4294901760, %v3266_v49 }
 0x149   : > { %3186 = vmatprep.subr.mxu0 %v18889_v28  ;;  %v3273_v56 = vand.u32 4294901760, %v3272_v53  ;;  %v18377_v53 = vld [vmem:[#allocation2 + $0x20] sm:$0xff] }
 0x14c   : > { %3164 = vmatmul.mubr.f32.vlgmr.msra.gmra.mrb[0].mxu1 %v18773_v55 }
 0x14d   : > { %3668 = vmatpush1.msra.mxu1 %v18892_v33  ;;  %3731 = vmatprep.mubr.f32.mxu1 %v18443_v1 }
 0x14e   : > { %3748 = vmatprep.subr.mxu1 %v3747_v51 }
 0x14f   : > { %2684 = vmatmul.mubr.f32.vlgmr.msra.gmra.mrb[0].mxu0 %v18773_v55 }
 0x150   : > { %3188 = vmatpush1.msra.mxu0 %v18903_v29  ;;  %3737 = vmatmul.mubr.f32.vlgmr.msra.gmra.mrb[2].mxu1 %v18797_v32 }
 0x151   : > { %3268 = vmatprep.subr.mxu0 %v3267_v44  ;;  %3754 = vmatpush1.msra.mxu1 %v3753_v54 }
 0x152   : > { %3827 = vmatprep.subr.mxu1 %v3744_v39  ;;  %3251 = vmatprep.mubr.f32.mxu0 %v18443_v1 }
 0x153   : > { %3257 = vmatmul.mubr.f32.vlgmr.msra.gmra.mrb[2].mxu0 %v18797_v32  ;;  %3817 = vmatprep.mubr.f32.mxu1 %v18443_v1 }
 0x154   : > { %3274 = vmatpush1.msra.mxu0 %v3273_v56  ;;  %3337 = vmatprep.mubr.f32.mxu0 %v18443_v1 }
 0x155   : > { %3347 = vmatprep.subr.mxu0 %v3264_v40 }
 0x158   : > { %3819 = vmatmul.mubr.f32.vlgmr.msra.gmra.mrb[2].mxu1 %v18773_v55 }
 0x159   : > { %3830 = vmatpush1.msra.mxu1 %v3750_v41  ;;  %3893 = vmatprep.mubr.f32.mxu1 %v18443_v1 }
 0x15a   : > { %3903 = vmatprep.subr.mxu1 %v18880_v26 }
 0x15b   : > { %3339 = vmatmul.mubr.f32.vlgmr.msra.gmra.mrb[2].mxu0 %v18773_v55 }
 0x15c   : > { %3350 = vmatpush1.msra.mxu0 %v3270_v43  ;;  %3413 = vmatprep.mubr.f32.mxu0 %v18443_v1 }
 0x15d   : > { %3423 = vmatprep.subr.mxu0 %v18889_v28 }
 0x160   : > { %3896 = vmatmul.mubr.f32.vlgmr.msra.gmra.mrb[2].mxu1 %v18776_v10 }
 0x161   : > { %3905 = vmatpush1.msra.mxu1 %v18892_v33  ;;  %3968 = vmatprep.mubr.f32.mxu1 %v18443_v1 }
 0x162   : > { %3981 = vmatprep.subr.mxu1 %v3745_v42 }
 0x163   : > { %3416 = vmatmul.mubr.f32.vlgmr.msra.gmra.mrb[2].mxu0 %v18776_v10  ;;  %v17866_v10 = vld [vmem:[%s20339_s1 + $0x10] sm:$0xff] }
 0x164   : > { %3425 = vmatpush1.msra.mxu0 %v18903_v29  ;;  %3488 = vmatprep.mubr.f32.mxu0 %v18443_v1 }
 0x165   : > { %3501 = vmatprep.subr.mxu0 %v3265_v45 }
 0x168   : > { %3972 = vmatmul.mubr.f32.vlgmr.msra.gmra.mrb[2].mxu1 %v18779_v12 }
 0x169   : > { %3985 = vmatpush1.msra.mxu1 %v3751_v18  ;;  %4048 = vmatprep.mubr.f32.mxu1 %v18443_v1 }
 0x16a   : > { %4057 = vmatprep.subr.mxu1 %v18880_v26  ;;  %v6090_v26 = vld [vmem:[#allocation2] sm:$0xff] }
 0x16b   : > { %3492 = vmatmul.mubr.f32.vlgmr.msra.gmra.mrb[2].mxu0 %v18779_v12  ;;  %v4171_v12 = vsel %vm292_vm4, %v17866_v10, 0  ;;  %v6097_v10 = vld [vmem:[#allocation2 + $0x38] sm:$0xf] }
 0x16c   : > { %3505 = vmatpush1.msra.mxu0 %v3271_v36  ;;  %3568 = vmatprep.mubr.f32.mxu0 %v18443_v1  ;;  %v18959_v32 = vand.u32 4294901760, %v4171_v12 }
 0x16d   : > { %3577 = vmatprep.subr.mxu0 %v18889_v28 }
 0x16e   : > { %v18962_v60 = vsub.f32 %v4171_v12, %v18959_v32  ;;  %v18378_v12 = vld [vmem:[#allocation2 + $0x30] sm:$0xff] }
 0x170   : > { %4050 = vmatmul.mubr.f32.vlgmr.msra.gmra.mrb[2].mxu1 %v18773_v55  ;;  %v18965_v61 = vand.u32 4294901760, %v18962_v60 }
 0x171   : > { %4059 = vmatpush1.msra.mxu1 %v18892_v33  ;;  %4122 = vmatprep.mubr.f32.mxu1 %v18443_v1 }
 0x172   : > { %v4247_v2 = vsub.f32 %v18962_v60, %v18965_v61 }
 0x173   : > { %3570 = vmatmul.mubr.f32.vlgmr.msra.gmra.mrb[2].mxu0 %v18773_v55 }
 0x174   : > { %3579 = vmatpush1.msra.mxu0 %v18903_v29  ;;  %3642 = vmatprep.mubr.f32.mxu0 %v18443_v1  ;;  %v18984_v9 = vand.u32 4294901760, %v4247_v2  ;;  %v6093_v29 = vld [vmem:[#allocation2 + $0x18] sm:$0xf] }
 0x178   : > { %4124 = vmatmul.mubr.f32.vlgmr.msra.gmra.mrb[2].mxu1 %v18773_v55 }
 0x179   : > { %4723 = vmatprep.mubr.f32.mxu1 %v18443_v1 }
 0x17b   : > { %3644 = vmatmul.mubr.f32.vlgmr.msra.gmra.mrb[2].mxu0 %v18773_v55 }
 0x17c   : > { %4243 = vmatprep.mubr.f32.mxu0 %v18443_v1 }
 0x19c   : > { %v4166_v58 = vpop.permute.xlu1 %4165 }
 0x19f   : > { %v4164_v52 = vpop.permute.xlu0 %4163 }
 0x1a0   : > { %v4169_v55 = vsel %vm4167_vm10, %v4164_v52, %v4166_v58 }
 0x1a1   : > { %v4175_v62 = vsel %vm296_vm6, %v4169_v55, 0  ;;  %v4650_v46 = vpop.permute.xlu1 %4649 }
 0x1a2   : > { %v18969_v63 = vand.u32 4294901760, %v4175_v62 }
 0x1a3   : > { %v4648_v0 = vpop.permute.xlu0 %4647 }
 0x1a4   : > { %v18974_v3 = vsub.f32 %v4175_v62, %v18969_v63  ;;  %v4652_v4 = vsel %vm4167_vm10, %v4648_v0, %v4650_v46  ;;  %4178 = vmatprep.subr.mxu0 %v18969_v63 }
 0x1a5   : > { %v4655_v5 = vsel %vm296_vm6, %v4652_v4, 0  ;;  %v4646_v6 = vpop.permute.xlu1 %4645 }
 0x1a6   : > { %v18979_v13 = vand.u32 4294901760, %v4655_v5  ;;  %v4651_v47 = vsel %vm4167_vm10, %v4646_v6, %v4648_v0  ;;  %v4257_v57 = vand.u32 4294901760, %v18974_v3 }
 0x1a7   : > { %v4653_v7 = vsel %vm296_vm6, %v4651_v47, 0  ;;  %v4162_v8 = vpop.permute.xlu0 %4161 }
 0x1a8   : > { %v18987_v59 = vsub.f32 %v4655_v5, %v18979_v13  ;;  %v18989_v20 = vand.u32 4294901760, %v4653_v7  ;;  %v4168_v35 = vsel %vm4167_vm10, %v4162_v8, %v4164_v52  ;;  %4658 = vmatprep.subr.mxu1 %v18979_v13  ;;  %v4258_v38 = vsub.f32 %v18974_v3, %v4257_v57 }
 0x1a9   : > { %v4173_v11 = vsel %vm296_vm6, %v4168_v35, 0  ;;  %v5128_v49 = vpop.permute.xlu1 %5127 }
 0x1aa   : > { %v18998_v23 = vsub.f32 %v4653_v7, %v18989_v20  ;;  %v19000_v14 = vand.u32 4294901760, %v4173_v11  ;;  %4660 = vmatpush1.msra.mxu1 %v18989_v20  ;;  %v4259_v34 = vand.u32 4294901760, %v4258_v38  ;;  %v4737_v15 = vand.u32 4294901760, %v18987_v59 }
 0x1ab   : > { %4729 = vmatmul.mubr.f32.vlgmr.msra.gmra.mrb[0].mxu1 %v18984_v9  ;;  %v6099_v17 = vpop.permute.xlu0 %6098 }
 0x1ac   : > { %v4743_v22 = vand.u32 4294901760, %v18998_v23  ;;  %v19007_v25 = vsub.f32 %v4173_v11, %v19000_v14  ;;  %v6100_v27 = vrot.slane %v6099_v17, 4  ;;  %4180 = vmatpush1.msra.mxu0 %v19000_v14  ;;  %v4738_v24 = vsub.f32 %v18987_v59, %v4737_v15  ;;  %4809 = vmatprep.mubr.f32.mxu1 %v18443_v1 }
 0x1ad   : > { %4249 = vmatmul.mubr.f32.vlgmr.msra.gmra.mrb[0].mxu0 %v18984_v9  ;;  %4260 = vmatprep.subr.mxu0 %v4259_v34  ;;  %v5608_v54 = vpop.permute.xlu1 %5607 }
 0x1ae   : > { %v4263_v28 = vand.u32 4294901760, %v19007_v25  ;;  %v6102_v30 = vsel %vm6101_vm11, %v6100_v27, %v6099_v17  ;;  %v6106_v33 = vmul.f32 %v6100_v27, %v6091_v19  ;;  %v4739_v37 = vand.u32 4294901760, %v4738_v24  ;;  %4329 = vmatprep.mubr.f32.mxu0 %v18443_v1 }
 0x1af   : > { %v6105_v39 = vmul.f32 %v6102_v30, %v6090_v26  ;;  %v4744_v40 = vsub.f32 %v18998_v23, %v4743_v22  ;;  %v6107_v43 = vmul.f32 %v6102_v30, %v18543_v16  ;;  %v6108_v45 = vmul.f32 %v6100_v27, %v6093_v29  ;;  %v5130_v48 = vpop.permute.xlu0 %5129  ;;  %v6095_v16 = vld [vmem:[#allocation2 + $0x28] sm:$0xf] }
 0x1b0   : > { %6122 = vrot.lane.b32.xlu0 %v6106_v33, %s18450_s20  ;;  %4740 = vmatprep.subr.mxu1 %v4739_v37  ;;  %v4264_v42 = vsub.f32 %v19007_v25, %v4263_v28  ;;  %v6109_v44 = vmul.f32 %v18377_v53, %v6102_v30  ;;  %v6110_v56 = vmul.f32 %v6100_v27, %v6095_v16 }
 0x1b1   : > { %v6117_v41 = vcombine.high %v6105_v39, %v6105_v39  ;;  %v4745_v18 = vand.u32 4294901760, %v4744_v40  ;;  %v6601_v50 = vcombine.high %v6107_v43, %v6107_v43  ;;  %v6111_v58 = vmul.f32 %v18378_v12, %v6102_v30  ;;  %v5126_v2 = vpop.permute.xlu1 %5125 }
 0x1b2   : > { %v4265_v36 = vand.u32 4294901760, %v4264_v42  ;;  %v7081_v52 = vcombine.high %v6109_v44, %v6109_v44  ;;  %v6112_v46 = vmul.f32 %v6100_v27, %v6097_v10  ;;  %v5132_v0 = vsel %vm4167_vm10, %v5128_v49, %v5130_v48 }
 0x1b3   : > { %6120 = vrot.lane.b32.xlu1 %v6117_v41, %s18450_s20  ;;  %4746 = vmatpush1.msra.mxu1 %v4745_v18  ;;  %v5610_v51 = vpop.permute.xlu0 %5609  ;;  %v7561_v6 = vcombine.high %v6111_v58, %v6111_v58  ;;  %v5135_v47 = vsel %vm296_vm6, %v5132_v0, 0  ;;  %v5131_v7 = vsel %vm4167_vm10, %v5126_v2, %v5128_v49 }
 0x1b4   : > { %6606 = vrot.lane.b32.xlu0 %v6108_v45, %s18450_s20  ;;  %4811 = vmatmul.mubr.f32.vlgmr.msra.gmra.mrb[0].mxu1 %v18959_v32  ;;  %v5612_v55 = vsel %vm4167_vm10, %v5608_v54, %v5610_v51 }
 0x1b5   : > { %4819 = vmatprep.subr.mxu1 %v18987_v59  ;;  %4266 = vmatpush1.msra.mxu0 %v4265_v36  ;;  %v5615_v4 = vsel %vm296_vm6, %v5612_v55, 0  ;;  %v5133_v59 = vsel %vm296_vm6, %v5131_v7, 0 }
 0x1b6   : > { %4822 = vmatpush1.msra.mxu1 %v18998_v23  ;;  %4331 = vmatmul.mubr.f32.vlgmr.msra.gmra.mrb[0].mxu0 %v18959_v32  ;;  %v19061_v8 = vand.u32 4294901760, %v5615_v4  ;;  %v19082_v11 = vand.u32 4294901760, %v5133_v59 }
 0x1b7   : > { %4895 = vmatprep.subr.mxu1 %v18979_v13  ;;  %4339 = vmatprep.subr.mxu0 %v18974_v3  ;;  %v5606_v62 = vpop.permute.xlu0 %5605 }
 0x1b8   : > { %6604 = vrot.lane.b32.xlu1 %v6601_v50, %s18450_s20  ;;  %4342 = vmatpush1.msra.mxu0 %v19007_v25  ;;  %v5611_v5 = vsel %vm4167_vm10, %v5606_v62, %v5608_v54  ;;  %v5696_v38 = vsub.f32 %v5615_v4, %v19061_v8 }
 0x1b9   : > { %6602 = vrot.lane.b32.xlu0 %v6107_v43, %s18450_s20  ;;  %4415 = vmatprep.subr.mxu0 %v18969_v63  ;;  %v5613_v3 = vsel %vm296_vm6, %v5611_v5, 0 }
 0x1ba   : > { %4885 = vmatprep.mubr.f32.mxu1 %v18443_v1  ;;  %4405 = vmatprep.mubr.f32.mxu0 %v18443_v1  ;;  %v19074_v35 = vand.u32 4294901760, %v5613_v3  ;;  %v5697_v34 = vand.u32 4294901760, %v5696_v38 }
 0x1bc   : > { %6118 = vrot.lane.b32.xlu1 %v6105_v39, %s18450_s20  ;;  %4888 = vmatmul.mubr.f32.vlgmr.msra.gmra.mrb[0].mxu1 %v18962_v60  ;;  %v5698_v19 = vsub.f32 %v5696_v38, %v5697_v34 }
 0x1bd   : > { %7086 = vrot.lane.b32.xlu0 %v6110_v56, %s18450_s20  ;;  %4897 = vmatpush1.msra.mxu1 %v18989_v20 }
 0x1be   : > { %4960 = vmatprep.mubr.f32.mxu1 %v18443_v1  ;;  %4973 = vmatprep.subr.mxu1 %v4737_v15  ;;  %v5222_v15 = vsub.f32 %v5133_v59, %v19082_v11 }
 0x1bf   : > { %4408 = vmatmul.mubr.f32.vlgmr.msra.gmra.mrb[0].mxu0 %v18962_v60 }
 0x1c0   : > { %4417 = vmatpush1.msra.mxu0 %v19000_v14  ;;  %7084 = vrot.lane.b32.xlu1 %v7081_v52, %s18450_s20 }
 0x1c1   : > { %4493 = vmatprep.subr.mxu0 %v4257_v57  ;;  %7566 = vrot.lane.b32.xlu0 %v6112_v46, %s18450_s20  ;;  %v19069_v57 = vand.u32 4294901760, %v5135_v47 }
 0x1c2   : > { %4480 = vmatprep.mubr.f32.mxu0 %v18443_v1 }
 0x1c3   : > { %v5216_v23 = vsub.f32 %v5135_v47, %v19069_v57 }
 0x1c4   : > { %7564 = vrot.lane.b32.xlu1 %v7561_v6, %s18450_s20  ;;  %4964 = vmatmul.mubr.f32.vlgmr.msra.gmra.mrb[0].mxu1 %v18965_v61 }
 0x1c5   : > { %7562 = vrot.lane.b32.xlu0 %v6111_v58, %s18450_s20  ;;  %4977 = vmatpush1.msra.mxu1 %v4743_v22  ;;  %v5223_v22 = vand.u32 4294901760, %v5222_v15 }
 0x1c6   : > { %5040 = vmatprep.mubr.f32.mxu1 %v18443_v1  ;;  %5049 = vmatprep.subr.mxu1 %v18979_v13  ;;  %v5702_v13 = vsub.f32 %v5613_v3, %v19074_v35 }
 0x1c7   : > { %4484 = vmatmul.mubr.f32.vlgmr.msra.gmra.mrb[0].mxu0 %v18965_v61  ;;  %v5224_v27 = vsub.f32 %v5222_v15, %v5223_v22 }
 0x1c8   : > { %4497 = vmatpush1.msra.mxu0 %v4263_v28  ;;  %7082 = vrot.lane.b32.xlu1 %v6109_v44, %s18450_s20  ;;  %v5703_v17 = vand.u32 4294901760, %v5702_v13 }
 0x1c9   : > { %4569 = vmatprep.subr.mxu0 %v18969_v63  ;;  %4560 = vmatprep.mubr.f32.mxu0 %v18443_v1  ;;  %v5217_v63 = vand.u32 4294901760, %v5216_v23  ;;  %v5225_v28 = vand.u32 4294901760, %v5224_v27 }
 0x1ca   : > { %v5704_v26 = vsub.f32 %v5702_v13, %v5703_v17 }
 0x1cb   : > { %v5218_v25 = vsub.f32 %v5216_v23, %v5217_v63 }
 0x1cc   : > { %9956 = vrot.lane.b32.xlu1 %v18572_v31, %s18450_s20  ;;  %5042 = vmatmul.mubr.f32.vlgmr.msra.gmra.mrb[0].mxu1 %v18959_v32  ;;  %v5705_v24 = vand.u32 4294901760, %v5704_v26  ;;  %s17857_s20 = sshll.u32 %s164_s19, 6 }
 0x1cd   : > { %5051 = vmatpush1.msra.mxu1 %v18989_v20  ;;  %5114 = vmatprep.mubr.f32.mxu1 %v18443_v1  ;;  %v5699_v20 = vand.u32 4294901760, %v5698_v19  ;;  %s166_s24 = scalar_lea.vmem [#allocation3], %s17857_s20 }
 0x1ce   : > { %5618 = vmatprep.subr.mxu1 %v19061_v8  ;;  %s17791_s26 = sshll.u32 %s166_s24, 4  ;;  %s20292_s26 = int_to_ptr.vmem [resolvable:$true] %s17791_s26 }
 0x1cf   : > { %4562 = vmatmul.mubr.f32.vlgmr.msra.gmra.mrb[0].mxu0 %v18959_v32 }
 0x1d0   : > { %4571 = vmatpush1.msra.mxu0 %v19000_v14  ;;  %4634 = vmatprep.mubr.f32.mxu0 %v18443_v1  ;;  %v5219_v14 = vand.u32 4294901760, %v5218_v25  ;;  %v9951_v25 = vld [vmem:[#allocation2 + $0x1c] sm:$0xf] }
 0x1d1   : > { %5138 = vmatprep.subr.mxu0 %v19069_v57 }
 0x1d4   : > { %5116 = vmatmul.mubr.f32.vlgmr.msra.gmra.mrb[0].mxu1 %v18959_v32 }
 0x1d5   : > { %5620 = vmatpush1.msra.mxu1 %v19074_v35  ;;  %5683 = vmatprep.mubr.f32.mxu1 %v18443_v1 }
 0x1d6   : > { %5700 = vmatprep.subr.mxu1 %v5699_v20 }
 0x1d7   : > { %4636 = vmatmul.mubr.f32.vlgmr.msra.gmra.mrb[0].mxu0 %v18959_v32 }
 0x1d8   : > { %5140 = vmatpush1.msra.mxu0 %v19082_v11  ;;  %5203 = vmatprep.mubr.f32.mxu0 %v18443_v1 }
 0x1d9   : > { %5220 = vmatprep.subr.mxu0 %v5219_v14  ;;  %5689 = vmatmul.mubr.f32.vlgmr.msra.gmra.mrb[2].mxu1 %v18984_v9 }
 0x1da   : > { %5706 = vmatpush1.msra.mxu1 %v5705_v24  ;;  %5769 = vmatprep.mubr.f32.mxu1 %v18443_v1 }
 0x1db   : > { %5779 = vmatprep.subr.mxu1 %v5696_v38  ;;  %5209 = vmatmul.mubr.f32.vlgmr.msra.gmra.mrb[2].mxu0 %v18984_v9 }
 0x1dc   : > { %5226 = vmatpush1.msra.mxu0 %v5225_v28  ;;  %5289 = vmatprep.mubr.f32.mxu0 %v18443_v1 }
 0x1dd   : > { %5299 = vmatprep.subr.mxu0 %v5216_v23 }
 0x1e1   : > { %5771 = vmatmul.mubr.f32.vlgmr.msra.gmra.mrb[2].mxu1 %v18959_v32 }
 0x1e2   : > { %5782 = vmatpush1.msra.mxu1 %v5702_v13  ;;  %5845 = vmatprep.mubr.f32.mxu1 %v18443_v1  ;;  %v9949_v13 = vld [vmem:[#allocation2 + $0xc] sm:$0xf] }
 0x1e3   : > { %5855 = vmatprep.subr.mxu1 %v19061_v8  ;;  %5291 = vmatmul.mubr.f32.vlgmr.msra.gmra.mrb[2].mxu0 %v18959_v32 }
 0x1e4   : > { %5302 = vmatpush1.msra.mxu0 %v5222_v15  ;;  %5365 = vmatprep.mubr.f32.mxu0 %v18443_v1 }
 0x1e5   : > { %5375 = vmatprep.subr.mxu0 %v19069_v57 }
 0x1e9   : > { %5848 = vmatmul.mubr.f32.vlgmr.msra.gmra.mrb[2].mxu1 %v18962_v60 }
 0x1ea   : > { %5857 = vmatpush1.msra.mxu1 %v19074_v35  ;;  %5920 = vmatprep.mubr.f32.mxu1 %v18443_v1 }
 0x1eb   : > { %5933 = vmatprep.subr.mxu1 %v5697_v34  ;;  %5368 = vmatmul.mubr.f32.vlgmr.msra.gmra.mrb[2].mxu0 %v18962_v60  ;;  %v17867_v60 = vld [vmem:[%s20339_s1 + $0x18] sm:$0xff]  ;;  %v19208_v34 = vld [vmem:[#allocation2 + $0x4] sm:$0xff] }
 0x1ec   : > { %5377 = vmatpush1.msra.mxu0 %v19082_v11  ;;  %5440 = vmatprep.mubr.f32.mxu0 %v18443_v1 }
 0x1ed   : > { %5453 = vmatprep.subr.mxu0 %v5217_v63  ;;  %v19212_v63 = vld [vmem:[#allocation2 + $0x14] sm:$0xff] }
 0x1f1   : > { %5924 = vmatmul.mubr.f32.vlgmr.msra.gmra.mrb[2].mxu1 %v18965_v61 }
 0x1f2   : > { %5937 = vmatpush1.msra.mxu1 %v5703_v17  ;;  %6000 = vmatprep.mubr.f32.mxu1 %v18443_v1 }
 0x1f3   : > { %6009 = vmatprep.subr.mxu1 %v19061_v8  ;;  %5444 = vmatmul.mubr.f32.vlgmr.msra.gmra.mrb[2].mxu0 %v18965_v61  ;;  %v6128_v61 = vsel %vm292_vm4, %v17867_v60, 0 }
 0x1f4   : > { %5457 = vmatpush1.msra.mxu0 %v5223_v22  ;;  %5520 = vmatprep.mubr.f32.mxu0 %v18443_v1  ;;  %v19139_v9 = vand.u32 4294901760, %v6128_v61 }
 0x1f5   : > { %5529 = vmatprep.subr.mxu0 %v19069_v57 }
 0x1f6   : > { %v19142_v30 = vsub.f32 %v6128_v61, %v19139_v9 }
 0x1f8   : > { %v19145_v39 = vand.u32 4294901760, %v19142_v30 }
 0x1f9   : > { %6002 = vmatmul.mubr.f32.vlgmr.msra.gmra.mrb[2].mxu1 %v18959_v32 }
 0x1fa   : > { %6011 = vmatpush1.msra.mxu1 %v19074_v35  ;;  %6074 = vmatprep.mubr.f32.mxu1 %v18443_v1  ;;  %v6204_v42 = vsub.f32 %v19142_v30, %v19145_v39 }
 0x1fb   : > { %5522 = vmatmul.mubr.f32.vlgmr.msra.gmra.mrb[2].mxu0 %v18959_v32 }
 0x1fc   : > { %5531 = vmatpush1.msra.mxu0 %v19082_v11  ;;  %5594 = vmatprep.mubr.f32.mxu0 %v18443_v1  ;;  %v19164_v53 = vand.u32 4294901760, %v6204_v42 }
 0x201   : > { %6076 = vmatmul.mubr.f32.vlgmr.msra.gmra.mrb[2].mxu1 %v18959_v32 }
 0x202   : > { %6680 = vmatprep.mubr.f32.mxu1 %v18443_v1 }
 0x203   : > { %5596 = vmatmul.mubr.f32.vlgmr.msra.gmra.mrb[2].mxu0 %v18959_v32 }
 0x204   : > { %6200 = vmatprep.mubr.f32.mxu0 %v18443_v1 }
 0x222   : > { %v6123_v33 = vpop.permute.xlu0 %6122 }
 0x225   : > { %v6121_v37 = vpop.permute.xlu1 %6120 }
 0x226   : > { %v6126_v32 = vsel %vm6124_vm12, %v6121_v37, %v6123_v33  ;;  %v6607_v29 = vpop.permute.xlu0 %6606  ;;  %v19232_v33 = vld [vmem:[#allocation2 + $0x24] sm:$0xff] }
 0x227   : > { %v6132_v40 = vsel %vm296_vm6, %v6126_v32, 0 }
 0x228   : > { %v19149_v41 = vand.u32 4294901760, %v6132_v40 }
 0x22a   : > { %v19154_v43 = vsub.f32 %v6132_v40, %v19149_v41  ;;  %v6605_v18 = vpop.permute.xlu1 %6604  ;;  %6135 = vmatprep.subr.mxu0 %v19149_v41 }
 0x22b   : > { %v6609_v45 = vsel %vm6124_vm12, %v6605_v18, %v6607_v29  ;;  %v6603_v48 = vpop.permute.xlu0 %6602 }
 0x22c   : > { %v6612_v36 = vsel %vm296_vm6, %v6609_v45, 0  ;;  %v6608_v49 = vsel %vm6124_vm12, %v6603_v48, %v6605_v18  ;;  %v6214_v50 = vand.u32 4294901760, %v19154_v43 }
 0x22d   : > { %v19161_v16 = vand.u32 4294901760, %v6612_v36  ;;  %v6610_v51 = vsel %vm296_vm6, %v6608_v49, 0 }
 0x22e   : > { %v19166_v44 = vand.u32 4294901760, %v6610_v51  ;;  %v6119_v54 = vpop.permute.xlu1 %6118  ;;  %v6215_v56 = vsub.f32 %v19154_v43, %v6214_v50 }
 0x22f   : > { %v6693_v10 = vsub.f32 %v6612_v36, %v19161_v16  ;;  %v6125_v12 = vsel %vm6124_vm12, %v6119_v54, %v6121_v37  ;;  %6615 = vmatprep.subr.mxu1 %v19161_v16  ;;  %v7087_v57 = vpop.permute.xlu0 %7086 }
 0x230   : > { %v19175_v58 = vsub.f32 %v6610_v51, %v19166_v44  ;;  %v6130_v52 = vsel %vm296_vm6, %v6125_v12, 0  ;;  %6617 = vmatpush1.msra.mxu1 %v19166_v44  ;;  %v6216_v55 = vand.u32 4294901760, %v6215_v56  ;;  %v9953_v12 = vld [vmem:[#allocation2 + $0x2c] sm:$0xf] }
 0x231   : > { %v19179_v62 = vand.u32 4294901760, %v6130_v52  ;;  %6686 = vmatmul.mubr.f32.vlgmr.msra.gmra.mrb[0].mxu1 %v19164_v53  ;;  %v6694_v46 = vand.u32 4294901760, %v6693_v10 }
 0x232   : > { %v6700_v0 = vand.u32 4294901760, %v19175_v58  ;;  %v19183_v2 = vpop.permute.xlu1 %7084  ;;  %6766 = vmatprep.mubr.f32.mxu1 %v18443_v1 }
 0x233   : > { %v19187_v4 = vsub.f32 %v6130_v52, %v19179_v62  ;;  %6137 = vmatpush1.msra.mxu0 %v19179_v62  ;;  %v6695_v5 = vsub.f32 %v6693_v10, %v6694_v46  ;;  %v7567_v11 = vpop.permute.xlu0 %7566  ;;  %v7089_v28 = vsel %vm6124_vm12, %v19183_v2, %v7087_v57 }
 0x234   : > { %6206 = vmatmul.mubr.f32.vlgmr.msra.gmra.mrb[0].mxu0 %v19164_v53  ;;  %6217 = vmatprep.subr.mxu0 %v6216_v55  ;;  %v6701_v6 = vsub.f32 %v19175_v58, %v6700_v0  ;;  %v7092_v32 = vsel %vm296_vm6, %v7089_v28, 0 }
 0x235   : > { %v6220_v47 = vand.u32 4294901760, %v19187_v4  ;;  %v6696_v7 = vand.u32 4294901760, %v6695_v5  ;;  %6286 = vmatprep.mubr.f32.mxu0 %v18443_v1  ;;  %v19253_v45 = vand.u32 4294901760, %v7092_v32 }
 0x236   : > { %v7565_v8 = vpop.permute.xlu1 %7564  ;;  %v6702_v3 = vand.u32 4294901760, %v6701_v6 }
 0x237   : > { %6697 = vmatprep.subr.mxu1 %v6696_v7  ;;  %v6221_v59 = vsub.f32 %v19187_v4, %v6220_v47  ;;  %v7569_v26 = vsel %vm6124_vm12, %v7565_v8, %v7567_v11  ;;  %v7563_v20 = vpop.permute.xlu0 %7562  ;;  %v19271_v51 = vsub.f32 %v7092_v32, %v19253_v45  ;;  %v8529_v11 = vsel %vm296_vm6, %v19212_v63, 0 }
 0x238   : > { %6703 = vmatpush1.msra.mxu1 %v6702_v3  ;;  %v7572_v60 = vsel %vm296_vm6, %v7569_v26, 0  ;;  %v7568_v61 = vsel %vm6124_vm12, %v7563_v20, %v7565_v8  ;;  %v17868_v3 = vld [vmem:[%s20339_s1 + $0x20] sm:$0xff] }
 0x239   : > { %6768 = vmatmul.mubr.f32.vlgmr.msra.gmra.mrb[0].mxu1 %v19139_v9  ;;  %6776 = vmatprep.subr.mxu1 %v6693_v10  ;;  %v6222_v35 = vand.u32 4294901760, %v6221_v59  ;;  %v19239_v29 = vand.u32 4294901760, %v7572_v60  ;;  %v7570_v40 = vsel %vm296_vm6, %v7568_v61, 0  ;;  %v19343_v59 = vcombine.high %v19208_v34, %v19208_v34 }
 0x23a   : > { %6779 = vmatpush1.msra.mxu1 %v19175_v58  ;;  %v7083_v38 = vpop.permute.xlu1 %7082  ;;  %6842 = vmatprep.mubr.f32.mxu1 %v18443_v1  ;;  %v19255_v48 = vand.u32 4294901760, %v7570_v40 }
 0x23b   : > { %6223 = vmatpush1.msra.mxu0 %v6222_v35  ;;  %6852 = vmatprep.subr.mxu1 %v19161_v16  ;;  %v7088_v18 = vsel %vm6124_vm12, %v7083_v38, %v19183_v2  ;;  %v19260_v36 = vsub.f32 %v7572_v60, %v19239_v29  ;;  %v8056_v35 = vsel %vm292_vm4, %v17868_v3, 0 }
 0x23c   : > { %6288 = vmatmul.mubr.f32.vlgmr.msra.gmra.mrb[0].mxu0 %v19139_v9  ;;  %6296 = vmatprep.subr.mxu0 %v19154_v43  ;;  %v19246_v43 = vld [vmem:[#allocation2 + $0x34] sm:$0xff]  ;;  %v7090_v49 = vsel %vm296_vm6, %v7088_v18, 0  ;;  %v19274_v54 = vsub.f32 %v7570_v40, %v19255_v48 }
 0x23d   : > { %6299 = vmatpush1.msra.mxu0 %v19187_v4  ;;  %6362 = vmatprep.mubr.f32.mxu0 %v18443_v1  ;;  %v19276_v56 = vand.u32 4294901760, %v7090_v49  ;;  %v7654_v58 = vand.u32 4294901760, %v19260_v36 }
 0x23e   : > { %6372 = vmatprep.subr.mxu0 %v19149_v41  ;;  %v9957_v23 = vpop.permute.xlu1 %9956 }
 0x23f   : > { %v19210_v15 = vrot.slane %v9957_v23, 4  ;;  %v19287_v52 = vsub.f32 %v7090_v49, %v19276_v56 }
 0x241   : > { %v9959_v17 = vsel %vm6124_vm12, %v19210_v15, %v9957_v23  ;;  %6845 = vmatmul.mubr.f32.vlgmr.msra.gmra.mrb[0].mxu1 %v19142_v30  ;;  %v9963_v19 = vmul.f32 %v19210_v15, %v9949_v13  ;;  %v9965_v24 = vmul.f32 %v19210_v15, %v9951_v25  ;;  %v9967_v55 = vmul.f32 %v19210_v15, %v9953_v12 }
 0x242   : > { %v9962_v22 = vmul.f32 %v9959_v17, %v19208_v34  ;;  %6854 = vmatpush1.msra.mxu1 %v19166_v44  ;;  %v9964_v27 = vmul.f32 %v9959_v17, %v19212_v63  ;;  %6917 = vmatprep.mubr.f32.mxu1 %v18443_v1  ;;  %v9966_v42 = vmul.f32 %v9959_v17, %v19232_v33  ;;  %v19353_v23 = vand.u32 4294901760, %v8056_v35 }
 0x243   : > { %6930 = vmatprep.subr.mxu1 %v6694_v46  ;;  %9979 = vrot.lane.b32.xlu1 %v9963_v19, %s18449_s11  ;;  %v9955_v46 = vld [vmem:[#allocation2 + $0x3c] sm:$0xf]  ;;  %v19361_v13 = vand.u32 4294901760, %v8529_v11 }
 0x244   : > { %6365 = vmatmul.mubr.f32.vlgmr.msra.gmra.mrb[0].mxu0 %v19142_v30  ;;  %v9974_v14 = vcombine.high %v9962_v22, %v9962_v22  ;;  %v10457_v37 = vcombine.high %v9964_v27, %v9964_v27  ;;  %v9969_v2 = vmul.f32 %v19210_v15, %v9955_v46  ;;  %v8058_v15 = vsel %vm296_vm6, %v19208_v34, 0 }
 0x245   : > { %6374 = vmatpush1.msra.mxu0 %v19179_v62  ;;  %6437 = vmatprep.mubr.f32.mxu0 %v18443_v1  ;;  %v19373_v25 = vand.u32 4294901760, %v8058_v15  ;;  %v19377_v26 = vsub.f32 %v8529_v11, %v19361_v13 }
 0x246   : > { %6450 = vmatprep.subr.mxu0 %v6214_v50  ;;  %9977 = vrot.lane.b32.xlu0 %v9974_v14, %s18449_s11  ;;  %v9968_v50 = vmul.f32 %v9959_v17, %v19246_v43 }
 0x247   : > { %10462 = vrot.lane.b32.xlu1 %v9965_v24, %s18449_s11  ;;  %v19387_v14 = vsub.f32 %v8058_v15, %v19373_v25  ;;  %v8619_v28 = vand.u32 4294901760, %v19377_v26  ;;  %v11904_v15 = vld [vmem:[#allocation2 + $0xc] sm:$0xf] }
 0x248   : > { %v11417_v10 = vcombine.high %v9968_v50, %v9968_v50 }
 0x249   : > { %6921 = vmatmul.mubr.f32.vlgmr.msra.gmra.mrb[0].mxu1 %v19145_v39 }
 0x24a   : > { %6934 = vmatpush1.msra.mxu1 %v6700_v0  ;;  %10460 = vrot.lane.b32.xlu0 %v10457_v37, %s18449_s11  ;;  %v7180_v0 = vand.u32 4294901760, %v19287_v52  ;;  %v8148_v37 = vand.u32 4294901760, %v19387_v14 }
 0x24b   : > { %7006 = vmatprep.subr.mxu1 %v19161_v16  ;;  %10458 = vrot.lane.b32.xlu1 %v9964_v27, %s18449_s11  ;;  %v10937_v16 = vcombine.high %v9966_v42, %v9966_v42 }
 0x24c   : > { %6441 = vmatmul.mubr.f32.vlgmr.msra.gmra.mrb[0].mxu0 %v19145_v39  ;;  %6997 = vmatprep.mubr.f32.mxu1 %v18443_v1  ;;  %v7181_v7 = vsub.f32 %v19287_v52, %v7180_v0  ;;  %v8149_v18 = vsub.f32 %v19387_v14, %v8148_v37 }
 0x24d   : > { %6454 = vmatpush1.msra.mxu0 %v6220_v47  ;;  %6517 = vmatprep.mubr.f32.mxu0 %v18443_v1 }
 0x24e   : > { %6526 = vmatprep.subr.mxu0 %v19149_v41  ;;  %9975 = vrot.lane.b32.xlu0 %v9962_v22, %s18449_s11  ;;  %v7660_v41 = vand.u32 4294901760, %v19274_v54  ;;  %v7182_v8 = vand.u32 4294901760, %v7181_v7  ;;  %v19370_v22 = vsub.f32 %v8056_v35, %v19353_v23 }
 0x24f   : > { %10940 = vrot.lane.b32.xlu1 %v10937_v16, %s18449_s11 }
 0x251   : > { %6999 = vmatmul.mubr.f32.vlgmr.msra.gmra.mrb[0].mxu1 %v19139_v9 }
 0x252   : > { %7008 = vmatpush1.msra.mxu1 %v19166_v44  ;;  %11911 = vrot.lane.b32.xlu0 %v18555_v21, %s18448_s10  ;;  %v7174_v44 = vand.u32 4294901760, %v19271_v51  ;;  %v7655_v21 = vsub.f32 %v19260_v36, %v7654_v58 }
 0x253   : > { %7575 = vmatprep.subr.mxu1 %v19239_v29  ;;  %11420 = vrot.lane.b32.xlu1 %v11417_v10, %s18449_s11  ;;  %v9000_v10 = vsel %vm296_vm6, %v19232_v33, 0 }
 0x254   : > { %6519 = vmatmul.mubr.f32.vlgmr.msra.gmra.mrb[0].mxu0 %v19139_v9  ;;  %7071 = vmatprep.mubr.f32.mxu1 %v18443_v1  ;;  %v7175_v4 = vsub.f32 %v19271_v51, %v7174_v44  ;;  %v7656_v5 = vand.u32 4294901760, %v7655_v21 }
 0x255   : > { %6528 = vmatpush1.msra.mxu0 %v19179_v62  ;;  %6591 = vmatprep.mubr.f32.mxu0 %v18443_v1  ;;  %v7661_v62 = vsub.f32 %v19274_v54, %v7660_v41 }
 0x256   : > { %7095 = vmatprep.subr.mxu0 %v19253_v45  ;;  %10942 = vrot.lane.b32.xlu0 %v9967_v55, %s18449_s11  ;;  %v7176_v6 = vand.u32 4294901760, %v7175_v4 }
 0x257   : > { %10938 = vrot.lane.b32.xlu1 %v9966_v42, %s18449_s11  ;;  %v7662_v47 = vand.u32 4294901760, %v7661_v62 }
 0x259   : > { %7073 = vmatmul.mubr.f32.vlgmr.msra.gmra.mrb[0].mxu1 %v19139_v9 }
 0x25a   : > { %7577 = vmatpush1.msra.mxu1 %v19255_v48  ;;  %11422 = vrot.lane.b32.xlu0 %v9969_v2, %s18449_s11 }
 0x25b   : > { %7657 = vmatprep.subr.mxu1 %v7656_v5  ;;  %7640 = vmatprep.mubr.f32.mxu1 %v18443_v1 }
 0x25c   : > { %6593 = vmatmul.mubr.f32.vlgmr.msra.gmra.mrb[0].mxu0 %v19139_v9 }
 0x25d   : > { %7097 = vmatpush1.msra.mxu0 %v19276_v56  ;;  %7646 = vmatmul.mubr.f32.vlgmr.msra.gmra.mrb[2].mxu1 %v19164_v53 }
 0x25e   : > { %7177 = vmatprep.subr.mxu0 %v7176_v6  ;;  %7663 = vmatpush1.msra.mxu1 %v7662_v47 }
 0x25f   : > { %7736 = vmatprep.subr.mxu1 %v19260_v36  ;;  %11418 = vrot.lane.b32.xlu0 %v9968_v50, %s18449_s11  ;;  %v8150_v36 = vand.u32 4294901760, %v8149_v18  ;;  %v8999_v50 = vcombine.high %v19232_v33, %v19232_v33 }
 0x260   : > { %7160 = vmatprep.mubr.f32.mxu0 %v18443_v1  ;;  %7726 = vmatprep.mubr.f32.mxu1 %v18443_v1 }
 0x261   : > { %7166 = vmatmul.mubr.f32.vlgmr.msra.gmra.mrb[2].mxu0 %v19164_v53  ;;  %v19330_v53 = vcombine.high %v19212_v63, %v19212_v63 }
 0x262   : > { %7183 = vmatpush1.msra.mxu0 %v7182_v8  ;;  %7246 = vmatprep.mubr.f32.mxu0 %v18443_v1 }
 0x263   : > { %7256 = vmatprep.subr.mxu0 %v19271_v51  ;;  %v8531_v57 = vsel %vm296_vm6, %v19330_v53, 0  ;;  %v9471_v51 = vsel %vm296_vm6, %v19246_v43, 0 }
 0x264   : > { %v19348_v38 = vand.u32 4294901760, %v8531_v57 }
 0x265   : > { %7728 = vmatmul.mubr.f32.vlgmr.msra.gmra.mrb[2].mxu1 %v19139_v9 }
 0x266   : > { %7739 = vmatpush1.msra.mxu1 %v19274_v54  ;;  %7802 = vmatprep.mubr.f32.mxu1 %v18443_v1  ;;  %v8612_v17 = vsub.f32 %v8531_v57, %v19348_v38  ;;  %v9002_v54 = vsel %vm296_vm6, %v8999_v50, 0 }
 0x267   : > { %7812 = vmatprep.subr.mxu1 %v19239_v29 }
 0x268   : > { %v8613_v20 = vand.u32 4294901760, %v8612_v17 }
 0x269   : > { %7248 = vmatmul.mubr.f32.vlgmr.msra.gmra.mrb[2].mxu0 %v19139_v9 }
 0x26a   : > { %7259 = vmatpush1.msra.mxu0 %v19287_v52  ;;  %7322 = vmatprep.mubr.f32.mxu0 %v18443_v1  ;;  %v8614_v24 = vsub.f32 %v8612_v17, %v8613_v20 }
 0x26b   : > { %7332 = vmatprep.subr.mxu0 %v19253_v45 }
 0x26c   : > { %v8615_v32 = vand.u32 4294901760, %v8614_v24  ;;  %v11906_v24 = vld [vmem:[#allocation2 + $0x1c] sm:$0xf] }
 0x26d   : > { %7805 = vmatmul.mubr.f32.vlgmr.msra.gmra.mrb[2].mxu1 %v19142_v30 }
 0x26e   : > { %7814 = vmatpush1.msra.mxu1 %v19255_v48  ;;  %7877 = vmatprep.mubr.f32.mxu1 %v18443_v1 }
 0x26f   : > { %7890 = vmatprep.subr.mxu1 %v7654_v58  ;;  %v19446_v58 = vand.u32 4294901760, %v9002_v54 }
 0x271   : > { %7325 = vmatmul.mubr.f32.vlgmr.msra.gmra.mrb[2].mxu0 %v19142_v30  ;;  %v8060_v30 = vsel %vm296_vm6, %v19343_v59, 0 }
 0x272   : > { %7334 = vmatpush1.msra.mxu0 %v19276_v56  ;;  %7397 = vmatprep.mubr.f32.mxu0 %v18443_v1  ;;  %v19366_v19 = vand.u32 4294901760, %v8060_v30 }
 0x273   : > { %7410 = vmatprep.subr.mxu0 %v7174_v44  ;;  %v19458_v44 = vsub.f32 %v9002_v54, %v19446_v58 }
 0x274   : > { %v8141_v27 = vsub.f32 %v8060_v30, %v19366_v19 }
 0x275   : > { %7881 = vmatmul.mubr.f32.vlgmr.msra.gmra.mrb[2].mxu1 %v19145_v39  ;;  %v9084_v2 = vand.u32 4294901760, %v19458_v44 }
 0x276   : > { %7894 = vmatpush1.msra.mxu1 %v7660_v41  ;;  %7957 = vmatprep.mubr.f32.mxu1 %v18443_v1  ;;  %v8142_v60 = vand.u32 4294901760, %v8141_v27  ;;  %v19450_v41 = vand.u32 4294901760, %v9000_v10 }
 0x277   : > { %7966 = vmatprep.subr.mxu1 %v19239_v29  ;;  %v8620_v29 = vsub.f32 %v19377_v26, %v8619_v28  ;;  %v9085_v6 = vsub.f32 %v19458_v44, %v9084_v2 }
 0x278   : > { %v8143_v40 = vsub.f32 %v8141_v27, %v8142_v60  ;;  %v19464_v21 = vsub.f32 %v9000_v10, %v19450_v41 }
 0x279   : > { %7401 = vmatmul.mubr.f32.vlgmr.msra.gmra.mrb[2].mxu0 %v19145_v39  ;;  %v19382_v39 = vand.u32 4294901760, %v19370_v22  ;;  %v9086_v8 = vand.u32 4294901760, %v9085_v6 }
 0x27a   : > { %7414 = vmatpush1.msra.mxu0 %v7180_v0  ;;  %7477 = vmatprep.mubr.f32.mxu0 %v18443_v1  ;;  %v9090_v4 = vand.u32 4294901760, %v19464_v21 }
 0x27b   : > { %7486 = vmatprep.subr.mxu0 %v19253_v45  ;;  %v8132_v61 = vsub.f32 %v19370_v22, %v19382_v39  ;;  %v8621_v45 = vand.u32 4294901760, %v8620_v29 }
 0x27c   : > { %v9091_v47 = vsub.f32 %v19464_v21, %v9090_v4 }
 0x27d   : > { %7959 = vmatmul.mubr.f32.vlgmr.msra.gmra.mrb[2].mxu1 %v19139_v9  ;;  %v19400_v42 = vand.u32 4294901760, %v8132_v61 }
 0x27e   : > { %7968 = vmatpush1.msra.mxu1 %v19255_v48  ;;  %8031 = vmatprep.mubr.f32.mxu1 %v18443_v1  ;;  %v8144_v48 = vand.u32 4294901760, %v8143_v40  ;;  %v9092_v3 = vand.u32 4294901760, %v9091_v47 }
 0x27f   : > { %8534 = vmatprep.subr.mxu1 %v19348_v38 }
 0x281   : > { %7479 = vmatmul.mubr.f32.vlgmr.msra.gmra.mrb[2].mxu0 %v19139_v9 }
 0x282   : > { %7488 = vmatpush1.msra.mxu0 %v19276_v56  ;;  %7551 = vmatprep.mubr.f32.mxu0 %v18443_v1  ;;  %v19439_v56 = vand.u32 4294901760, %v9471_v51 }
 0x283   : > { %8063 = vmatprep.subr.mxu0 %v19366_v19 }
 0x284   : > { %v19454_v52 = vsub.f32 %v9471_v51, %v19439_v56 }
 0x285   : > { %8033 = vmatmul.mubr.f32.vlgmr.msra.gmra.mrb[2].mxu1 %v19139_v9 }
 0x286   : > { %8536 = vmatpush1.msra.mxu1 %v19361_v13  ;;  %8599 = vmatprep.mubr.f32.mxu1 %v18443_v1  ;;  %v9561_v0 = vand.u32 4294901760, %v19454_v52 }
 0x287   : > { %8616 = vmatprep.subr.mxu1 %v8615_v32 }
 0x288   : > { %v9562_v5 = vsub.f32 %v19454_v52, %v9561_v0 }
 0x289   : > { %7553 = vmatmul.mubr.f32.vlgmr.msra.gmra.mrb[2].mxu0 %v19139_v9  ;;  %8605 = vmatmul.mubr.f32.vlgmr.msra.gmra.mrb[0].mxu1 %v19400_v42  ;;  %v9470_v9 = vcombine.high %v19246_v43, %v19246_v43 }
 0x28a   : > { %8065 = vmatpush1.msra.mxu0 %v19373_v25  ;;  %8128 = vmatprep.mubr.f32.mxu0 %v18443_v1  ;;  %v9563_v7 = vand.u32 4294901760, %v9562_v5 }
 0x28b   : > { %8622 = vmatpush1.msra.mxu1 %v8621_v45  ;;  %8685 = vmatprep.mubr.f32.mxu1 %v18443_v1  ;;  %v9473_v49 = vsel %vm296_vm6, %v9470_v9, 0 }
 0x28c   : > { %8145 = vmatprep.subr.mxu0 %v8144_v48  ;;  %8695 = vmatprep.subr.mxu1 %v8612_v17  ;;  %v19431_v16 = vand.u32 4294901760, %v9473_v49 }
 0x28d   : > { %8134 = vmatmul.mubr.f32.vlgmr.msra.gmra.mrb[0].mxu0 %v19400_v42 }
 0x28e   : > { %8151 = vmatpush1.msra.mxu0 %v8150_v36  ;;  %8214 = vmatprep.mubr.f32.mxu0 %v18443_v1  ;;  %v19444_v12 = vsub.f32 %v9473_v49, %v19431_v16  ;;  %v11908_v49 = vld [vmem:[#allocation2 + $0x2c] sm:$0xf] }
 0x28f   : > { %8224 = vmatprep.subr.mxu0 %v8141_v27 }
 0x290   : > { %v9555_v55 = vand.u32 4294901760, %v19444_v12 }
 0x291   : > { %8687 = vmatmul.mubr.f32.vlgmr.msra.gmra.mrb[0].mxu1 %v19353_v23 }
 0x292   : > { %8698 = vmatpush1.msra.mxu1 %v19377_v26  ;;  %8761 = vmatprep.mubr.f32.mxu1 %v18443_v1  ;;  %v9556_v46 = vsub.f32 %v19444_v12, %v9555_v55 }
 0x293   : > { %8771 = vmatprep.subr.mxu1 %v19348_v38 }
 0x294   : > { %v9557_v62 = vand.u32 4294901760, %v9556_v46 }
 0x295   : > { %8216 = vmatmul.mubr.f32.vlgmr.msra.gmra.mrb[0].mxu0 %v19353_v23 }
 0x296   : > { %8227 = vmatpush1.msra.mxu0 %v19387_v14  ;;  %8290 = vmatprep.mubr.f32.mxu0 %v18443_v1 }
 0x297   : > { %8300 = vmatprep.subr.mxu0 %v19366_v19 }
 0x299   : > { %8764 = vmatmul.mubr.f32.vlgmr.msra.gmra.mrb[0].mxu1 %v19370_v22 }
 0x29a   : > { %8773 = vmatpush1.msra.mxu1 %v19361_v13  ;;  %8836 = vmatprep.mubr.f32.mxu1 %v18443_v1 }
 0x29b   : > { %8849 = vmatprep.subr.mxu1 %v8613_v20 }
 0x29d   : > { %8293 = vmatmul.mubr.f32.vlgmr.msra.gmra.mrb[0].mxu0 %v19370_v22 }
 0x29e   : > { %8302 = vmatpush1.msra.mxu0 %v19373_v25  ;;  %8365 = vmatprep.mubr.f32.mxu0 %v18443_v1 }
 0x29f   : > { %8378 = vmatprep.subr.mxu0 %v8142_v60 }
 0x2a1   : > { %8840 = vmatmul.mubr.f32.vlgmr.msra.gmra.mrb[0].mxu1 %v19382_v39 }
 0x2a2   : > { %8853 = vmatpush1.msra.mxu1 %v8619_v28  ;;  %8916 = vmatprep.mubr.f32.mxu1 %v18443_v1 }
 0x2a3   : > { %8925 = vmatprep.subr.mxu1 %v19348_v38 }
 0x2a5   : > { %8369 = vmatmul.mubr.f32.vlgmr.msra.gmra.mrb[0].mxu0 %v19382_v39 }
 0x2a6   : > { %8382 = vmatpush1.msra.mxu0 %v8148_v37  ;;  %8445 = vmatprep.mubr.f32.mxu0 %v18443_v1 }
 0x2a7   : > { %8454 = vmatprep.subr.mxu0 %v19366_v19  ;;  %v17869_v19 = vld [vmem:[%s20339_s1 + $0x28] sm:$0xff] }
 0x2a8   : > { %v9984_v28 = vsel %vm292_vm4, %v17869_v19, 0 }
 0x2a9   : > { %8918 = vmatmul.mubr.f32.vlgmr.msra.gmra.mrb[0].mxu1 %v19353_v23  ;;  %v19535_v18 = vand.u32 4294901760, %v9984_v28 }
 0x2aa   : > { %8927 = vmatpush1.msra.mxu1 %v19361_v13  ;;  %8990 = vmatprep.mubr.f32.mxu1 %v18443_v1 }
 0x2ab   : > { %9476 = vmatprep.subr.mxu1 %v19431_v16  ;;  %v19555_v10 = vsub.f32 %v9984_v28, %v19535_v18 }
 0x2ad   : > { %8447 = vmatmul.mubr.f32.vlgmr.msra.gmra.mrb[0].mxu0 %v19353_v23 }
 0x2ae   : > { %8456 = vmatpush1.msra.mxu0 %v19373_v25  ;;  %8519 = vmatprep.mubr.f32.mxu0 %v18443_v1 }
 0x2af   : > { %9005 = vmatprep.subr.mxu0 %v19446_v58 }
 0x2b1   : > { %8992 = vmatmul.mubr.f32.vlgmr.msra.gmra.mrb[0].mxu1 %v19353_v23 }
 0x2b2   : > { %9478 = vmatpush1.msra.mxu1 %v19439_v56  ;;  %9541 = vmatprep.mubr.f32.mxu1 %v18443_v1 }
 0x2b3   : > { %9558 = vmatprep.subr.mxu1 %v9557_v62 }
 0x2b5   : > { %8521 = vmatmul.mubr.f32.vlgmr.msra.gmra.mrb[0].mxu0 %v19353_v23  ;;  %9547 = vmatmul.mubr.f32.vlgmr.msra.gmra.mrb[2].mxu1 %v19400_v42  ;;  %v9980_v35 = vpop.permute.xlu1 %9979 }
 0x2b6   : > { %9007 = vmatpush1.msra.mxu0 %v19450_v41  ;;  %9070 = vmatprep.mubr.f32.mxu0 %v18443_v1 }
 0x2b7   : > { %9564 = vmatpush1.msra.mxu1 %v9563_v7  ;;  %9627 = vmatprep.mubr.f32.mxu1 %v18443_v1  ;;  %v13859_v7 = vld [vmem:[#allocation2 + $0xc] sm:$0xf] }
 0x2b8   : > { %v9978_v57 = vpop.permute.xlu0 %9977  ;;  %9087 = vmatprep.subr.mxu0 %v9086_v8  ;;  %9637 = vmatprep.subr.mxu1 %v19444_v12  ;;  %v13861_v8 = vld [vmem:[#allocation2 + $0x1c] sm:$0xf] }
 0x2b9   : > { %9076 = vmatmul.mubr.f32.vlgmr.msra.gmra.mrb[2].mxu0 %v19400_v42  ;;  %v10463_v30 = vpop.permute.xlu1 %10462  ;;  %v9982_v29 = vsel %vm6101_vm11, %v9978_v57, %v9980_v35  ;;  %v18356_v35 = vpack.i.bf16 %v13861_v8, %v13859_v7 }
 0x2ba   : > { %9093 = vmatpush1.msra.mxu0 %v9092_v3  ;;  %9156 = vmatprep.mubr.f32.mxu0 %v18443_v1  ;;  %v9988_v45 = vsel %vm296_vm6, %v9982_v29, 0 }
 0x2bb   : > { %9166 = vmatprep.subr.mxu0 %v19458_v44  ;;  %v19546_v50 = vand.u32 4294901760, %v9988_v45 }
 0x2bc   : > { %v10461_v38 = vpop.permute.xlu0 %10460 }
 0x2bd   : > { %9629 = vmatmul.mubr.f32.vlgmr.msra.gmra.mrb[2].mxu1 %v19353_v23  ;;  %v10465_v25 = vsel %vm6101_vm11, %v10461_v38, %v10463_v30  ;;  %v10459_v26 = vpop.permute.xlu1 %10458  ;;  %v19570_v44 = vsub.f32 %v9988_v45, %v19546_v50 }
 0x2be   : > { %9640 = vmatpush1.msra.mxu1 %v19454_v52  ;;  %9703 = vmatprep.mubr.f32.mxu1 %v18443_v1  ;;  %v10468_v60 = vsel %vm296_vm6, %v10465_v25, 0  ;;  %v10464_v61 = vsel %vm6101_vm11, %v10459_v26, %v10461_v38  ;;  %v19651_v26 = vld [vmem:[#allocation2 + $0x34] sm:$0xff] }
 0x2bf   : > { %9713 = vmatprep.subr.mxu1 %v19431_v16  ;;  %v10466_v42 = vsel %vm296_vm6, %v10464_v61, 0 }
 0x2c0   : > { %v9976_v11 = vpop.permute.xlu0 %9975  ;;  %v19543_v9 = vand.u32 4294901760, %v10466_v42 }
 0x2c1   : > { %9158 = vmatmul.mubr.f32.vlgmr.msra.gmra.mrb[2].mxu0 %v19353_v23  ;;  %v9981_v48 = vsel %vm6101_vm11, %v9976_v11, %v9978_v57  ;;  %v10941_v19 = vpop.permute.xlu1 %10940 }
 0x2c2   : > { %9169 = vmatpush1.msra.mxu0 %v19464_v21  ;;  %9232 = vmatprep.mubr.f32.mxu0 %v18443_v1  ;;  %v9986_v54 = vsel %vm296_vm6, %v9981_v48, 0  ;;  %v19564_v52 = vsub.f32 %v10466_v42, %v19543_v9  ;;  %v19576_v21 = vand.u32 4294901760, %v19555_v10 }
 0x2c3   : > { %9242 = vmatprep.subr.mxu0 %v19446_v58 }
 0x2c4   : > { %v11912_v13 = vpop.permute.xlu0 %11911  ;;  %v10060_v62 = vsub.f32 %v19555_v10, %v19576_v21 }
 0x2c5   : > { %v19504_v17 = vrot.slane %v11912_v13, 4  ;;  %9706 = vmatmul.mubr.f32.vlgmr.msra.gmra.mrb[2].mxu1 %v19370_v22 }
 0x2c6   : > { %9715 = vmatpush1.msra.mxu1 %v19439_v56  ;;  %9778 = vmatprep.mubr.f32.mxu1 %v18443_v1  ;;  %v19609_v57 = vand.u32 4294901760, %v10060_v62 }
 0x2c7   : > { %v11914_v20 = vsel %vm4167_vm10, %v19504_v17, %v11912_v13  ;;  %v11918_v27 = vmul.f32 %v19504_v17, %v11904_v15  ;;  %9791 = vmatprep.subr.mxu1 %v9555_v55  ;;  %v11920_v40 = vmul.f32 %v19504_v17, %v11906_v24  ;;  %v11922_v12 = vmul.f32 %v19504_v17, %v11908_v49  ;;  %v11910_v55 = vld [vmem:[#allocation2 + $0x3c] sm:$0xf]  ;;  %v13863_v15 = vld [vmem:[#allocation2 + $0x2c] sm:$0xf] }
 0x2c8   : > { %v11917_v14 = vmul.f32 %v11914_v20, %v19208_v34  ;;  %v11919_v37 = vmul.f32 %v11914_v20, %v19212_v63 }
 0x2c9   : > { %9235 = vmatmul.mubr.f32.vlgmr.msra.gmra.mrb[2].mxu0 %v19370_v22  ;;  %11934 = vrot.lane.b32.xlu0 %v11918_v27, %s18447_s7  ;;  %v19530_v22 = vand.u32 4294901760, %v10468_v60 }
 0x2ca   : > { %v11929_v32 = vcombine.high %v11917_v14, %v11917_v14  ;;  %9244 = vmatpush1.msra.mxu0 %v19450_v41  ;;  %9307 = vmatprep.mubr.f32.mxu0 %v18443_v1  ;;  %v12412_v36 = vcombine.high %v11919_v37, %v11919_v37 }
 0x2cb   : > { %9320 = vmatprep.subr.mxu0 %v9084_v2  ;;  %v19549_v51 = vsub.f32 %v10468_v60, %v19530_v22  ;;  %v10556_v2 = vand.u32 4294901760, %v19564_v52 }
 0x2cc   : > { %11932 = vrot.lane.b32.xlu1 %v11929_v32, %s18447_s7 }
 0x2cd   : > { %9782 = vmatmul.mubr.f32.vlgmr.msra.gmra.mrb[2].mxu1 %v19382_v39  ;;  %12417 = vrot.lane.b32.xlu0 %v11920_v40, %s18447_s7  ;;  %v10557_v47 = vsub.f32 %v19564_v52, %v10556_v2 }
 0x2ce   : > { %9795 = vmatpush1.msra.mxu1 %v9561_v0  ;;  %9858 = vmatprep.mubr.f32.mxu1 %v18443_v1  ;;  %v11924_v0 = vmul.f32 %v19504_v17, %v11910_v55  ;;  %v13865_v17 = vld [vmem:[#allocation2 + $0x3c] sm:$0xf] }
 0x2cf   : > { %9867 = vmatprep.subr.mxu1 %v19431_v16  ;;  %v11921_v16 = vmul.f32 %v11914_v20, %v19232_v33  ;;  %v10550_v33 = vand.u32 4294901760, %v19549_v51  ;;  %v10558_v38 = vand.u32 4294901760, %v10557_v47  ;;  %v18361_v25 = vpack.i.bf16 %v13865_v17, %v13863_v15 }
 0x2d0   : > { %12415 = vrot.lane.b32.xlu1 %v12412_v36, %s18447_s7 }
 0x2d1   : > { %9311 = vmatmul.mubr.f32.vlgmr.msra.gmra.mrb[2].mxu0 %v19382_v39  ;;  %12413 = vrot.lane.b32.xlu0 %v11919_v37, %s18447_s7  ;;  %v19566_v39 = vand.u32 4294901760, %v9986_v54  ;;  %v12892_v46 = vcombine.high %v11921_v16, %v11921_v16 }
 0x2d2   : > { %9324 = vmatpush1.msra.mxu0 %v9090_v4  ;;  %9387 = vmatprep.mubr.f32.mxu0 %v18443_v1 }
 0x2d3   : > { %9396 = vmatprep.subr.mxu0 %v19446_v58  ;;  %v11923_v58 = vmul.f32 %v11914_v20, %v19246_v43  ;;  %v19585_v4 = vsub.f32 %v9986_v54, %v19566_v39  ;;  %v10551_v43 = vsub.f32 %v19549_v51, %v10550_v33 }
 0x2d4   : > { %11930 = vrot.lane.b32.xlu1 %v11917_v14, %s18447_s7 }
 0x2d5   : > { %9860 = vmatmul.mubr.f32.vlgmr.msra.gmra.mrb[2].mxu1 %v19353_v23  ;;  %12897 = vrot.lane.b32.xlu0 %v11922_v12, %s18447_s7  ;;  %v13372_v5 = vcombine.high %v11923_v58, %v11923_v58  ;;  %v10076_v6 = vand.u32 4294901760, %v19585_v4 }
 0x2d6   : > { %9869 = vmatpush1.msra.mxu1 %v19439_v56  ;;  %9932 = vmatprep.mubr.f32.mxu1 %v18443_v1  ;;  %v10070_v56 = vand.u32 4294901760, %v19570_v44 }
 0x2d7   : > { %10471 = vmatprep.subr.mxu1 %v19530_v22  ;;  %v10077_v11 = vsub.f32 %v19585_v4, %v10076_v6 }
 0x2d8   : > { %12895 = vrot.lane.b32.xlu1 %v12892_v46, %s18447_s7  ;;  %v10071_v3 = vsub.f32 %v19570_v44, %v10070_v56 }
 0x2d9   : > { %9389 = vmatmul.mubr.f32.vlgmr.msra.gmra.mrb[2].mxu0 %v19353_v23  ;;  %13377 = vrot.lane.b32.xlu0 %v11924_v0, %s18447_s7  ;;  %v10078_v13 = vand.u32 4294901760, %v10077_v11 }
 0x2da   : > { %9398 = vmatpush1.msra.mxu0 %v19450_v41  ;;  %9461 = vmatprep.mubr.f32.mxu0 %v18443_v1  ;;  %v10552_v41 = vand.u32 4294901760, %v10551_v43  ;;  %v10072_v30 = vand.u32 4294901760, %v10071_v3 }
 0x2db   : > { %9991 = vmatprep.subr.mxu0 %v19546_v50 }
 0x2dc   : > { %13375 = vrot.lane.b32.xlu1 %v13372_v5, %s18447_s7 }
 0x2dd   : > { %9934 = vmatmul.mubr.f32.vlgmr.msra.gmra.mrb[2].mxu1 %v19353_v23  ;;  %13373 = vrot.lane.b32.xlu0 %v11923_v58, %s18447_s7 }
 0x2de   : > { %10473 = vmatpush1.msra.mxu1 %v19543_v9  ;;  %10536 = vmatprep.mubr.f32.mxu1 %v18443_v1 }
 0x2df   : > { %10553 = vmatprep.subr.mxu1 %v10552_v41 }
 0x2e0   : > { %12893 = vrot.lane.b32.xlu1 %v11921_v16, %s18447_s7 }
 0x2e1   : > { %9463 = vmatmul.mubr.f32.vlgmr.msra.gmra.mrb[2].mxu0 %v19353_v23  ;;  %10542 = vmatmul.mubr.f32.vlgmr.msra.gmra.mrb[0].mxu1 %v19609_v57  ;;  %v10943_v23 = vpop.permute.xlu0 %10942 }
 0x2e2   : > { %9993 = vmatpush1.msra.mxu0 %v19566_v39  ;;  %10559 = vmatpush1.msra.mxu1 %v10558_v38  ;;  %v10945_v28 = vsel %vm6101_vm11, %v10941_v19, %v10943_v23 }
 0x2e3   : > { %10073 = vmatprep.subr.mxu0 %v10072_v30  ;;  %18357 = vrot.lane.b32.xlu0 %v18356_v35, %s18451_s5  ;;  %v10948_v32 = vsel %vm296_vm6, %v10945_v28, 0 }
 0x2e4   : > { %10632 = vmatprep.subr.mxu1 %v19549_v51  ;;  %10056 = vmatprep.mubr.f32.mxu0 %v18443_v1  ;;  %v19686_v42 = vand.u32 4294901760, %v10948_v32 }
 0x2e5   : > { %10062 = vmatmul.mubr.f32.vlgmr.msra.gmra.mrb[0].mxu0 %v19609_v57  ;;  %10622 = vmatprep.mubr.f32.mxu1 %v18443_v1 }
 0x2e6   : > { %10079 = vmatpush1.msra.mxu0 %v10078_v13  ;;  %10142 = vmatprep.mubr.f32.mxu0 %v18443_v1  ;;  %v11029_v49 = vsub.f32 %v10948_v32, %v19686_v42 }
 0x2e7   : > { %10152 = vmatprep.subr.mxu0 %v19570_v44  ;;  %13871 = vrot.lane.b32.xlu0 %v19208_v34, %s18451_s5  ;;  %v11423_v34 = vpop.permute.xlu0 %11422 }
 0x2e8   : > { %13873 = vrot.lane.b32.xlu1 %v19343_v59, %s18451_s5  ;;  %v19640_v59 = vld [vmem:[#allocation2 + $0x24] sm:$0xff]  ;;  %v11030_v12 = vand.u32 4294901760, %v11029_v49 }
 0x2e9   : > { %10624 = vmatmul.mubr.f32.vlgmr.msra.gmra.mrb[0].mxu1 %v19535_v18 }
 0x2ea   : > { %10635 = vmatpush1.msra.mxu1 %v19564_v52  ;;  %10698 = vmatprep.mubr.f32.mxu1 %v18443_v1  ;;  %v11031_v44 = vsub.f32 %v11029_v49, %v11030_v12 }
 0x2eb   : > { %15808 = vrot.lane.b32.xlu0 %v18572_v31, %s18446_s6  ;;  %10708 = vmatprep.subr.mxu1 %v19530_v22  ;;  %v14834_v31 = vcombine.high %v19640_v59, %v19640_v59  ;;  %v11419_v27 = vpop.permute.xlu0 %11418  ;;  %s18453_s6 = smov [#allocation3]  }
 0x2ec   : > { %14357 = vrot.lane.b32.xlu1 %v19330_v53, %s18451_s5  ;;  %v11421_v53 = vpop.permute.xlu1 %11420  ;;  %s18383_s7 = sshll.u32 %s18453_s6, 4  ;;  %s18384_s7 = int_to_ptr.vmem [resolvable:$false] %s18383_s7 }
 0x2ed   : > { %10144 = vmatmul.mubr.f32.vlgmr.msra.gmra.mrb[0].mxu0 %v19535_v18  ;;  %v11425_v20 = vsel %vm6101_vm11, %v11421_v53, %v11423_v34  ;;  %v11424_v24 = vsel %vm6101_vm11, %v11419_v27, %v11421_v53  ;;  %p18386_p0 = scmp.lt.s32.totalorder %s20292_s26, %s18384_s7 }
 0x2ee   : > { %10155 = vmatpush1.msra.mxu0 %v19585_v4  ;;  %10218 = vmatprep.mubr.f32.mxu0 %v18443_v1  ;;  %v11428_v14 = vsel %vm296_vm6, %v11425_v20, 0  ;;  %v11426_v37 = vsel %vm296_vm6, %v11424_v24, 0 }
 0x2ef   : > { %10228 = vmatprep.subr.mxu0 %v19546_v50  ;;  %18362 = vrot.lane.b32.xlu0 %v18361_v25, %s18451_s5  ;;  %v19672_v61 = vand.u32 4294901760, %v11428_v14  ;;  %v19682_v40 = vand.u32 4294901760, %v11426_v37 }
 0x2f0   : > { %14355 = vrot.lane.b32.xlu1 %v19212_v63, %s18451_s5  ;;  %v15314_v63 = vcombine.high %v19651_v26, %v19651_v26  ;;  %v10939_v60 = vpop.permute.xlu1 %10938 }
 0x2f1   : > { %10701 = vmatmul.mubr.f32.vlgmr.msra.gmra.mrb[0].mxu1 %v19555_v10  ;;  %v10944_v29 = vsel %vm6101_vm11, %v10939_v60, %v10941_v19  ;;  %v11509_v48 = vsub.f32 %v11428_v14, %v19672_v61  ;;  %v11515_v36 = vsub.f32 %v11426_v37, %v19682_v40 }
 0x2f2   : > { %10710 = vmatpush1.msra.mxu1 %v19543_v9  ;;  %10773 = vmatprep.mubr.f32.mxu1 %v18443_v1  ;;  %v10946_v45 = vsel %vm296_vm6, %v10944_v29, 0 }
 0x2f3   : > { %10786 = vmatprep.subr.mxu1 %v10550_v33  ;;  %14835 = vrot.lane.b32.xlu0 %v19640_v59, %s18451_s5  ;;  %v11510_v51 = vand.u32 4294901760, %v11509_v48  ;;  %v11516_v16 = vand.u32 4294901760, %v11515_v36 }
 0x2f4   : > { %14837 = vrot.lane.b32.xlu1 %v14834_v31, %s18451_s5 }
 0x2f5   : > { %10221 = vmatmul.mubr.f32.vlgmr.msra.gmra.mrb[0].mxu0 %v19555_v10  ;;  %v11517_v55 = vsub.f32 %v11515_v36, %v11516_v16 }
 0x2f6   : > { %10230 = vmatpush1.msra.mxu0 %v19566_v39  ;;  %10293 = vmatprep.mubr.f32.mxu0 %v18443_v1 }
 0x2f7   : > { %10306 = vmatprep.subr.mxu0 %v10070_v56  ;;  %v11518_v33 = vand.u32 4294901760, %v11517_v55  ;;  %v15802_v55 = vld [vmem:[#allocation2 + $0x14] sm:$0xff] }
 0x2f8   : > { %15317 = vrot.lane.b32.xlu1 %v15314_v63, %s18451_s5 }
 0x2f9   : > { %10777 = vmatmul.mubr.f32.vlgmr.msra.gmra.mrb[0].mxu1 %v19576_v21 }
 0x2fa   : > { %10790 = vmatpush1.msra.mxu1 %v10556_v2  ;;  %10853 = vmatprep.mubr.f32.mxu1 %v18443_v1 }
 0x2fb   : > { %10862 = vmatprep.subr.mxu1 %v19530_v22  ;;  %v19695_v22 = vand.u32 4294901760, %v10946_v45 }
 0x2fc   : > { %15315 = vrot.lane.b32.xlu1 %v19651_v26, %s18451_s5  ;;  %s18379_s5 = scalar_lea.vmem %s20292_s26, 1024 }
 0x2fd   : > { %10297 = vmatmul.mubr.f32.vlgmr.msra.gmra.mrb[0].mxu0 %v19576_v21  ;;  %v11035_v54 = vsub.f32 %v10946_v45, %v19695_v22  ;;  %p18380_p11 = scmp.ne.s32.totalorder %s20292_s26, %s18379_s5 }
 0x2fe   : > { %10310 = vmatpush1.msra.mxu0 %v10076_v6  ;;  %10373 = vmatprep.mubr.f32.mxu0 %v18443_v1 }
 0x2ff   : > { %10382 = vmatprep.subr.mxu0 %v19546_v50  ;;  %v11511_v50 = vsub.f32 %v11509_v48, %v11510_v51  ;;  %v11036_v52 = vand.u32 4294901760, %v11035_v54  ;;  %p18381_p12 = pnand %p18380_p11, %p18513_p5 }
 0x301   : > { %10855 = vmatmul.mubr.f32.vlgmr.msra.gmra.mrb[0].mxu1 %v19535_v18  ;;  %v11037_v58 = vsub.f32 %v11035_v54, %v11036_v52  ;;  %p18382_p13 = pneg %p18381_p12 }
 0x302   : > { %10864 = vmatpush1.msra.mxu1 %v19543_v9  ;;  %10927 = vmatprep.mubr.f32.mxu1 %v18443_v1  ;;  %v11512_v9 = vand.u32 4294901760, %v11511_v50 }
 0x303   : > { %11431 = vmatprep.subr.mxu1 %v19672_v61  ;;  %v11038_v46 = vand.u32 4294901760, %v11037_v58 }
 0x305   : > { %10375 = vmatmul.mubr.f32.vlgmr.msra.gmra.mrb[0].mxu0 %v19535_v18 }
 0x306   : > { %10384 = vmatpush1.msra.mxu0 %v19566_v39  ;;  %10447 = vmatprep.mubr.f32.mxu0 %v18443_v1  ;;  %v11032_v39 = vand.u32 4294901760, %v11031_v44 }
 0x307   : > { %10951 = vmatprep.subr.mxu0 %v19686_v42 }
 0x309   : > { %10929 = vmatmul.mubr.f32.vlgmr.msra.gmra.mrb[0].mxu1 %v19535_v18 }
 0x30a   : > { %11433 = vmatpush1.msra.mxu1 %v19682_v40  ;;  %11496 = vmatprep.mubr.f32.mxu1 %v18443_v1 }
 0x30b   : > { %11513 = vmatprep.subr.mxu1 %v11512_v9 }
 0x30d   : > { %10449 = vmatmul.mubr.f32.vlgmr.msra.gmra.mrb[0].mxu0 %v19535_v18  ;;  %11502 = vmatmul.mubr.f32.vlgmr.msra.gmra.mrb[2].mxu1 %v19609_v57 }
 0x30e   : > { %10953 = vmatpush1.msra.mxu0 %v19695_v22  ;;  %11519 = vmatpush1.msra.mxu1 %v11518_v33  ;;  %v15803_v33 = vld [vmem:[#allocation2 + $0x1c] sm:$0xf] }
 0x30f   : > { %11033 = vmatprep.subr.mxu0 %v11032_v39  ;;  %11592 = vmatprep.subr.mxu1 %v11509_v48 }
 0x310   : > { %11016 = vmatprep.mubr.f32.mxu0 %v18443_v1  ;;  %11582 = vmatprep.mubr.f32.mxu1 %v18443_v1 }
 0x311   : > { %11022 = vmatmul.mubr.f32.vlgmr.msra.gmra.mrb[2].mxu0 %v19609_v57 }
 0x312   : > { %11039 = vmatpush1.msra.mxu0 %v11038_v46  ;;  %11102 = vmatprep.mubr.f32.mxu0 %v18443_v1 }
 0x313   : > { %11112 = vmatprep.subr.mxu0 %v11029_v49 }
 0x315   : > { %11584 = vmatmul.mubr.f32.vlgmr.msra.gmra.mrb[2].mxu1 %v19535_v18 }
 0x316   : > { %11595 = vmatpush1.msra.mxu1 %v11515_v36  ;;  %11658 = vmatprep.mubr.f32.mxu1 %v18443_v1 }
 0x317   : > { %11668 = vmatprep.subr.mxu1 %v19672_v61 }
 0x319   : > { %11104 = vmatmul.mubr.f32.vlgmr.msra.gmra.mrb[2].mxu0 %v19535_v18 }
 0x31a   : > { %11115 = vmatpush1.msra.mxu0 %v11035_v54  ;;  %11178 = vmatprep.mubr.f32.mxu0 %v18443_v1 }
 0x31b   : > { %11188 = vmatprep.subr.mxu0 %v19686_v42 }
 0x31d   : > { %11661 = vmatmul.mubr.f32.vlgmr.msra.gmra.mrb[2].mxu1 %v19555_v10 }
 0x31e   : > { %11670 = vmatpush1.msra.mxu1 %v19682_v40  ;;  %11733 = vmatprep.mubr.f32.mxu1 %v18443_v1 }
 0x31f   : > { %11746 = vmatprep.subr.mxu1 %v11510_v51 }
 0x321   : > { %11181 = vmatmul.mubr.f32.vlgmr.msra.gmra.mrb[2].mxu0 %v19555_v10  ;;  %v17870_v10 = vld [vmem:[%s20339_s1 + $0x30] sm:$0xff] }
 0x322   : > { %11190 = vmatpush1.msra.mxu0 %v19695_v22  ;;  %11253 = vmatprep.mubr.f32.mxu0 %v18443_v1 }
 0x323   : > { %11266 = vmatprep.subr.mxu0 %v11030_v12 }
 0x325   : > { %11737 = vmatmul.mubr.f32.vlgmr.msra.gmra.mrb[2].mxu1 %v19576_v21 }
 0x326   : > { %11750 = vmatpush1.msra.mxu1 %v11516_v16  ;;  %11813 = vmatprep.mubr.f32.mxu1 %v18443_v1  ;;  %v15801_v16 = vld [vmem:[#allocation2 + $0xc] sm:$0xf] }
 0x327   : > { %11822 = vmatprep.subr.mxu1 %v19672_v61 }
 0x329   : > { %11257 = vmatmul.mubr.f32.vlgmr.msra.gmra.mrb[2].mxu0 %v19576_v21  ;;  %v11939_v21 = vsel %vm292_vm4, %v17870_v10, 0 }
 0x32a   : > { %11270 = vmatpush1.msra.mxu0 %v11036_v52  ;;  %11333 = vmatprep.mubr.f32.mxu0 %v18443_v1  ;;  %v19747_v0 = vand.u32 4294901760, %v11939_v21  ;;  %v15800_v52 = vld [vmem:[#allocation2 + $0x4] sm:$0xff] }
 0x32b   : > { %11342 = vmatprep.subr.mxu0 %v19686_v42 }
 0x32c   : > { %v19752_v2 = vsub.f32 %v11939_v21, %v19747_v0 }
 0x32d   : > { %11815 = vmatmul.mubr.f32.vlgmr.msra.gmra.mrb[2].mxu1 %v19535_v18 }
 0x32e   : > { %11824 = vmatpush1.msra.mxu1 %v19682_v40  ;;  %11887 = vmatprep.mubr.f32.mxu1 %v18443_v1  ;;  %v19756_v43 = vand.u32 4294901760, %v19752_v2 }
 0x331   : > { %11335 = vmatmul.mubr.f32.vlgmr.msra.gmra.mrb[2].mxu0 %v19535_v18 }
 0x332   : > { %11344 = vmatpush1.msra.mxu0 %v19695_v22  ;;  %11407 = vmatprep.mubr.f32.mxu0 %v18443_v1 }
 0x335   : > { %11889 = vmatmul.mubr.f32.vlgmr.msra.gmra.mrb[2].mxu1 %v19535_v18 }
 0x336   : > { %12491 = vmatprep.mubr.f32.mxu1 %v18443_v1 }
 0x339   : > { %11409 = vmatmul.mubr.f32.vlgmr.msra.gmra.mrb[2].mxu0 %v19535_v18  ;;  %v12015_v18 = vsub.f32 %v19752_v2, %v19756_v43 }
 0x33a   : > { %12011 = vmatprep.mubr.f32.mxu0 %v18443_v1 }
 0x33b   : > { %v11935_v4 = vpop.permute.xlu0 %11934  ;;  %v19774_v30 = vand.u32 4294901760, %v12015_v18 }
 0x33e   : > { %v11933_v56 = vpop.permute.xlu1 %11932 }
 0x33f   : > { %v11937_v62 = vsel %vm4144_vm9, %v11933_v56, %v11935_v4  ;;  %v12418_v5 = vpop.permute.xlu0 %12417 }
 0x340   : > { %v11943_v6 = vsel %vm296_vm6, %v11937_v62, 0 }
 0x341   : > { %v19760_v47 = vand.u32 4294901760, %v11943_v6 }
 0x342   : > { %v12416_v7 = vpop.permute.xlu1 %12415 }
 0x343   : > { %v19765_v8 = vsub.f32 %v11943_v6, %v19760_v47  ;;  %v12420_v41 = vsel %vm4144_vm9, %v12416_v7, %v12418_v5  ;;  %11946 = vmatprep.subr.mxu0 %v19760_v47  ;;  %v12414_v3 = vpop.permute.xlu0 %12413 }
 0x344   : > { %v12423_v57 = vsel %vm296_vm6, %v12420_v41, 0  ;;  %v12419_v35 = vsel %vm4144_vm9, %v12414_v3, %v12416_v7 }
 0x345   : > { %v19771_v38 = vand.u32 4294901760, %v12423_v57  ;;  %v12421_v11 = vsel %vm296_vm6, %v12419_v35, 0  ;;  %v12025_v13 = vand.u32 4294901760, %v19765_v8  ;;  %v15805_v35 = vld [vmem:[#allocation2 + $0x2c] sm:$0xf] }
 0x346   : > { %v19777_v23 = vand.u32 4294901760, %v12421_v11  ;;  %v11931_v15 = vpop.permute.xlu1 %11930 }
 0x347   : > { %v12504_v17 = vsub.f32 %v12423_v57, %v19771_v38  ;;  %v11936_v19 = vsel %vm4144_vm9, %v11931_v15, %v11933_v56  ;;  %12426 = vmatprep.subr.mxu1 %v19771_v38  ;;  %v12898_v25 = vpop.permute.xlu0 %12897  ;;  %v12026_v34 = vsub.f32 %v19765_v8, %v12025_v13 }
 0x348   : > { %v19784_v31 = vsub.f32 %v12421_v11, %v19777_v23  ;;  %v11941_v53 = vsel %vm296_vm6, %v11936_v19, 0  ;;  %12428 = vmatpush1.msra.mxu1 %v19777_v23  ;;  %v15807_v19 = vld [vmem:[#allocation2 + $0x3c] sm:$0xf] }
 0x349   : > { %v19788_v20 = vand.u32 4294901760, %v11941_v53  ;;  %12497 = vmatmul.mubr.f32.vlgmr.msra.gmra.mrb[0].mxu1 %v19774_v30  ;;  %v12027_v27 = vand.u32 4294901760, %v12026_v34  ;;  %v12505_v63 = vand.u32 4294901760, %v12504_v17 }
 0x34a   : > { %v12511_v14 = vand.u32 4294901760, %v19784_v31  ;;  %12577 = vmatprep.mubr.f32.mxu1 %v18443_v1  ;;  %v12896_v48 = vpop.permute.xlu1 %12895 }
 0x34b   : > { %v19794_v24 = vsub.f32 %v11941_v53, %v19788_v20  ;;  %11948 = vmatpush1.msra.mxu0 %v19788_v20  ;;  %v13378_v28 = vpop.permute.xlu0 %13377  ;;  %v12506_v60 = vsub.f32 %v12504_v17, %v12505_v63  ;;  %v12900_v50 = vsel %vm4144_vm9, %v12896_v48, %v12898_v25 }
 0x34c   : > { %12017 = vmatmul.mubr.f32.vlgmr.msra.gmra.mrb[0].mxu0 %v19774_v30  ;;  %12028 = vmatprep.subr.mxu0 %v12027_v27  ;;  %v12512_v61 = vsub.f32 %v19784_v31, %v12511_v14  ;;  %v12903_v10 = vsel %vm296_vm6, %v12900_v50, 0 }
 0x34d   : > { %v12031_v37 = vand.u32 4294901760, %v19794_v24  ;;  %v12507_v32 = vand.u32 4294901760, %v12506_v60  ;;  %12097 = vmatprep.mubr.f32.mxu0 %v18443_v1  ;;  %v19835_v7 = vand.u32 4294901760, %v12903_v10 }
 0x34e   : > { %v12513_v29 = vand.u32 4294901760, %v12512_v61  ;;  %v13376_v36 = vpop.permute.xlu1 %13375 }
 0x34f   : > { %12508 = vmatprep.subr.mxu1 %v12507_v32  ;;  %v13374_v40 = vpop.permute.xlu0 %13373  ;;  %v12032_v42 = vsub.f32 %v19794_v24, %v12031_v37  ;;  %v13380_v51 = vsel %vm4144_vm9, %v13376_v36, %v13378_v28 }
 0x350   : > { %12514 = vmatpush1.msra.mxu1 %v12513_v29  ;;  %v13383_v12 = vsel %vm296_vm6, %v13380_v51, 0  ;;  %v13379_v58 = vsel %vm4144_vm9, %v13374_v40, %v13376_v36 }
 0x351   : > { %12579 = vmatmul.mubr.f32.vlgmr.msra.gmra.mrb[0].mxu1 %v19747_v0  ;;  %12587 = vmatprep.subr.mxu1 %v12504_v17  ;;  %v12033_v45 = vand.u32 4294901760, %v12032_v42  ;;  %v19827_v21 = vand.u32 4294901760, %v13383_v12  ;;  %v13381_v6 = vsel %vm296_vm6, %v13379_v58, 0 }
 0x352   : > { %12590 = vmatpush1.msra.mxu1 %v19784_v31  ;;  %12653 = vmatprep.mubr.f32.mxu1 %v18443_v1  ;;  %v12894_v44 = vpop.permute.xlu1 %12893  ;;  %v19843_v57 = vand.u32 4294901760, %v13381_v6 }
 0x353   : > { %12034 = vmatpush1.msra.mxu0 %v12033_v45  ;;  %12663 = vmatprep.subr.mxu1 %v19771_v38  ;;  %v12899_v62 = vsel %vm4144_vm9, %v12894_v44, %v12896_v48  ;;  %v17871_v48 = vld [vmem:[%s20339_s1 + $0x38] sm:$0xff] }
 0x354   : > { %12099 = vmatmul.mubr.f32.vlgmr.msra.gmra.mrb[0].mxu0 %v19747_v0  ;;  %12107 = vmatprep.subr.mxu0 %v19765_v8  ;;  %v19839_v8 = vsub.f32 %v13383_v12, %v19827_v21  ;;  %v12901_v41 = vsel %vm296_vm6, %v12899_v62, 0  ;;  %v19858_v17 = vsub.f32 %v13381_v6, %v19843_v57  ;;  %v13881_v51 = vsel %vm292_vm4, %v17871_v48, 0 }
 0x355   : > { %v19808_v22 = vpop.permute.xlu0 %18357  ;;  %12110 = vmatpush1.msra.mxu0 %v19794_v24  ;;  %12173 = vmatprep.mubr.f32.mxu0 %v18443_v1  ;;  %v19851_v11 = vand.u32 4294901760, %v12901_v41 }
 0x356   : > { %12183 = vmatprep.subr.mxu0 %v19760_v47  ;;  %v13465_v15 = vand.u32 4294901760, %v19839_v8  ;;  %v13471_v53 = vand.u32 4294901760, %v19858_v17  ;;  %v18360_v29 = vunpack.i.h.bf16 %v19808_v22  ;;  %v18359_v40 = vunpack.i.l.bf16 %v19808_v22 }
 0x358   : > { %v13466_v31 = vsub.f32 %v19839_v8, %v13465_v15  ;;  %v13472_v24 = vsub.f32 %v19858_v17, %v13471_v53 }
 0x359   : > { %v19813_v49 = vpop.permute.xlu0 %13871  ;;  %12656 = vmatmul.mubr.f32.vlgmr.msra.gmra.mrb[0].mxu1 %v19752_v2 }
 0x35a   : > { %12665 = vmatpush1.msra.mxu1 %v19777_v23  ;;  %12728 = vmatprep.mubr.f32.mxu1 %v18443_v1  ;;  %v13473_v61 = vand.u32 4294901760, %v13472_v24  ;;  %v13874_v32 = vpop.permute.xlu1 %13873 }
 0x35b   : > { %12741 = vmatprep.subr.mxu1 %v12505_v63  ;;  %v13467_v63 = vand.u32 4294901760, %v13466_v31  ;;  %v13879_v22 = vsel %vm13877_vm13, %v13874_v32, %v18359_v40 }
 0x35c   : > { %12176 = vmatmul.mubr.f32.vlgmr.msra.gmra.mrb[0].mxu0 %v19752_v2 }
 0x35d   : > { %v15809_v54 = vpop.permute.xlu0 %15808  ;;  %12185 = vmatpush1.msra.mxu0 %v19788_v20  ;;  %12248 = vmatprep.mubr.f32.mxu0 %v18443_v1 }
 0x35e   : > { %v15810_v9 = vrot.slane %v15809_v54, 4  ;;  %12261 = vmatprep.subr.mxu0 %v12025_v13 }
 0x360   : > { %v15811_v39 = vsel %vm2215_vm8, %v15810_v9, %v15809_v54  ;;  %v15815_v46 = vmul.f32 %v15810_v9, %v15801_v16  ;;  %v15817_v5 = vmul.f32 %v15810_v9, %v15803_v33  ;;  %v15821_v27 = vmul.f32 %v15810_v9, %v15807_v19 }
 0x361   : > { %v15814_v4 = vmul.f32 %v15811_v39, %v15800_v52  ;;  %v15816_v56 = vmul.f32 %v15811_v39, %v15802_v55  ;;  %12732 = vmatmul.mubr.f32.vlgmr.msra.gmra.mrb[0].mxu1 %v19756_v43  ;;  %v15818_v13 = vmul.f32 %v15811_v39, %v19640_v59  ;;  %v19865_v59 = vsub.f32 %v12901_v41, %v19851_v11 }
 0x362   : > { %15831 = vrot.lane.b32.xlu1 %v15815_v46, %s18445_s30  ;;  %12745 = vmatpush1.msra.mxu1 %v12511_v14  ;;  %v15820_v34 = vmul.f32 %v15811_v39, %v19651_v26  ;;  %v13878_v54 = vsel %vm13877_vm13, %v19813_v49, %v13874_v32  ;;  %v13885_v16 = vsel %vm296_vm6, %v13879_v22, 0  ;;  %v19941_v52 = vand.u32 4294901760, %v13881_v51 }
 0x363   : > { %12817 = vmatprep.subr.mxu1 %v19771_v38  ;;  %v15826_v18 = vcombine.high %v15814_v4, %v15814_v4  ;;  %12808 = vmatprep.mubr.f32.mxu1 %v18443_v1  ;;  %v16309_v3 = vcombine.high %v15816_v56, %v15816_v56  ;;  %v19849_v38 = vsub.f32 %v12903_v10, %v19835_v7  ;;  %v12991_v26 = vand.u32 4294901760, %v19865_v59 }
 0x364   : > { %12252 = vmatmul.mubr.f32.vlgmr.msra.gmra.mrb[0].mxu0 %v19756_v43  ;;  %v17269_v14 = vcombine.high %v15820_v34, %v15820_v34  ;;  %v13883_v55 = vsel %vm296_vm6, %v13878_v54, 0 }
 0x365   : > { %15829 = vrot.lane.b32.xlu0 %v15826_v18, %s18445_s30  ;;  %12265 = vmatpush1.msra.mxu0 %v12031_v37  ;;  %v12985_v25 = vand.u32 4294901760, %v19849_v38  ;;  %v12992_v60 = vsub.f32 %v19865_v59, %v12991_v26  ;;  %v19956_v44 = vand.u32 4294901760, %v13883_v55 }
 0x366   : > { %16314 = vrot.lane.b32.xlu1 %v15817_v5, %s18445_s30  ;;  %12337 = vmatprep.subr.mxu0 %v19760_v47  ;;  %v15819_v47 = vmul.f32 %v15810_v9, %v15805_v35  ;;  %v19944_v9 = vand.u32 4294901760, %v13885_v16 }
 0x367   : > { %12328 = vmatprep.mubr.f32.mxu0 %v18443_v1  ;;  %v12993_v37 = vand.u32 4294901760, %v12992_v60  ;;  %v19970_v46 = vsub.f32 %v13883_v55, %v19956_v44 }
 0x368   : > { %v13966_v58 = vsub.f32 %v13885_v16, %v19944_v9  ;;  %v234_v16 = vld [vmem:[%s20340_s2] sm:$0xff] }
 0x369   : > { %16312 = vrot.lane.b32.xlu0 %v16309_v3, %s18445_s30  ;;  %12810 = vmatmul.mubr.f32.vlgmr.msra.gmra.mrb[0].mxu1 %v19747_v0  ;;  %v13973_v62 = vand.u32 4294901760, %v19970_v46 }
 0x36a   : > { %16310 = vrot.lane.b32.xlu1 %v15816_v56, %s18445_s30  ;;  %12819 = vmatpush1.msra.mxu1 %v19777_v23  ;;  %v16789_v23 = vcombine.high %v15818_v13, %v15818_v13  ;;  %v13967_v56 = vand.u32 4294901760, %v13966_v58 }
 0x36b   : > { %13386 = vmatprep.subr.mxu1 %v19827_v21  ;;  %12882 = vmatprep.mubr.f32.mxu1 %v18443_v1  ;;  %v13974_v3 = vsub.f32 %v19970_v46, %v13973_v62 }
 0x36c   : > { %12330 = vmatmul.mubr.f32.vlgmr.msra.gmra.mrb[0].mxu0 %v19747_v0  ;;  %v13968_v18 = vsub.f32 %v13966_v58, %v13967_v56 }
 0x36d   : > { %15827 = vrot.lane.b32.xlu0 %v15814_v4, %s18445_s30  ;;  %12339 = vmatpush1.msra.mxu0 %v19788_v20  ;;  %v12986_v20 = vsub.f32 %v19849_v38, %v12985_v25 }
 0x36e   : > { %16794 = vrot.lane.b32.xlu1 %v15819_v47, %s18445_s30  ;;  %12906 = vmatprep.subr.mxu0 %v19835_v7 }
 0x36f   : > { %12402 = vmatprep.mubr.f32.mxu0 %v18443_v1  ;;  %v12987_v28 = vand.u32 4294901760, %v12986_v20 }
 0x371   : > { %16792 = vrot.lane.b32.xlu0 %v16789_v23, %s18445_s30  ;;  %12884 = vmatmul.mubr.f32.vlgmr.msra.gmra.mrb[0].mxu1 %v19747_v0 }
 0x372   : > { %17274 = vrot.lane.b32.xlu1 %v15821_v27, %s18445_s30  ;;  %13388 = vmatpush1.msra.mxu1 %v19843_v57 }
 0x373   : > { %13468 = vmatprep.subr.mxu1 %v13467_v63  ;;  %13451 = vmatprep.mubr.f32.mxu1 %v18443_v1 }
 0x374   : > { %12404 = vmatmul.mubr.f32.vlgmr.msra.gmra.mrb[0].mxu0 %v19747_v0 }
 0x375   : > { %17272 = vrot.lane.b32.xlu0 %v17269_v14, %s18445_s30  ;;  %12908 = vmatpush1.msra.mxu0 %v19851_v11 }
 0x376   : > { %17270 = vrot.lane.b32.xlu1 %v15820_v34, %s18445_s30  ;;  %12988 = vmatprep.subr.mxu0 %v12987_v28 }
 0x377   : > { %13457 = vmatmul.mubr.f32.vlgmr.msra.gmra.mrb[2].mxu1 %v19774_v30  ;;  %12971 = vmatprep.mubr.f32.mxu0 %v18443_v1 }
 0x378   : > { %13474 = vmatpush1.msra.mxu1 %v13473_v61  ;;  %12977 = vmatmul.mubr.f32.vlgmr.msra.gmra.mrb[2].mxu0 %v19774_v30  ;;  %v14358_v30 = vpop.permute.xlu1 %14357 }
 0x379   : > { %13547 = vmatprep.subr.mxu1 %v19839_v8  ;;  %16790 = vrot.lane.b32.xlu0 %v15818_v13, %s18445_s30  ;;  %v14362_v45 = vsel %vm13877_vm13, %v14358_v30, %v18360_v29  ;;  %v18363_v13 = vpop.permute.xlu0 %18362  ;;  %s18385_s30 = scalar_lea.vmem %s18384_s7, 2048 }
 0x37a   : > { %12994 = vmatpush1.msra.mxu0 %v12993_v37  ;;  %13537 = vmatprep.mubr.f32.mxu1 %v18443_v1  ;;  %v14365_v36 = vsel %vm296_vm6, %v14362_v45, 0  ;;  %p18387_p1 = scmp.lt.s32.totalorder %s18385_s30, %s18379_s5 }
 0x37b   : > { %13067 = vmatprep.subr.mxu0 %v19849_v38  ;;  %13057 = vmatprep.mubr.f32.mxu0 %v18443_v1  ;;  %v19938_v12 = vand.u32 4294901760, %v14365_v36  ;;  %v13975_v38 = vand.u32 4294901760, %v13974_v3 }
 0x37c   : > { %v14356_v42 = vpop.permute.xlu1 %14355  ;;  %p18388_p2 = por %p18387_p1, %p18386_p0 }
 0x37d   : > { %v19959_v33 = vsub.f32 %v14365_v36, %v19938_v12 }
 0x37e   : > { %p18389_p3 = pnand %p18388_p2, %p18382_p13 }
 0x37f   : > { %13539 = vmatmul.mubr.f32.vlgmr.msra.gmra.mrb[2].mxu1 %v19747_v0  ;;  %v14447_v10 = vand.u32 4294901760, %v19959_v33 }
 0x380   : > { %13550 = vmatpush1.msra.mxu1 %v19858_v17  ;;  %13059 = vmatmul.mubr.f32.vlgmr.msra.gmra.mrb[2].mxu0 %v19747_v0  ;;  %v18364_v17 = vunpack.i.l.bf16 %v18363_v13 }
 0x381   : > { %13623 = vmatprep.subr.mxu1 %v19827_v21  ;;  %13070 = vmatpush1.msra.mxu0 %v19865_v59  ;;  %v14448_v5 = vsub.f32 %v19959_v33, %v14447_v10 }
 0x382   : > { %13143 = vmatprep.subr.mxu0 %v19835_v7  ;;  %13613 = vmatprep.mubr.f32.mxu1 %v18443_v1 }
 0x383   : > { %13133 = vmatprep.mubr.f32.mxu0 %v18443_v1  ;;  %v14449_v8 = vand.u32 4294901760, %v14448_v5 }
 0x387   : > { %13616 = vmatmul.mubr.f32.vlgmr.msra.gmra.mrb[2].mxu1 %v19752_v2 }
 0x388   : > { %13625 = vmatpush1.msra.mxu1 %v19843_v57  ;;  %13136 = vmatmul.mubr.f32.vlgmr.msra.gmra.mrb[2].mxu0 %v19752_v2  ;;  %v14361_v2 = vsel %vm13877_vm13, %v14356_v42, %v14358_v30 }
 0x389   : > { %13701 = vmatprep.subr.mxu1 %v13465_v15  ;;  %13145 = vmatpush1.msra.mxu0 %v19851_v11  ;;  %v14363_v50 = vsel %vm296_vm6, %v14361_v2, 0  ;;  %v18365_v15 = vunpack.i.h.bf16 %v18363_v13 }
 0x38a   : > { %13221 = vmatprep.subr.mxu0 %v12985_v25  ;;  %13688 = vmatprep.mubr.f32.mxu1 %v18443_v1  ;;  %v19949_v49 = vand.u32 4294901760, %v14363_v50  ;;  %v14836_v25 = vpop.permute.xlu0 %14835 }
 0x38b   : > { %13208 = vmatprep.mubr.f32.mxu0 %v18443_v1 }
 0x38c   : > { %v19967_v39 = vsub.f32 %v14363_v50, %v19949_v49  ;;  %v18452_v50 = vmov 0  }
 0x38d   : > { %18366 = vset.pattern.permute.xlu0 %v18452_v50 }
 0x38e   : > { %v14453_v4 = vand.u32 4294901760, %v19967_v39  ;;  %17757 = vperm.xlu0 %18366, %v234_v16  }
 0x38f   : > { %13692 = vmatmul.mubr.f32.vlgmr.msra.gmra.mrb[2].mxu1 %v19756_v43 }
 0x390   : > { %13705 = vmatpush1.msra.mxu1 %v13471_v53  ;;  %13212 = vmatmul.mubr.f32.vlgmr.msra.gmra.mrb[2].mxu0 %v19756_v43  ;;  %v19963_v43 = vsub.f32 %v13881_v51, %v19941_v52 }
 0x391   : > { %13777 = vmatprep.subr.mxu1 %v19827_v21  ;;  %13225 = vmatpush1.msra.mxu0 %v12991_v26 }
 0x392   : > { %13297 = vmatprep.subr.mxu0 %v19835_v7  ;;  %13768 = vmatprep.mubr.f32.mxu1 %v18443_v1  ;;  %v19975_v21 = vand.u32 4294901760, %v19963_v43  ;;  %v14454_v7 = vsub.f32 %v19967_v39, %v14453_v4 }
 0x393   : > { %13288 = vmatprep.mubr.f32.mxu0 %v18443_v1 }
 0x394   : > { %v13957_v6 = vsub.f32 %v19963_v43, %v19975_v21  ;;  %v14455_v35 = vand.u32 4294901760, %v14454_v7 }
 0x396   : > { %v19993_v41 = vand.u32 4294901760, %v13957_v6 }
 0x397   : > { %13770 = vmatmul.mubr.f32.vlgmr.msra.gmra.mrb[2].mxu1 %v19747_v0 }
 0x398   : > { %13779 = vmatpush1.msra.mxu1 %v19843_v57  ;;  %13290 = vmatmul.mubr.f32.vlgmr.msra.gmra.mrb[2].mxu0 %v19747_v0  ;;  %v13969_v57 = vand.u32 4294901760, %v13968_v18 }
 0x399   : > { %14368 = vmatprep.subr.mxu1 %v19938_v12  ;;  %13299 = vmatpush1.msra.mxu0 %v19851_v11 }
 0x39a   : > { %13888 = vmatprep.subr.mxu0 %v19944_v9  ;;  %13842 = vmatprep.mubr.f32.mxu1 %v18443_v1 }
 0x39b   : > { %13362 = vmatprep.mubr.f32.mxu0 %v18443_v1 }
 0x39f   : > { %13844 = vmatmul.mubr.f32.vlgmr.msra.gmra.mrb[2].mxu1 %v19747_v0 }
 0x3a0   : > { %14370 = vmatpush1.msra.mxu1 %v19949_v49  ;;  %13364 = vmatmul.mubr.f32.vlgmr.msra.gmra.mrb[2].mxu0 %v19747_v0  ;;  %v14838_v0 = vpop.permute.xlu1 %14837 }
 0x3a1   : > { %14450 = vmatprep.subr.mxu1 %v14449_v8  ;;  %13890 = vmatpush1.msra.mxu0 %v19956_v44  ;;  %v14842_v59 = vsel %vm13877_vm13, %v14838_v0, %v18364_v17  ;;  %v14841_v53 = vsel %vm13877_vm13, %v14836_v25, %v14838_v0 }
 0x3a2   : > { %14433 = vmatprep.mubr.f32.mxu1 %v18443_v1  ;;  %13970 = vmatprep.subr.mxu0 %v13969_v57  ;;  %v14845_v31 = vsel %vm296_vm6, %v14842_v59, 0  ;;  %v14843_v20 = vsel %vm296_vm6, %v14841_v53, 0 }
 0x3a3   : > { %14439 = vmatmul.mubr.f32.vlgmr.msra.gmra.mrb[0].mxu1 %v19993_v41  ;;  %13953 = vmatprep.mubr.f32.mxu0 %v18443_v1  ;;  %v20038_v14 = vand.u32 4294901760, %v14845_v31  ;;  %v20048_v28 = vand.u32 4294901760, %v14843_v20 }
 0x3a4   : > { %14456 = vmatpush1.msra.mxu1 %v14455_v35  ;;  %13959 = vmatmul.mubr.f32.vlgmr.msra.gmra.mrb[0].mxu0 %v19993_v41  ;;  %v15318_v11 = vpop.permute.xlu1 %15317 }
 0x3a5   : > { %14529 = vmatprep.subr.mxu1 %v19959_v33  ;;  %13976 = vmatpush1.msra.mxu0 %v13975_v38  ;;  %v15322_v19 = vsel %vm13877_vm13, %v15318_v11, %v18365_v15  ;;  %v20055_v61 = vsub.f32 %v14845_v31, %v20038_v14  ;;  %v20059_v32 = vsub.f32 %v14843_v20, %v20048_v28  ;;  %v17872_v33 = vld [vmem:[%s20339_s1 + $0x40] sm:$0xff] }
 0x3a6   : > { %14049 = vmatprep.subr.mxu0 %v13966_v58  ;;  %14519 = vmatprep.mubr.f32.mxu1 %v18443_v1  ;;  %v15325_v23 = vsel %vm296_vm6, %v15322_v19, 0 }
 0x3a7   : > { %14039 = vmatprep.mubr.f32.mxu0 %v18443_v1  ;;  %v20029_v26 = vand.u32 4294901760, %v15325_v23  ;;  %v14927_v29 = vand.u32 4294901760, %v20055_v61  ;;  %v14933_v42 = vand.u32 4294901760, %v20059_v32 }
 0x3a8   : > { %v15316_v47 = vpop.permute.xlu1 %15315 }
 0x3a9   : > { %v15321_v34 = vsel %vm13877_vm13, %v15316_v47, %v15318_v11  ;;  %v20044_v24 = vsub.f32 %v15325_v23, %v20029_v26  ;;  %v14928_v45 = vsub.f32 %v20055_v61, %v14927_v29  ;;  %v14934_v2 = vsub.f32 %v20059_v32, %v14933_v42 }
 0x3aa   : > { %v15323_v27 = vsel %vm296_vm6, %v15321_v34, 0 }
 0x3ab   : > { %14521 = vmatmul.mubr.f32.vlgmr.msra.gmra.mrb[0].mxu1 %v19941_v52  ;;  %v20036_v63 = vand.u32 4294901760, %v15323_v27  ;;  %v15407_v37 = vand.u32 4294901760, %v20044_v24  ;;  %v14929_v36 = vand.u32 4294901760, %v14928_v45  ;;  %v14935_v54 = vand.u32 4294901760, %v14934_v2 }
 0x3ac   : > { %14532 = vmatpush1.msra.mxu1 %v19967_v39  ;;  %14041 = vmatmul.mubr.f32.vlgmr.msra.gmra.mrb[0].mxu0 %v19941_v52 }
 0x3ad   : > { %14605 = vmatprep.subr.mxu1 %v19938_v12  ;;  %14052 = vmatpush1.msra.mxu0 %v19970_v46  ;;  %v20052_v60 = vsub.f32 %v15323_v27, %v20036_v63  ;;  %v15408_v40 = vsub.f32 %v20044_v24, %v15407_v37 }
 0x3ae   : > { %14125 = vmatprep.subr.mxu0 %v19944_v9  ;;  %14595 = vmatprep.mubr.f32.mxu1 %v18443_v1 }
 0x3af   : > { %14115 = vmatprep.mubr.f32.mxu0 %v18443_v1  ;;  %v15413_v30 = vand.u32 4294901760, %v20052_v60  ;;  %v15409_v22 = vand.u32 4294901760, %v15408_v40 }
 0x3b1   : > { %v15414_v48 = vsub.f32 %v20052_v60, %v15413_v30 }
 0x3b3   : > { %14598 = vmatmul.mubr.f32.vlgmr.msra.gmra.mrb[0].mxu1 %v19963_v43  ;;  %v15415_v51 = vand.u32 4294901760, %v15414_v48 }
 0x3b4   : > { %14607 = vmatpush1.msra.mxu1 %v19949_v49  ;;  %14118 = vmatmul.mubr.f32.vlgmr.msra.gmra.mrb[0].mxu0 %v19963_v43 }
 0x3b5   : > { %14683 = vmatprep.subr.mxu1 %v14447_v10  ;;  %14127 = vmatpush1.msra.mxu0 %v19956_v44 }
 0x3b6   : > { %14203 = vmatprep.subr.mxu0 %v13967_v56  ;;  %14670 = vmatprep.mubr.f32.mxu1 %v18443_v1 }
 0x3b7   : > { %14190 = vmatprep.mubr.f32.mxu0 %v18443_v1 }
 0x3bb   : > { %14674 = vmatmul.mubr.f32.vlgmr.msra.gmra.mrb[0].mxu1 %v19975_v21 }
 0x3bc   : > { %14687 = vmatpush1.msra.mxu1 %v14453_v4  ;;  %14194 = vmatmul.mubr.f32.vlgmr.msra.gmra.mrb[0].mxu0 %v19975_v21  ;;  %v15836_v4 = vsel %vm292_vm4, %v17872_v33, 0 }
 0x3bd   : > { %14759 = vmatprep.subr.mxu1 %v19938_v12  ;;  %14207 = vmatpush1.msra.mxu0 %v13973_v62  ;;  %v20123_v18 = vand.u32 4294901760, %v15836_v4 }
 0x3be   : > { %14279 = vmatprep.subr.mxu0 %v19944_v9  ;;  %14750 = vmatprep.mubr.f32.mxu1 %v18443_v1 }
 0x3bf   : > { %14270 = vmatprep.mubr.f32.mxu0 %v18443_v1 }
 0x3c3   : > { %14752 = vmatmul.mubr.f32.vlgmr.msra.gmra.mrb[0].mxu1 %v19941_v52 }
 0x3c4   : > { %14761 = vmatpush1.msra.mxu1 %v19949_v49  ;;  %14272 = vmatmul.mubr.f32.vlgmr.msra.gmra.mrb[0].mxu0 %v19941_v52 }
 0x3c5   : > { %14281 = vmatpush1.msra.mxu0 %v19956_v44  ;;  %14824 = vmatprep.mubr.f32.mxu1 %v18443_v1 }
 0x3c6   : > { %14848 = vmatprep.subr.mxu0 %v20038_v14  ;;  %15328 = vmatprep.subr.mxu1 %v20029_v26 }
 0x3c7   : > { %14344 = vmatprep.mubr.f32.mxu0 %v18443_v1 }
 0x3cb   : > { %14826 = vmatmul.mubr.f32.vlgmr.msra.gmra.mrb[0].mxu1 %v19941_v52 }
 0x3cc   : > { %15330 = vmatpush1.msra.mxu1 %v20036_v63  ;;  %14346 = vmatmul.mubr.f32.vlgmr.msra.gmra.mrb[0].mxu0 %v19941_v52 }
 0x3cd   : > { %14850 = vmatpush1.msra.mxu0 %v20048_v28  ;;  %15393 = vmatprep.mubr.f32.mxu1 %v18443_v1 }
 0x3ce   : > { %15410 = vmatprep.subr.mxu1 %v15409_v22  ;;  %14930 = vmatprep.subr.mxu0 %v14929_v36 }
 0x3cf   : > { %15399 = vmatmul.mubr.f32.vlgmr.msra.gmra.mrb[2].mxu1 %v19993_v41  ;;  %14913 = vmatprep.mubr.f32.mxu0 %v18443_v1 }
 0x3d0   : > { %15416 = vmatpush1.msra.mxu1 %v15415_v51  ;;  %14919 = vmatmul.mubr.f32.vlgmr.msra.gmra.mrb[2].mxu0 %v19993_v41 }
 0x3d1   : > { %15489 = vmatprep.subr.mxu1 %v20044_v24  ;;  %14936 = vmatpush1.msra.mxu0 %v14935_v54 }
 0x3d2   : > { %15009 = vmatprep.subr.mxu0 %v20055_v61  ;;  %15479 = vmatprep.mubr.f32.mxu1 %v18443_v1 }
 0x3d3   : > { %14999 = vmatprep.mubr.f32.mxu0 %v18443_v1 }
 0x3d4   : > { %v15832_v12 = vpop.permute.xlu1 %15831 }
 0x3d7   : > { %15481 = vmatmul.mubr.f32.vlgmr.msra.gmra.mrb[2].mxu1 %v19941_v52  ;;  %v15830_v55 = vpop.permute.xlu0 %15829 }
 0x3d8   : > { %15492 = vmatpush1.msra.mxu1 %v20052_v60  ;;  %15001 = vmatmul.mubr.f32.vlgmr.msra.gmra.mrb[2].mxu0 %v19941_v52  ;;  %v16315_v9 = vpop.permute.xlu1 %16314  ;;  %v15834_v58 = vsel %vm257_vm7, %v15830_v55, %v15832_v12 }
 0x3d9   : > { %15565 = vmatprep.subr.mxu1 %v20029_v26  ;;  %15012 = vmatpush1.msra.mxu0 %v20059_v32  ;;  %v15840_v56 = vsel %vm296_vm6, %v15834_v58, 0 }
 0x3da   : > { %15085 = vmatprep.subr.mxu0 %v20038_v14  ;;  %15555 = vmatprep.mubr.f32.mxu1 %v18443_v1  ;;  %v20125_v7 = vand.u32 4294901760, %v15840_v56 }
 0x3db   : > { %15075 = vmatprep.mubr.f32.mxu0 %v18443_v1  ;;  %v16313_v49 = vpop.permute.xlu0 %16312 }
 0x3dc   : > { %v16317_v44 = vsel %vm257_vm7, %v16313_v49, %v16315_v9  ;;  %v16311_v39 = vpop.permute.xlu1 %16310  ;;  %v20148_v35 = vsub.f32 %v15840_v56, %v20125_v7 }
 0x3dd   : > { %v16320_v46 = vsel %vm296_vm6, %v16317_v44, 0 }
 0x3de   : > { %v20119_v5 = vand.u32 4294901760, %v16320_v46  ;;  %v15922_v15 = vand.u32 4294901760, %v20148_v35 }
 0x3df   : > { %15558 = vmatmul.mubr.f32.vlgmr.msra.gmra.mrb[2].mxu1 %v19963_v43  ;;  %v15828_v10 = vpop.permute.xlu0 %15827 }
 0x3e0   : > { %15567 = vmatpush1.msra.mxu1 %v20036_v63  ;;  %15078 = vmatmul.mubr.f32.vlgmr.msra.gmra.mrb[2].mxu0 %v19963_v43  ;;  %v16316_v43 = vsel %vm257_vm7, %v16311_v39, %v16313_v49  ;;  %v15833_v62 = vsel %vm257_vm7, %v15828_v10, %v15830_v55  ;;  %v20139_v3 = vsub.f32 %v16320_v46, %v20119_v5 }
 0x3e1   : > { %15643 = vmatprep.subr.mxu1 %v15407_v37  ;;  %15087 = vmatpush1.msra.mxu0 %v20048_v28  ;;  %v16318_v6 = vsel %vm296_vm6, %v16316_v43, 0  ;;  %v15838_v8 = vsel %vm296_vm6, %v15833_v62, 0  ;;  %v15923_v25 = vsub.f32 %v20148_v35, %v15922_v15 }
 0x3e2   : > { %15163 = vmatprep.subr.mxu0 %v14927_v29  ;;  %15630 = vmatprep.mubr.f32.mxu1 %v18443_v1  ;;  %v20134_v41 = vand.u32 4294901760, %v16318_v6  ;;  %v20141_v57 = vand.u32 4294901760, %v15838_v8  ;;  %v16402_v11 = vand.u32 4294901760, %v20139_v3 }
 0x3e3   : > { %15150 = vmatprep.mubr.f32.mxu0 %v18443_v1  ;;  %v15924_v27 = vand.u32 4294901760, %v15923_v25 }
 0x3e4   : > { %v20151_v38 = vsub.f32 %v16318_v6, %v20134_v41  ;;  %v20154_v0 = vsub.f32 %v15838_v8, %v20141_v57  ;;  %v16403_v19 = vsub.f32 %v20139_v3, %v16402_v11 }
 0x3e6   : > { %v16408_v17 = vand.u32 4294901760, %v20151_v38  ;;  %v15928_v47 = vand.u32 4294901760, %v20154_v0  ;;  %v16404_v23 = vand.u32 4294901760, %v16403_v19 }
 0x3e7   : > { %15634 = vmatmul.mubr.f32.vlgmr.msra.gmra.mrb[2].mxu1 %v19975_v21 }
 0x3e8   : > { %15647 = vmatpush1.msra.mxu1 %v15413_v30  ;;  %15154 = vmatmul.mubr.f32.vlgmr.msra.gmra.mrb[2].mxu0 %v19975_v21  ;;  %v20145_v21 = vsub.f32 %v15836_v4, %v20123_v18  ;;  %v16409_v34 = vsub.f32 %v20151_v38, %v16408_v17  ;;  %v15929_v53 = vsub.f32 %v20154_v0, %v15928_v47 }
 0x3e9   : > { %15719 = vmatprep.subr.mxu1 %v20029_v26  ;;  %15167 = vmatpush1.msra.mxu0 %v14933_v42 }
 0x3ea   : > { %15239 = vmatprep.subr.mxu0 %v20038_v14  ;;  %15710 = vmatprep.mubr.f32.mxu1 %v18443_v1  ;;  %v20159_v13 = vand.u32 4294901760, %v20145_v21  ;;  %v16410_v26 = vand.u32 4294901760, %v16409_v34  ;;  %v15930_v20 = vand.u32 4294901760, %v15929_v53 }
 0x3eb   : > { %15230 = vmatprep.mubr.f32.mxu0 %v18443_v1 }
 0x3ec   : > { %v15912_v59 = vsub.f32 %v20145_v21, %v20159_v13 }
 0x3ee   : > { %v20179_v31 = vand.u32 4294901760, %v15912_v59 }
 0x3ef   : > { %15712 = vmatmul.mubr.f32.vlgmr.msra.gmra.mrb[2].mxu1 %v19941_v52 }
 0x3f0   : > { %15721 = vmatpush1.msra.mxu1 %v20036_v63  ;;  %15232 = vmatmul.mubr.f32.vlgmr.msra.gmra.mrb[2].mxu0 %v19941_v52  ;;  %v16793_v63 = vpop.permute.xlu0 %16792 }
 0x3f1   : > { %15241 = vmatpush1.msra.mxu0 %v20048_v28  ;;  %16323 = vmatprep.subr.mxu1 %v20119_v5 }
 0x3f2   : > { %15843 = vmatprep.subr.mxu0 %v20125_v7  ;;  %15784 = vmatprep.mubr.f32.mxu1 %v18443_v1 }
 0x3f3   : > { %15304 = vmatprep.mubr.f32.mxu0 %v18443_v1 }
 0x3f4   : > { %v17273_v24 = vpop.permute.xlu0 %17272 }
 0x3f7   : > { %15786 = vmatmul.mubr.f32.vlgmr.msra.gmra.mrb[2].mxu1 %v19941_v52 }
 0x3f8   : > { %16325 = vmatpush1.msra.mxu1 %v20134_v41  ;;  %15306 = vmatmul.mubr.f32.vlgmr.msra.gmra.mrb[2].mxu0 %v19941_v52  ;;  %v16795_v52 = vpop.permute.xlu1 %16794  ;;  %v16791_v37 = vpop.permute.xlu0 %16790 }
 0x3f9   : > { %16405 = vmatprep.subr.mxu1 %v16404_v23  ;;  %15845 = vmatpush1.msra.mxu0 %v20141_v57  ;;  %v16797_v61 = vsel %vm257_vm7, %v16793_v63, %v16795_v52  ;;  %v16796_v40 = vsel %vm257_vm7, %v16791_v37, %v16793_v63 }
 0x3fa   : > { %16388 = vmatprep.mubr.f32.mxu1 %v18443_v1  ;;  %15925 = vmatprep.subr.mxu0 %v15924_v27  ;;  %v16800_v29 = vsel %vm296_vm6, %v16797_v61, 0  ;;  %v16798_v22 = vsel %vm296_vm6, %v16796_v40, 0 }
 0x3fb   : > { %16394 = vmatmul.mubr.f32.vlgmr.msra.gmra.mrb[0].mxu1 %v20179_v31  ;;  %15908 = vmatprep.mubr.f32.mxu0 %v18443_v1  ;;  %v20219_v48 = vand.u32 4294901760, %v16800_v29  ;;  %v20233_v51 = vand.u32 4294901760, %v16798_v22 }
 0x3fc   : > { %16411 = vmatpush1.msra.mxu1 %v16410_v26  ;;  %15914 = vmatmul.mubr.f32.vlgmr.msra.gmra.mrb[0].mxu0 %v20179_v31  ;;  %v17275_v14 = vpop.permute.xlu1 %17274 }
 0x3fd   : > { %16484 = vmatprep.subr.mxu1 %v20139_v3  ;;  %15931 = vmatpush1.msra.mxu0 %v15930_v20  ;;  %v17277_v28 = vsel %vm257_vm7, %v17273_v24, %v17275_v14  ;;  %v16881_v54 = vsub.f32 %v16800_v29, %v20219_v48  ;;  %v16887_v50 = vsub.f32 %v16798_v22, %v20233_v51 }
 0x3fe   : > { %16004 = vmatprep.subr.mxu0 %v20148_v35  ;;  %16474 = vmatprep.mubr.f32.mxu1 %v18443_v1  ;;  %v17280_v32 = vsel %vm296_vm6, %v17277_v28, 0 }
 0x3ff   : > { %15994 = vmatprep.mubr.f32.mxu0 %v18443_v1  ;;  %v20215_v42 = vand.u32 4294901760, %v17280_v32  ;;  %v16882_v55 = vand.u32 4294901760, %v16881_v54  ;;  %v16888_v49 = vand.u32 4294901760, %v16887_v50 }
 0x400   : > { %v17271_v60 = vpop.permute.xlu1 %17270 }
 0x401   : > { %v17276_v30 = vsel %vm257_vm7, %v17271_v60, %v17273_v24  ;;  %v17361_v36 = vsub.f32 %v17280_v32, %v20215_v42  ;;  %v16883_v33 = vsub.f32 %v16881_v54, %v16882_v55  ;;  %v16889_v46 = vsub.f32 %v16887_v50, %v16888_v49 }
 0x402   : > { %v17278_v45 = vsel %vm296_vm6, %v17276_v30, 0 }
 0x403   : > { %16476 = vmatmul.mubr.f32.vlgmr.msra.gmra.mrb[0].mxu1 %v20123_v18  ;;  %v20228_v2 = vand.u32 4294901760, %v17278_v45  ;;  %v17362_v12 = vand.u32 4294901760, %v17361_v36  ;;  %v16884_v43 = vand.u32 4294901760, %v16883_v33  ;;  %v16890_v4 = vand.u32 4294901760, %v16889_v46 }
 0x404   : > { %16487 = vmatpush1.msra.mxu1 %v20151_v38  ;;  %15996 = vmatmul.mubr.f32.vlgmr.msra.gmra.mrb[0].mxu0 %v20123_v18 }
 0x405   : > { %16560 = vmatprep.subr.mxu1 %v20119_v5  ;;  %16007 = vmatpush1.msra.mxu0 %v20154_v0  ;;  %v17367_v16 = vsub.f32 %v17278_v45, %v20228_v2  ;;  %v17363_v44 = vsub.f32 %v17361_v36, %v17362_v12 }
 0x406   : > { %16080 = vmatprep.subr.mxu0 %v20125_v7  ;;  %16550 = vmatprep.mubr.f32.mxu1 %v18443_v1 }
 0x407   : > { %16070 = vmatprep.mubr.f32.mxu0 %v18443_v1  ;;  %v17368_v9 = vand.u32 4294901760, %v17367_v16  ;;  %v17364_v39 = vand.u32 4294901760, %v17363_v44 }
 0x409   : > { %v17369_v58 = vsub.f32 %v17367_v16, %v17368_v9 }
 0x40b   : > { %16553 = vmatmul.mubr.f32.vlgmr.msra.gmra.mrb[0].mxu1 %v20145_v21  ;;  %v17370_v10 = vand.u32 4294901760, %v17369_v58 }
 0x40c   : > { %16562 = vmatpush1.msra.mxu1 %v20134_v41  ;;  %16073 = vmatmul.mubr.f32.vlgmr.msra.gmra.mrb[0].mxu0 %v20145_v21 }
 0x40d   : > { %16638 = vmatprep.subr.mxu1 %v16402_v11  ;;  %16082 = vmatpush1.msra.mxu0 %v20141_v57  ;;  %v17758_v56 = vpop.permute.xlu0 %17757 }
 0x40e   : > { %16158 = vmatprep.subr.mxu0 %v15922_v15  ;;  %16625 = vmatprep.mubr.f32.mxu1 %v18443_v1 }
 0x40f   : > { %16145 = vmatprep.mubr.f32.mxu0 %v18443_v1 }
 0x413   : > { %16629 = vmatmul.mubr.f32.vlgmr.msra.gmra.mrb[0].mxu1 %v20159_v13 }
 0x414   : > { %16642 = vmatpush1.msra.mxu1 %v16408_v17  ;;  %16149 = vmatmul.mubr.f32.vlgmr.msra.gmra.mrb[0].mxu0 %v20159_v13 }
 0x415   : > { %16714 = vmatprep.subr.mxu1 %v20119_v5  ;;  %16162 = vmatpush1.msra.mxu0 %v15928_v47 }
 0x416   : > { %16234 = vmatprep.subr.mxu0 %v20125_v7  ;;  %16705 = vmatprep.mubr.f32.mxu1 %v18443_v1 }
 0x417   : > { %16225 = vmatprep.mubr.f32.mxu0 %v18443_v1 }
 0x41b   : > { %16707 = vmatmul.mubr.f32.vlgmr.msra.gmra.mrb[0].mxu1 %v20123_v18 }
 0x41c   : > { %16716 = vmatpush1.msra.mxu1 %v20134_v41  ;;  %16227 = vmatmul.mubr.f32.vlgmr.msra.gmra.mrb[0].mxu0 %v20123_v18 }
 0x41d   : > { %17283 = vmatprep.subr.mxu1 %v20215_v42  ;;  %16236 = vmatpush1.msra.mxu0 %v20141_v57 }
 0x41e   : > { %16803 = vmatprep.subr.mxu0 %v20219_v48  ;;  %16779 = vmatprep.mubr.f32.mxu1 %v18443_v1 }
 0x41f   : > { %16299 = vmatprep.mubr.f32.mxu0 %v18443_v1 }
 0x423   : > { %16781 = vmatmul.mubr.f32.vlgmr.msra.gmra.mrb[0].mxu1 %v20123_v18 }
 0x424   : > { %17285 = vmatpush1.msra.mxu1 %v20228_v2  ;;  %16301 = vmatmul.mubr.f32.vlgmr.msra.gmra.mrb[0].mxu0 %v20123_v18 }
 0x425   : > { %17365 = vmatprep.subr.mxu1 %v17364_v39  ;;  %16805 = vmatpush1.msra.mxu0 %v20233_v51 }
 0x426   : > { %17348 = vmatprep.mubr.f32.mxu1 %v18443_v1  ;;  %16885 = vmatprep.subr.mxu0 %v16884_v43 }
 0x427   : > { %17354 = vmatmul.mubr.f32.vlgmr.msra.gmra.mrb[2].mxu1 %v20179_v31  ;;  %16868 = vmatprep.mubr.f32.mxu0 %v18443_v1 }
 0x428   : > { %17371 = vmatpush1.msra.mxu1 %v17370_v10  ;;  %16874 = vmatmul.mubr.f32.vlgmr.msra.gmra.mrb[2].mxu0 %v20179_v31 }
 0x429   : > { %17444 = vmatprep.subr.mxu1 %v17361_v36  ;;  %16891 = vmatpush1.msra.mxu0 %v16890_v4 }
 0x42a   : > { %16964 = vmatprep.subr.mxu0 %v16881_v54  ;;  %17434 = vmatprep.mubr.f32.mxu1 %v18443_v1 }
 0x42b   : > { %16954 = vmatprep.mubr.f32.mxu0 %v18443_v1 }
 0x42f   : > { %17436 = vmatmul.mubr.f32.vlgmr.msra.gmra.mrb[2].mxu1 %v20123_v18 }
 0x430   : > { %17447 = vmatpush1.msra.mxu1 %v17367_v16  ;;  %16956 = vmatmul.mubr.f32.vlgmr.msra.gmra.mrb[2].mxu0 %v20123_v18 }
 0x431   : > { %17520 = vmatprep.subr.mxu1 %v20215_v42  ;;  %16967 = vmatpush1.msra.mxu0 %v16887_v50 }
 0x432   : > { %17040 = vmatprep.subr.mxu0 %v20219_v48  ;;  %17510 = vmatprep.mubr.f32.mxu1 %v18443_v1 }
 0x433   : > { %17030 = vmatprep.mubr.f32.mxu0 %v18443_v1 }
 0x437   : > { %17513 = vmatmul.mubr.f32.vlgmr.msra.gmra.mrb[2].mxu1 %v20145_v21 }
 0x438   : > { %17522 = vmatpush1.msra.mxu1 %v20228_v2  ;;  %17033 = vmatmul.mubr.f32.vlgmr.msra.gmra.mrb[2].mxu0 %v20145_v21 }
 0x439   : > { %17598 = vmatprep.subr.mxu1 %v17362_v12  ;;  %17042 = vmatpush1.msra.mxu0 %v20233_v51 }
 0x43a   : > { %17118 = vmatprep.subr.mxu0 %v16882_v55  ;;  %17585 = vmatprep.mubr.f32.mxu1 %v18443_v1 }
 0x43b   : > { %17105 = vmatprep.mubr.f32.mxu0 %v18443_v1 }
 0x43f   : > { %17589 = vmatmul.mubr.f32.vlgmr.msra.gmra.mrb[2].mxu1 %v20159_v13 }
 0x440   : > { %17602 = vmatpush1.msra.mxu1 %v17368_v9  ;;  %17109 = vmatmul.mubr.f32.vlgmr.msra.gmra.mrb[2].mxu0 %v20159_v13 }
 0x441   : > { %17674 = vmatprep.subr.mxu1 %v20215_v42  ;;  %17122 = vmatpush1.msra.mxu0 %v16888_v49 }
 0x442   : > { %17194 = vmatprep.subr.mxu0 %v20219_v48  ;;  %17665 = vmatprep.mubr.f32.mxu1 %v18443_v1 }
 0x443   : > { %17185 = vmatprep.mubr.f32.mxu0 %v18443_v1 }
 0x447   : > { %17667 = vmatmul.mubr.f32.vlgmr.msra.gmra.mrb[2].mxu1 %v20123_v18 }
 0x448   : > { %17676 = vmatpush1.msra.mxu1 %v20228_v2  ;;  %17187 = vmatmul.mubr.f32.vlgmr.msra.gmra.mrb[2].mxu0 %v20123_v18 }
 0x449   : > { %17196 = vmatpush1.msra.mxu0 %v20233_v51  ;;  %17739 = vmatprep.mubr.f32.mxu1 %v18443_v1 }
 0x44a   : > { %17259 = vmatprep.mubr.f32.mxu0 %v18443_v1 }
 0x44f   : > { %17741 = vmatmul.mubr.f32.vlgmr.msra.gmra.mrb[2].mxu1 %v20123_v18 }
 0x450   : > { %17261 = vmatmul.mubr.f32.vlgmr.msra.gmra.mrb[2].mxu0 %v20123_v18 }
 0x4f6   : > { %v16782_v62 = vpop.f32.mrb[0].mxu1 }
 0x4f7   : > { %v17762_v5 = vadd.f32 %v17758_v56, %v16782_v62  ;;  %v16784_v6 = vpop.f32.mrb[1].mxu1  ;;  %v16302_v7 = vpop.f32.mrb[0].mxu0 }
 0x4f8   : > { %v17763_v8 = vadd.f32 %v17758_v56, %v16784_v6  ;;  %v17760_v41 = vadd.f32 %v17758_v56, %v16302_v7  ;;  %v16304_v3 = vpop.f32.mrb[1].mxu0 }
 0x4f9   : > { %17770 = vst [vmem:[%s166_s24 + $0x10] sm:$0xff] %v17762_v5  ;;  %v17761_v57 = vadd.f32 %v17758_v56, %v16304_v3 }
 0x4fa   : > { %17771 = vst [vmem:[%s166_s24 + $0x18] sm:$0xff] %v17763_v8  ;;  %17768 = vst [vmem:[%s166_s24] sm:$0xff] %v17760_v41 }
 0x4fb   : > { %17769 = vst [vmem:[%s166_s24 + $0x8] sm:$0xff] %v17761_v57 }
 0x522   : > { %v17742_v1 = vpop.f32.mrb[2].mxu1 }
 0x523   : > { %v17766_v18 = vadd.f32 %v17758_v56, %v17742_v1  ;;  %v17744_v21 = vpop.f32.mrb[3].mxu1  ;;  %v17262_v35 = vpop.f32.mrb[2].mxu0 }
 0x524   : > { %v17767_v38 = vadd.f32 %v17758_v56, %v17744_v21  ;;  %v17764_v0 = vadd.f32 %v17758_v56, %v17262_v35  ;;  %v17264_v11 = vpop.f32.mrb[3].mxu0 }
 0x525   : > { %17774 = vst [vmem:[%s166_s24 + $0x30] sm:$0xff] %v17766_v18  ;;  %v17765_v13 = vadd.f32 %v17758_v56, %v17264_v11 }
 0x526   : > { %17775 = vst [vmem:[%s166_s24 + $0x38] sm:$0xff] %v17767_v38  ;;  %17772 = vst [vmem:[%s166_s24 + $0x20] sm:$0xff] %v17764_v0 }
 0x527   : > { %17773 = vst [vmem:[%s166_s24 + $0x28] sm:$0xff] %v17765_v13 }
 0x528   : > { %18392 = shalt.err (!%p18389_p3)
}
 0x529   : > { %s18393_s8 = scalar_lea.hbm %s20290_s4, 1024  ;;  %s18397_s11 = scalar_lea.hbm %s20341_s3, 2048 }
 0x52a   : > { %p18394_p4 = scmp.ne.s32.totalorder %s20290_s4, %s18393_s8  ;;  %p18398_p9 = scmp.lt.u32.totalorder %s20290_s4, %s20341_s3 }
 0x52b   : > { %p18399_p10 = scmp.lt.u32.totalorder %s18397_s11, %s18393_s8  ;;  %p18401_p12 = scmp.lt.u32.totalorder %s18393_s8, %s20290_s4 }
 0x52c   : > { %p18395_p7 = pnand %p18394_p4, %p18513_p5 }
 0x52d   : > { %p18400_p11 = por %p18399_p10, %p18398_p9 }
 0x52e   : > { %p18396_p8 = pneg %p18395_p7 }
 0x52f   : > { %p18402_p13 = por %p18401_p12, %p18400_p11 }
 0x531   : > { %p18403_p0 = pnand %p18402_p13, %p18396_p8 }
 0x533   : > { %18406 = shalt.err (!%p18403_p0)
}
 0x534   : > { %s18454_s20 = smov 256  }
 0x535   : > { %18306 = dma.vmem_to_hbm [thread:$0]  (%p18513_p5), %s20292_s26, 1024, %s20290_s4, %s20296_s16, %s18454_s20, %s18454_s20, %s18444_s29  }
 0x536 PF: > { %p18312_p1 = scmp.ge.s32.totalorder %s18441_s15, 2  ;;  %s17806_s24 = sand.u32 1, %s18429_s12  }
 0x537   : > { %s17807_s25 = scalar_lea.sflag [#allocation4], %s17806_s24 }
 0x538   : > { %p18309_p2 = pnand %p18312_p1, %p18517_p6 }
 0x53a   : > { %18424 = dma.done.wait (!%p18309_p2), %s17807_s25, 1024  }
 0x53b   : > { %18426 = vsyncadd (!%p18309_p2), %s17807_s25, 4294966272  ;;  %p13_p3 = scmp.ge.s32.totalorder %s18500_s18, 4   ;;  %s20344_s12 = smov %s18433_s13 }
 0x53c   : > { %s20345_s13 = smov %s18437_s14  ;;  %s20346_s14 = smov %s18511_s21 }
 0x53d   : > { %s20347_s15 = smov %s18500_s18  ;;  %15 = sbr.rel (!%p13_p3) target bundleno = 3 (0x3), region = 75 }
 0x544   :  { %17812 = vsyncpa [#allocation4], 1 }
 0x545   :  { %17814 = vsyncpa [#allocation4 + $0x1], 1 }

</bundles_post_ra>
